<compile_context>
chip_gen: v7x
topology: tpu7x:2x2x1
jax: 0.10.0
libtpu: 0.0.40
codegen_flags: <defaults>
</compile_context>

<pallas_src>
import functools

import numpy as np
import jax
import jax.numpy as jnp
from jax.experimental import pallas as pl
from jax.experimental.pallas import tpu as pltpu


# ----------------------------------------------------------------------------
# Kernel 1: fused conv3x3 (SAME) + bias + ReLU + 2x2 max-pool, one image/step
# ----------------------------------------------------------------------------
def _conv_relu_pool_kernel(x_ref, w_ref, b_ref, o_ref, *, H, W, Cin, Cout):
    """x_ref:(1,H+2,W+2,Cin) padded NHWC tile; w_ref:(9,Cin,Cout) tap-major;
    b_ref:(1,Cout); o_ref:(1,H//2,W//2,Cout)."""
    # 3x3 conv as 9 accumulated matmuls over shifted in-VMEM views (no im2col).
    acc = None
    for idx in range(9):
        ky, kx = idx // 3, idx % 3
        patch = x_ref[0, ky:ky + H, kx:kx + W, :].reshape(H * W, Cin)
        part = jnp.dot(patch, w_ref[idx], preferred_element_type=jnp.float32)
        acc = part if acc is None else acc + part
    y = jnp.maximum(acc + b_ref[...], 0.0)                      # (H*W, Cout)

    # Fused 2x2 max-pool; the lane dim (Cout) is never touched.
    Hh, Wh = H // 2, W // 2
    y = jnp.max(y.reshape(H, Wh, 2, Cout), axis=2)              # pool width pairs
    y = jnp.max(y.reshape(Hh, 2, Wh, Cout), axis=1)             # pool height pairs
    o_ref[0] = y.astype(o_ref.dtype)


def conv3x3_relu_pool(x, w_hwio, b):
    """x:(N,H,W,Cin) f32, w:(3,3,Cin,Cout) HWIO, b:(Cout,) -> (N,H/2,W/2,Cout)."""
    N, H, W, Cin = x.shape
    Cout = w_hwio.shape[-1]
    assert H % 2 == 0 and W % 2 == 0, "2x2 max-pool requires even H and W"

    xp = jnp.pad(x, ((0, 0), (1, 1), (1, 1), (0, 0)))           # SAME padding (glue)
    w9 = w_hwio.reshape(9, Cin, Cout)
    b2 = b.reshape(1, Cout)

    flops = 2 * N * H * W * 9 * Cin * Cout
    bytes_accessed = 4 * (xp.size + w9.size + b2.size
                          + N * (H // 2) * (W // 2) * Cout)

    return pl.pallas_call(
        functools.partial(_conv_relu_pool_kernel, H=H, W=W, Cin=Cin, Cout=Cout),
        out_shape=jax.ShapeDtypeStruct((N, H // 2, W // 2, Cout), jnp.float32),
        grid=(N,),
        in_specs=[
            pl.BlockSpec((1, H + 2, W + 2, Cin), lambda n: (n, 0, 0, 0)),
            pl.BlockSpec((9, Cin, Cout), lambda n: (0, 0, 0)),   # weights stay resident
            pl.BlockSpec((1, Cout), lambda n: (0, 0)),
        ],
        out_specs=pl.BlockSpec((1, H // 2, W // 2, Cout), lambda n: (n, 0, 0, 0)),
        compiler_params=pltpu.CompilerParams(dimension_semantics=("parallel",)),
        cost_estimate=pl.CostEstimate(flops=flops, transcendentals=0,
                                      bytes_accessed=bytes_accessed),
    )(xp, w9, b2)


# ----------------------------------------------------------------------------
# Kernel 2: fused tail — attention MLP + softmax + scaled global max-pool +
#           fc1/fc2/fc3 (all weights VMEM-resident, single launch)
# ----------------------------------------------------------------------------
def _tail_kernel(ff_ref, fs_ref,
                 wa1_ref, ba1_ref, wa2_ref, ba2_ref,
                 wf1_ref, bf1_ref, wf2_ref, bf2_ref, wf3_ref, bf3_ref,
                 att_ref, out_ref, *, batch):
    """ff_ref:(2B,S*C) flattened features, fs_ref:(2B,S,C) spatial view.
    att_ref:(2B,1) softmax attention; out_ref:(B,128) lane-padded logits."""
    flat = ff_ref[...]
    h = jnp.maximum(
        jnp.dot(flat, wa1_ref[...], preferred_element_type=jnp.float32) + ba1_ref[...],
        0.0)
    logits = (jnp.dot(h, wa2_ref[...], preferred_element_type=jnp.float32)
              + ba2_ref[...])                                    # (2B, 1)
    # Softmax over a width-1 axis is exactly 1.0; kept literal (cheap & exact).
    m = jnp.max(logits, axis=1, keepdims=True)
    e = jnp.exp(logits - m)
    att = e / jnp.sum(e, axis=1, keepdims=True)                  # (2B, 1)
    att_ref[...] = att

    # Global max-pool (single sublane-axis reduction), then scale:
    # max(att * x) == att * max(x) because att is a positive per-batch scalar.
    pooled = jnp.max(fs_ref[...], axis=1) * att                  # (2B, C)

    merged = jnp.concatenate([pooled[:batch], pooled[batch:]], axis=1)   # (B, 2C)
    h1 = jnp.maximum(
        jnp.dot(merged, wf1_ref[...], preferred_element_type=jnp.float32) + bf1_ref[...],
        0.0)
    h2 = jnp.maximum(
        jnp.dot(h1, wf2_ref[...], preferred_element_type=jnp.float32) + bf2_ref[...],
        0.0)
    out = jnp.dot(h2, wf3_ref[...], preferred_element_type=jnp.float32) + bf3_ref[...]
    out_ref[...] = out.astype(out_ref.dtype)


# ----------------------------------------------------------------------------
# Full forward (mirrors SiameseAttentionNetwork.forward with mask=False)
# ----------------------------------------------------------------------------
def siamese_forward(params, x1_nchw, x2_nchw):
    B = x1_nchw.shape[0]
    # Stack both siamese inputs -> one pass of the shared pipeline on 2B.
    x = jnp.concatenate([x1_nchw, x2_nchw], axis=0)              # (2B, C, H, W)
    x = jnp.transpose(x, (0, 2, 3, 1))                           # NCHW -> NHWC

    feat = conv3x3_relu_pool(x, params["w_conv1"], params["b_conv1"])
    feat = conv3x3_relu_pool(feat, params["w_conv2"], params["b_conv2"])
    N, Hs, Ws, C = feat.shape                                    # N == 2B

    feat_sp = feat.reshape(N, Hs * Ws, C)                        # spatial view
    feat_flat = feat.reshape(N, Hs * Ws * C)                     # flattened view

    num_classes = params["w_fc3"].shape[1]
    pad_n = 128 - num_classes                                    # lane-dense output
    wf3p = jnp.pad(params["w_fc3"], ((0, 0), (0, pad_n)))
    bf3p = jnp.pad(params["b_fc3"], (0, pad_n)).reshape(1, 128)

    att, out_p = pl.pallas_call(
        functools.partial(_tail_kernel, batch=B),
        out_shape=(jax.ShapeDtypeStruct((N, 1), jnp.float32),
                   jax.ShapeDtypeStruct((B, 128), jnp.float32)),
    )(feat_flat, feat_sp,
      params["w_att1"], params["b_att1"].reshape(1, -1),
      params["w_att2"], params["b_att2"].reshape(1, -1),
      params["w_fc1"], params["b_fc1"].reshape(1, -1),
      params["w_fc2"], params["b_fc2"].reshape(1, -1),
      wf3p, bf3p)

    out = out_p[:, :num_classes]
    att1 = att[:B].reshape(B, 1, 1, 1)
    att2 = att[B:].reshape(B, 1, 1, 1)
    return out, att1, att2


# ----------------------------------------------------------------------------
# Pure-JAX reference (no Pallas) for correctness checking
# ----------------------------------------------------------------------------
def reference_forward(params, x1_nchw, x2_nchw):
    x1 = jnp.transpose(x1_nchw, (0, 2, 3, 1))
    x2 = jnp.transpose(x2_nchw, (0, 2, 3, 1))

    def conv_block(x, w, b):
        y = jax.lax.conv_general_dilated(
            x, w, window_strides=(1, 1), padding="SAME",
            dimension_numbers=("NHWC", "HWIO", "NHWC"))
        y = jax.nn.relu(y + b)
        return jax.lax.reduce_window(y, -jnp.inf, jax.lax.max,
                                     (1, 2, 2, 1), (1, 2, 2, 1), "VALID")

    def base(x):
        x = conv_block(x, params["w_conv1"], params["b_conv1"])
        x = conv_block(x, params["w_conv2"], params["b_conv2"])
        return x

    out1, out2 = base(x1), base(x2)
    B = out1.shape[0]

    def att_logits(feat):
        flat = feat.reshape(B, -1)
        h = jax.nn.relu(flat @ params["w_att1"] + params["b_att1"])
        return h @ params["w_att2"] + params["b_att2"]

    a1 = jax.nn.softmax(att_logits(out1), axis=1)[:, :, None, None]
    a2 = jax.nn.softmax(att_logits(out2), axis=1)[:, :, None, None]

    p1 = jnp.max(out1 * a1, axis=(1, 2))
    p2 = jnp.max(out2 * a2, axis=(1, 2))
    merged = jnp.concatenate([p1, p2], axis=1)
    h = jax.nn.relu(merged @ params["w_fc1"] + params["b_fc1"])
    h = jax.nn.relu(h @ params["w_fc2"] + params["b_fc2"])
    out = h @ params["w_fc3"] + params["b_fc3"]
    return out, a1, a2


# ----------------------------------------------------------------------------
# Deterministic parameter init (shapes follow the PyTorch module __init__,
# with num_classes=4 as used in train(); attention_hidden_size=128 default)
# ----------------------------------------------------------------------------
def init_params(key, *, feat_h, feat_w, num_classes=4, hidden=128):
    ks = jax.random.split(key, 16)

    def u(k, shape, fan_in):
        bound = 1.0 / float(np.sqrt(fan_in))
        return jax.random.uniform(k, shape, jnp.float32, -bound, bound)

    feat_c = 128
    flat = feat_c * feat_h * feat_w
    return {
        "w_conv1": u(ks[0], (3, 3, 3, 64), 3 * 3 * 3),
        "b_conv1": u(ks[1], (64,), 3 * 3 * 3),
        "w_conv2": u(ks[2], (3, 3, 64, 128), 3 * 3 * 64),
        "b_conv2": u(ks[3], (128,), 3 * 3 * 64),
        "w_att1": u(ks[4], (flat, hidden), flat),
        "b_att1": u(ks[5], (hidden,), flat),
        "w_att2": u(ks[6], (hidden, 1), hidden),
        "b_att2": u(ks[7], (1,), hidden),
        "w_fc1": u(ks[8], (2 * feat_c, 128), 2 * feat_c),
        "b_fc1": u(ks[9], (128,), 2 * feat_c),
        "w_fc2": u(ks[10], (128, 64), 128),
        "b_fc2": u(ks[11], (64,), 128),
        "w_fc3": u(ks[12], (64, num_classes), 64),
        "b_fc3": u(ks[13], (num_classes,), 64),
    }


if __name__ == "__main__":
    B, C, H, W = 2, 3, 16, 16
    num_classes = 4

    key = jax.random.PRNGKey(0)
    kx1, kx2 = jax.random.split(key)
    x1 = jax.random.normal(kx1, (B, C, H, W), jnp.float32)
    x2 = jax.random.normal(kx2, (B, C, H, W), jnp.float32)

    params = init_params(jax.random.PRNGKey(42), feat_h=H // 4, feat_w=W // 4,
                         num_classes=num_classes)

    fwd = jax.jit(siamese_forward)
    out, att1, att2 = fwd(params, x1, x2)
    jax.block_until_ready((out, att1, att2))

    assert out.shape == (B, num_classes)
    assert att1.shape == (B, 1, 1, 1) and att2.shape == (B, 1, 1, 1)

    ref_out, ref_a1, ref_a2 = reference_forward(params, x1, x2)
    np.testing.assert_allclose(np.asarray(out), np.asarray(ref_out),
                               rtol=2e-3, atol=2e-3)
    np.testing.assert_allclose(np.asarray(att1), np.asarray(ref_a1),
                               rtol=1e-5, atol=1e-5)
    np.testing.assert_allclose(np.asarray(att2), np.asarray(ref_a2),
                               rtol=1e-5, atol=1e-5)

    print("KERNEL_OK")
</pallas_src>

<mosaic_0001>
module attributes {stable_mosaic.version = 11 : i64} {
  func.func @_conv_relu_pool_kernel(%arg0: i32, %arg1: memref<1x18x18x3xf32, #tpu.memory_space<vmem>>, %arg2: memref<9x3x64xf32, #tpu.memory_space<vmem>>, %arg3: memref<1x64xf32, #tpu.memory_space<vmem>>, %arg4: memref<1x8x8x64xf32, #tpu.memory_space<vmem>>) attributes {dimension_semantics = [#tpu.dimension_semantics<parallel>], iteration_bounds = array<i64: 4>, scalar_prefetch = 0 : i64, scratch_operands = 0 : i64, tpu.core_type = #tpu.core_type<tc>, window_params = [{transform_indices = @transform_0, window_bounds = array<i64: 1, 18, 18, 3>}, {pipeline_mode = #tpu.pipeline_mode<synchronous>, transform_indices = @transform_1, window_bounds = array<i64: 9, 3, 64>}, {pipeline_mode = #tpu.pipeline_mode<synchronous>, transform_indices = @transform_2, window_bounds = array<i64: 1, 64>}, {transform_indices = @transform_3, window_bounds = array<i64: 1, 8, 8, 64>}]} {
    %c0 = arith.constant 0 : index
    %c0_0 = arith.constant 0 : index
    %c0_1 = arith.constant 0 : index
    %c0_2 = arith.constant 0 : index
    %0 = vector.load %arg1[%c0, %c0_0, %c0_1, %c0_2] : memref<1x18x18x3xf32, #tpu.memory_space<vmem>>, vector<1x16x16x3xf32>
    %1 = vector.shape_cast %0 : vector<1x16x16x3xf32> to vector<16x16x3xf32>
    %2 = vector.shape_cast %1 : vector<16x16x3xf32> to vector<256x3xf32>
    %c0_3 = arith.constant 0 : index
    %c0_4 = arith.constant 0 : index
    %c0_5 = arith.constant 0 : index
    %3 = vector.load %arg2[%c0_3, %c0_4, %c0_5] : memref<9x3x64xf32, #tpu.memory_space<vmem>>, vector<1x3x64xf32>
    %4 = vector.shape_cast %3 : vector<1x3x64xf32> to vector<3x64xf32>
    %cst = arith.constant dense<0.000000e+00> : vector<256x64xf32>
    %5 = tpu.matmul %2, %4, %cst {dimension_numbers = #tpu.dot_dimension_numbers<[1], [0], [0], [1], [0, 0, 1, 1], [], []>} : vector<256x3xf32>, vector<3x64xf32>, vector<256x64xf32> -> vector<256x64xf32>
    %c0_6 = arith.constant 0 : index
    %c0_7 = arith.constant 0 : index
    %c1 = arith.constant 1 : index
    %c0_8 = arith.constant 0 : index
    %6 = vector.load %arg1[%c0_6, %c0_7, %c1, %c0_8] : memref<1x18x18x3xf32, #tpu.memory_space<vmem>>, vector<1x16x16x3xf32>
    %7 = vector.shape_cast %6 : vector<1x16x16x3xf32> to vector<16x16x3xf32>
    %8 = vector.shape_cast %7 : vector<16x16x3xf32> to vector<256x3xf32>
    %c1_9 = arith.constant 1 : index
    %c0_10 = arith.constant 0 : index
    %c0_11 = arith.constant 0 : index
    %9 = vector.load %arg2[%c1_9, %c0_10, %c0_11] : memref<9x3x64xf32, #tpu.memory_space<vmem>>, vector<1x3x64xf32>
    %10 = vector.shape_cast %9 : vector<1x3x64xf32> to vector<3x64xf32>
    %cst_12 = arith.constant dense<0.000000e+00> : vector<256x64xf32>
    %11 = tpu.matmul %8, %10, %cst_12 {dimension_numbers = #tpu.dot_dimension_numbers<[1], [0], [0], [1], [0, 0, 1, 1], [], []>} : vector<256x3xf32>, vector<3x64xf32>, vector<256x64xf32> -> vector<256x64xf32>
    %12 = arith.addf %5, %11 : vector<256x64xf32>
    %c0_13 = arith.constant 0 : index
    %c0_14 = arith.constant 0 : index
    %c2 = arith.constant 2 : index
    %c0_15 = arith.constant 0 : index
    %13 = vector.load %arg1[%c0_13, %c0_14, %c2, %c0_15] : memref<1x18x18x3xf32, #tpu.memory_space<vmem>>, vector<1x16x16x3xf32>
    %14 = vector.shape_cast %13 : vector<1x16x16x3xf32> to vector<16x16x3xf32>
    %15 = vector.shape_cast %14 : vector<16x16x3xf32> to vector<256x3xf32>
    %c2_16 = arith.constant 2 : index
    %c0_17 = arith.constant 0 : index
    %c0_18 = arith.constant 0 : index
    %16 = vector.load %arg2[%c2_16, %c0_17, %c0_18] : memref<9x3x64xf32, #tpu.memory_space<vmem>>, vector<1x3x64xf32>
    %17 = vector.shape_cast %16 : vector<1x3x64xf32> to vector<3x64xf32>
    %cst_19 = arith.constant dense<0.000000e+00> : vector<256x64xf32>
    %18 = tpu.matmul %15, %17, %cst_19 {dimension_numbers = #tpu.dot_dimension_numbers<[1], [0], [0], [1], [0, 0, 1, 1], [], []>} : vector<256x3xf32>, vector<3x64xf32>, vector<256x64xf32> -> vector<256x64xf32>
    %19 = arith.addf %12, %18 : vector<256x64xf32>
    %c0_20 = arith.constant 0 : index
    %c1_21 = arith.constant 1 : index
    %c0_22 = arith.constant 0 : index
    %c0_23 = arith.constant 0 : index
    %20 = vector.load %arg1[%c0_20, %c1_21, %c0_22, %c0_23] : memref<1x18x18x3xf32, #tpu.memory_space<vmem>>, vector<1x16x16x3xf32>
    %21 = vector.shape_cast %20 : vector<1x16x16x3xf32> to vector<16x16x3xf32>
    %22 = vector.shape_cast %21 : vector<16x16x3xf32> to vector<256x3xf32>
    %c3 = arith.constant 3 : index
    %c0_24 = arith.constant 0 : index
    %c0_25 = arith.constant 0 : index
    %23 = vector.load %arg2[%c3, %c0_24, %c0_25] : memref<9x3x64xf32, #tpu.memory_space<vmem>>, vector<1x3x64xf32>
    %24 = vector.shape_cast %23 : vector<1x3x64xf32> to vector<3x64xf32>
    %cst_26 = arith.constant dense<0.000000e+00> : vector<256x64xf32>
    %25 = tpu.matmul %22, %24, %cst_26 {dimension_numbers = #tpu.dot_dimension_numbers<[1], [0], [0], [1], [0, 0, 1, 1], [], []>} : vector<256x3xf32>, vector<3x64xf32>, vector<256x64xf32> -> vector<256x64xf32>
    %26 = arith.addf %19, %25 : vector<256x64xf32>
    %c0_27 = arith.constant 0 : index
    %c1_28 = arith.constant 1 : index
    %c1_29 = arith.constant 1 : index
    %c0_30 = arith.constant 0 : index
    %27 = vector.load %arg1[%c0_27, %c1_28, %c1_29, %c0_30] : memref<1x18x18x3xf32, #tpu.memory_space<vmem>>, vector<1x16x16x3xf32>
    %28 = vector.shape_cast %27 : vector<1x16x16x3xf32> to vector<16x16x3xf32>
    %29 = vector.shape_cast %28 : vector<16x16x3xf32> to vector<256x3xf32>
    %c4 = arith.constant 4 : index
    %c0_31 = arith.constant 0 : index
    %c0_32 = arith.constant 0 : index
    %30 = vector.load %arg2[%c4, %c0_31, %c0_32] : memref<9x3x64xf32, #tpu.memory_space<vmem>>, vector<1x3x64xf32>
    %31 = vector.shape_cast %30 : vector<1x3x64xf32> to vector<3x64xf32>
    %cst_33 = arith.constant dense<0.000000e+00> : vector<256x64xf32>
    %32 = tpu.matmul %29, %31, %cst_33 {dimension_numbers = #tpu.dot_dimension_numbers<[1], [0], [0], [1], [0, 0, 1, 1], [], []>} : vector<256x3xf32>, vector<3x64xf32>, vector<256x64xf32> -> vector<256x64xf32>
    %33 = arith.addf %26, %32 : vector<256x64xf32>
    %c0_34 = arith.constant 0 : index
    %c1_35 = arith.constant 1 : index
    %c2_36 = arith.constant 2 : index
    %c0_37 = arith.constant 0 : index
    %34 = vector.load %arg1[%c0_34, %c1_35, %c2_36, %c0_37] : memref<1x18x18x3xf32, #tpu.memory_space<vmem>>, vector<1x16x16x3xf32>
    %35 = vector.shape_cast %34 : vector<1x16x16x3xf32> to vector<16x16x3xf32>
    %36 = vector.shape_cast %35 : vector<16x16x3xf32> to vector<256x3xf32>
    %c5 = arith.constant 5 : index
    %c0_38 = arith.constant 0 : index
    %c0_39 = arith.constant 0 : index
    %37 = vector.load %arg2[%c5, %c0_38, %c0_39] : memref<9x3x64xf32, #tpu.memory_space<vmem>>, vector<1x3x64xf32>
    %38 = vector.shape_cast %37 : vector<1x3x64xf32> to vector<3x64xf32>
    %cst_40 = arith.constant dense<0.000000e+00> : vector<256x64xf32>
    %39 = tpu.matmul %36, %38, %cst_40 {dimension_numbers = #tpu.dot_dimension_numbers<[1], [0], [0], [1], [0, 0, 1, 1], [], []>} : vector<256x3xf32>, vector<3x64xf32>, vector<256x64xf32> -> vector<256x64xf32>
    %40 = arith.addf %33, %39 : vector<256x64xf32>
    %c0_41 = arith.constant 0 : index
    %c2_42 = arith.constant 2 : index
    %c0_43 = arith.constant 0 : index
    %c0_44 = arith.constant 0 : index
    %41 = vector.load %arg1[%c0_41, %c2_42, %c0_43, %c0_44] : memref<1x18x18x3xf32, #tpu.memory_space<vmem>>, vector<1x16x16x3xf32>
    %42 = vector.shape_cast %41 : vector<1x16x16x3xf32> to vector<16x16x3xf32>
    %43 = vector.shape_cast %42 : vector<16x16x3xf32> to vector<256x3xf32>
    %c6 = arith.constant 6 : index
    %c0_45 = arith.constant 0 : index
    %c0_46 = arith.constant 0 : index
    %44 = vector.load %arg2[%c6, %c0_45, %c0_46] : memref<9x3x64xf32, #tpu.memory_space<vmem>>, vector<1x3x64xf32>
    %45 = vector.shape_cast %44 : vector<1x3x64xf32> to vector<3x64xf32>
    %cst_47 = arith.constant dense<0.000000e+00> : vector<256x64xf32>
    %46 = tpu.matmul %43, %45, %cst_47 {dimension_numbers = #tpu.dot_dimension_numbers<[1], [0], [0], [1], [0, 0, 1, 1], [], []>} : vector<256x3xf32>, vector<3x64xf32>, vector<256x64xf32> -> vector<256x64xf32>
    %47 = arith.addf %40, %46 : vector<256x64xf32>
    %c0_48 = arith.constant 0 : index
    %c2_49 = arith.constant 2 : index
    %c1_50 = arith.constant 1 : index
    %c0_51 = arith.constant 0 : index
    %48 = vector.load %arg1[%c0_48, %c2_49, %c1_50, %c0_51] : memref<1x18x18x3xf32, #tpu.memory_space<vmem>>, vector<1x16x16x3xf32>
    %49 = vector.shape_cast %48 : vector<1x16x16x3xf32> to vector<16x16x3xf32>
    %50 = vector.shape_cast %49 : vector<16x16x3xf32> to vector<256x3xf32>
    %c7 = arith.constant 7 : index
    %c0_52 = arith.constant 0 : index
    %c0_53 = arith.constant 0 : index
    %51 = vector.load %arg2[%c7, %c0_52, %c0_53] : memref<9x3x64xf32, #tpu.memory_space<vmem>>, vector<1x3x64xf32>
    %52 = vector.shape_cast %51 : vector<1x3x64xf32> to vector<3x64xf32>
    %cst_54 = arith.constant dense<0.000000e+00> : vector<256x64xf32>
    %53 = tpu.matmul %50, %52, %cst_54 {dimension_numbers = #tpu.dot_dimension_numbers<[1], [0], [0], [1], [0, 0, 1, 1], [], []>} : vector<256x3xf32>, vector<3x64xf32>, vector<256x64xf32> -> vector<256x64xf32>
    %54 = arith.addf %47, %53 : vector<256x64xf32>
    %c0_55 = arith.constant 0 : index
    %c2_56 = arith.constant 2 : index
    %c2_57 = arith.constant 2 : index
    %c0_58 = arith.constant 0 : index
    %55 = vector.load %arg1[%c0_55, %c2_56, %c2_57, %c0_58] : memref<1x18x18x3xf32, #tpu.memory_space<vmem>>, vector<1x16x16x3xf32>
    %56 = vector.shape_cast %55 : vector<1x16x16x3xf32> to vector<16x16x3xf32>
    %57 = vector.shape_cast %56 : vector<16x16x3xf32> to vector<256x3xf32>
    %c8 = arith.constant 8 : index
    %c0_59 = arith.constant 0 : index
    %c0_60 = arith.constant 0 : index
    %58 = vector.load %arg2[%c8, %c0_59, %c0_60] : memref<9x3x64xf32, #tpu.memory_space<vmem>>, vector<1x3x64xf32>
    %59 = vector.shape_cast %58 : vector<1x3x64xf32> to vector<3x64xf32>
    %cst_61 = arith.constant dense<0.000000e+00> : vector<256x64xf32>
    %60 = tpu.matmul %57, %59, %cst_61 {dimension_numbers = #tpu.dot_dimension_numbers<[1], [0], [0], [1], [0, 0, 1, 1], [], []>} : vector<256x3xf32>, vector<3x64xf32>, vector<256x64xf32> -> vector<256x64xf32>
    %61 = arith.addf %54, %60 : vector<256x64xf32>
    %c0_62 = arith.constant 0 : index
    %c0_63 = arith.constant 0 : index
    %62 = vector.load %arg3[%c0_62, %c0_63] : memref<1x64xf32, #tpu.memory_space<vmem>>, vector<1x64xf32>
    %63 = vector.broadcast %62 : vector<1x64xf32> to vector<256x64xf32>
    %64 = arith.addf %61, %63 : vector<256x64xf32>
    %cst_64 = arith.constant 0.000000e+00 : f32
    %65 = vector.broadcast %cst_64 : f32 to vector<256x64xf32>
    %66 = arith.maximumf %64, %65 : vector<256x64xf32>
    %67 = vector.shape_cast %66 : vector<256x64xf32> to vector<16x8x2x64xf32>
    %cst_65 = arith.constant dense<0xFF800000> : vector<16x8x64xf32>
    %68 = vector.multi_reduction <maximumf>, %67, %cst_65 [2] : vector<16x8x2x64xf32> to vector<16x8x64xf32>
    %69 = vector.shape_cast %68 : vector<16x8x64xf32> to vector<8x2x8x64xf32>
    %cst_66 = arith.constant dense<0xFF800000> : vector<8x8x64xf32>
    %70 = vector.multi_reduction <maximumf>, %69, %cst_66 [1] : vector<8x2x8x64xf32> to vector<8x8x64xf32>
    %c0_67 = arith.constant 0 : index
    %c0_68 = arith.constant 0 : index
    %c0_69 = arith.constant 0 : index
    %c0_70 = arith.constant 0 : index
    %71 = vector.load %arg4[%c0_67, %c0_68, %c0_69, %c0_70] : memref<1x8x8x64xf32, #tpu.memory_space<vmem>>, vector<1x8x8x64xf32>
    %72 = vector.shape_cast %71 : vector<1x8x8x64xf32> to vector<8x8x64xf32>
    %73 = vector.shape_cast %70 : vector<8x8x64xf32> to vector<1x8x8x64xf32>
    tpu.vector_store %arg4[%c0_67, %c0_68, %c0_69, %c0_70], %73 {strides = array<i32>} : memref<1x8x8x64xf32, #tpu.memory_space<vmem>>, vector<1x8x8x64xf32>,
    return
  }
  func.func @transform_0(%arg0: i32) -> (i32, i32, i32, i32) {
    %c0_i32 = arith.constant 0 : i32
    %c0_i32_0 = arith.constant 0 : i32
    %c0_i32_1 = arith.constant 0 : i32
    %c0_i32_2 = arith.constant 0 : i32
    return %arg0, %c0_i32, %c0_i32_0, %c0_i32_1 : i32, i32, i32, i32
  }
  func.func @transform_1(%arg0: i32) -> (i32, i32, i32) {
    %c0_i32 = arith.constant 0 : i32
    %c0_i32_0 = arith.constant 0 : i32
    %c0_i32_1 = arith.constant 0 : i32
    %c0_i32_2 = arith.constant 0 : i32
    return %c0_i32, %c0_i32_0, %c0_i32_1 : i32, i32, i32
  }
  func.func @transform_2(%arg0: i32) -> (i32, i32) {
    %c0_i32 = arith.constant 0 : i32
    %c0_i32_0 = arith.constant 0 : i32
    %c0_i32_1 = arith.constant 0 : i32
    return %c0_i32, %c0_i32_0 : i32, i32
  }
  func.func @transform_3(%arg0: i32) -> (i32, i32, i32, i32) {
    %c0_i32 = arith.constant 0 : i32
    %c0_i32_0 = arith.constant 0 : i32
    %c0_i32_1 = arith.constant 0 : i32
    %c0_i32_2 = arith.constant 0 : i32
    return %arg0, %c0_i32, %c0_i32_0, %c0_i32_1 : i32, i32, i32, i32
  }
}

module attributes {stable_mosaic.version = 11 : i64} {
  func.func @_conv_relu_pool_kernel(%arg0: i32, %arg1: memref<1x10x10x64xf32, #tpu.memory_space<vmem>>, %arg2: memref<9x64x128xf32, #tpu.memory_space<vmem>>, %arg3: memref<1x128xf32, #tpu.memory_space<vmem>>, %arg4: memref<1x4x4x128xf32, #tpu.memory_space<vmem>>) attributes {dimension_semantics = [#tpu.dimension_semantics<parallel>], iteration_bounds = array<i64: 4>, scalar_prefetch = 0 : i64, scratch_operands = 0 : i64, tpu.core_type = #tpu.core_type<tc>, window_params = [{transform_indices = @transform_0, window_bounds = array<i64: 1, 10, 10, 64>}, {pipeline_mode = #tpu.pipeline_mode<synchronous>, transform_indices = @transform_1, window_bounds = array<i64: 9, 64, 128>}, {pipeline_mode = #tpu.pipeline_mode<synchronous>, transform_indices = @transform_2, window_bounds = array<i64: 1, 128>}, {transform_indices = @transform_3, window_bounds = array<i64: 1, 4, 4, 128>}]} {
    %c0 = arith.constant 0 : index
    %c0_0 = arith.constant 0 : index
    %c0_1 = arith.constant 0 : index
    %c0_2 = arith.constant 0 : index
    %0 = vector.load %arg1[%c0, %c0_0, %c0_1, %c0_2] : memref<1x10x10x64xf32, #tpu.memory_space<vmem>>, vector<1x8x8x64xf32>
    %1 = vector.shape_cast %0 : vector<1x8x8x64xf32> to vector<8x8x64xf32>
    %2 = vector.shape_cast %1 : vector<8x8x64xf32> to vector<64x64xf32>
    %c0_3 = arith.constant 0 : index
    %c0_4 = arith.constant 0 : index
    %c0_5 = arith.constant 0 : index
    %3 = vector.load %arg2[%c0_3, %c0_4, %c0_5] : memref<9x64x128xf32, #tpu.memory_space<vmem>>, vector<1x64x128xf32>
    %4 = vector.shape_cast %3 : vector<1x64x128xf32> to vector<64x128xf32>
    %cst = arith.constant dense<0.000000e+00> : vector<64x128xf32>
    %5 = tpu.matmul %2, %4, %cst {dimension_numbers = #tpu.dot_dimension_numbers<[1], [0], [0], [1], [0, 0, 1, 1], [], []>} : vector<64x64xf32>, vector<64x128xf32>, vector<64x128xf32> -> vector<64x128xf32>
    %c0_6 = arith.constant 0 : index
    %c0_7 = arith.constant 0 : index
    %c1 = arith.constant 1 : index
    %c0_8 = arith.constant 0 : index
    %6 = vector.load %arg1[%c0_6, %c0_7, %c1, %c0_8] : memref<1x10x10x64xf32, #tpu.memory_space<vmem>>, vector<1x8x8x64xf32>
    %7 = vector.shape_cast %6 : vector<1x8x8x64xf32> to vector<8x8x64xf32>
    %8 = vector.shape_cast %7 : vector<8x8x64xf32> to vector<64x64xf32>
    %c1_9 = arith.constant 1 : index
    %c0_10 = arith.constant 0 : index
    %c0_11 = arith.constant 0 : index
    %9 = vector.load %arg2[%c1_9, %c0_10, %c0_11] : memref<9x64x128xf32, #tpu.memory_space<vmem>>, vector<1x64x128xf32>
    %10 = vector.shape_cast %9 : vector<1x64x128xf32> to vector<64x128xf32>
    %cst_12 = arith.constant dense<0.000000e+00> : vector<64x128xf32>
    %11 = tpu.matmul %8, %10, %cst_12 {dimension_numbers = #tpu.dot_dimension_numbers<[1], [0], [0], [1], [0, 0, 1, 1], [], []>} : vector<64x64xf32>, vector<64x128xf32>, vector<64x128xf32> -> vector<64x128xf32>
    %12 = arith.addf %5, %11 : vector<64x128xf32>
    %c0_13 = arith.constant 0 : index
    %c0_14 = arith.constant 0 : index
    %c2 = arith.constant 2 : index
    %c0_15 = arith.constant 0 : index
    %13 = vector.load %arg1[%c0_13, %c0_14, %c2, %c0_15] : memref<1x10x10x64xf32, #tpu.memory_space<vmem>>, vector<1x8x8x64xf32>
    %14 = vector.shape_cast %13 : vector<1x8x8x64xf32> to vector<8x8x64xf32>
    %15 = vector.shape_cast %14 : vector<8x8x64xf32> to vector<64x64xf32>
    %c2_16 = arith.constant 2 : index
    %c0_17 = arith.constant 0 : index
    %c0_18 = arith.constant 0 : index
    %16 = vector.load %arg2[%c2_16, %c0_17, %c0_18] : memref<9x64x128xf32, #tpu.memory_space<vmem>>, vector<1x64x128xf32>
    %17 = vector.shape_cast %16 : vector<1x64x128xf32> to vector<64x128xf32>
    %cst_19 = arith.constant dense<0.000000e+00> : vector<64x128xf32>
    %18 = tpu.matmul %15, %17, %cst_19 {dimension_numbers = #tpu.dot_dimension_numbers<[1], [0], [0], [1], [0, 0, 1, 1], [], []>} : vector<64x64xf32>, vector<64x128xf32>, vector<64x128xf32> -> vector<64x128xf32>
    %19 = arith.addf %12, %18 : vector<64x128xf32>
    %c0_20 = arith.constant 0 : index
    %c1_21 = arith.constant 1 : index
    %c0_22 = arith.constant 0 : index
    %c0_23 = arith.constant 0 : index
    %20 = vector.load %arg1[%c0_20, %c1_21, %c0_22, %c0_23] : memref<1x10x10x64xf32, #tpu.memory_space<vmem>>, vector<1x8x8x64xf32>
    %21 = vector.shape_cast %20 : vector<1x8x8x64xf32> to vector<8x8x64xf32>
    %22 = vector.shape_cast %21 : vector<8x8x64xf32> to vector<64x64xf32>
    %c3 = arith.constant 3 : index
    %c0_24 = arith.constant 0 : index
    %c0_25 = arith.constant 0 : index
    %23 = vector.load %arg2[%c3, %c0_24, %c0_25] : memref<9x64x128xf32, #tpu.memory_space<vmem>>, vector<1x64x128xf32>
    %24 = vector.shape_cast %23 : vector<1x64x128xf32> to vector<64x128xf32>
    %cst_26 = arith.constant dense<0.000000e+00> : vector<64x128xf32>
    %25 = tpu.matmul %22, %24, %cst_26 {dimension_numbers = #tpu.dot_dimension_numbers<[1], [0], [0], [1], [0, 0, 1, 1], [], []>} : vector<64x64xf32>, vector<64x128xf32>, vector<64x128xf32> -> vector<64x128xf32>
    %26 = arith.addf %19, %25 : vector<64x128xf32>
    %c0_27 = arith.constant 0 : index
    %c1_28 = arith.constant 1 : index
    %c1_29 = arith.constant 1 : index
    %c0_30 = arith.constant 0 : index
    %27 = vector.load %arg1[%c0_27, %c1_28, %c1_29, %c0_30] : memref<1x10x10x64xf32, #tpu.memory_space<vmem>>, vector<1x8x8x64xf32>
    %28 = vector.shape_cast %27 : vector<1x8x8x64xf32> to vector<8x8x64xf32>
    %29 = vector.shape_cast %28 : vector<8x8x64xf32> to vector<64x64xf32>
    %c4 = arith.constant 4 : index
    %c0_31 = arith.constant 0 : index
    %c0_32 = arith.constant 0 : index
    %30 = vector.load %arg2[%c4, %c0_31, %c0_32] : memref<9x64x128xf32, #tpu.memory_space<vmem>>, vector<1x64x128xf32>
    %31 = vector.shape_cast %30 : vector<1x64x128xf32> to vector<64x128xf32>
    %cst_33 = arith.constant dense<0.000000e+00> : vector<64x128xf32>
    %32 = tpu.matmul %29, %31, %cst_33 {dimension_numbers = #tpu.dot_dimension_numbers<[1], [0], [0], [1], [0, 0, 1, 1], [], []>} : vector<64x64xf32>, vector<64x128xf32>, vector<64x128xf32> -> vector<64x128xf32>
    %33 = arith.addf %26, %32 : vector<64x128xf32>
    %c0_34 = arith.constant 0 : index
    %c1_35 = arith.constant 1 : index
    %c2_36 = arith.constant 2 : index
    %c0_37 = arith.constant 0 : index
    %34 = vector.load %arg1[%c0_34, %c1_35, %c2_36, %c0_37] : memref<1x10x10x64xf32, #tpu.memory_space<vmem>>, vector<1x8x8x64xf32>
    %35 = vector.shape_cast %34 : vector<1x8x8x64xf32> to vector<8x8x64xf32>
    %36 = vector.shape_cast %35 : vector<8x8x64xf32> to vector<64x64xf32>
    %c5 = arith.constant 5 : index
    %c0_38 = arith.constant 0 : index
    %c0_39 = arith.constant 0 : index
    %37 = vector.load %arg2[%c5, %c0_38, %c0_39] : memref<9x64x128xf32, #tpu.memory_space<vmem>>, vector<1x64x128xf32>
    %38 = vector.shape_cast %37 : vector<1x64x128xf32> to vector<64x128xf32>
    %cst_40 = arith.constant dense<0.000000e+00> : vector<64x128xf32>
    %39 = tpu.matmul %36, %38, %cst_40 {dimension_numbers = #tpu.dot_dimension_numbers<[1], [0], [0], [1], [0, 0, 1, 1], [], []>} : vector<64x64xf32>, vector<64x128xf32>, vector<64x128xf32> -> vector<64x128xf32>
    %40 = arith.addf %33, %39 : vector<64x128xf32>
    %c0_41 = arith.constant 0 : index
    %c2_42 = arith.constant 2 : index
    %c0_43 = arith.constant 0 : index
    %c0_44 = arith.constant 0 : index
    %41 = vector.load %arg1[%c0_41, %c2_42, %c0_43, %c0_44] : memref<1x10x10x64xf32, #tpu.memory_space<vmem>>, vector<1x8x8x64xf32>
    %42 = vector.shape_cast %41 : vector<1x8x8x64xf32> to vector<8x8x64xf32>
    %43 = vector.shape_cast %42 : vector<8x8x64xf32> to vector<64x64xf32>
    %c6 = arith.constant 6 : index
    %c0_45 = arith.constant 0 : index
    %c0_46 = arith.constant 0 : index
    %44 = vector.load %arg2[%c6, %c0_45, %c0_46] : memref<9x64x128xf32, #tpu.memory_space<vmem>>, vector<1x64x128xf32>
    %45 = vector.shape_cast %44 : vector<1x64x128xf32> to vector<64x128xf32>
    %cst_47 = arith.constant dense<0.000000e+00> : vector<64x128xf32>
    %46 = tpu.matmul %43, %45, %cst_47 {dimension_numbers = #tpu.dot_dimension_numbers<[1], [0], [0], [1], [0, 0, 1, 1], [], []>} : vector<64x64xf32>, vector<64x128xf32>, vector<64x128xf32> -> vector<64x128xf32>
    %47 = arith.addf %40, %46 : vector<64x128xf32>
    %c0_48 = arith.constant 0 : index
    %c2_49 = arith.constant 2 : index
    %c1_50 = arith.constant 1 : index
    %c0_51 = arith.constant 0 : index
    %48 = vector.load %arg1[%c0_48, %c2_49, %c1_50, %c0_51] : memref<1x10x10x64xf32, #tpu.memory_space<vmem>>, vector<1x8x8x64xf32>
    %49 = vector.shape_cast %48 : vector<1x8x8x64xf32> to vector<8x8x64xf32>
    %50 = vector.shape_cast %49 : vector<8x8x64xf32> to vector<64x64xf32>
    %c7 = arith.constant 7 : index
    %c0_52 = arith.constant 0 : index
    %c0_53 = arith.constant 0 : index
    %51 = vector.load %arg2[%c7, %c0_52, %c0_53] : memref<9x64x128xf32, #tpu.memory_space<vmem>>, vector<1x64x128xf32>
    %52 = vector.shape_cast %51 : vector<1x64x128xf32> to vector<64x128xf32>
    %cst_54 = arith.constant dense<0.000000e+00> : vector<64x128xf32>
    %53 = tpu.matmul %50, %52, %cst_54 {dimension_numbers = #tpu.dot_dimension_numbers<[1], [0], [0], [1], [0, 0, 1, 1], [], []>} : vector<64x64xf32>, vector<64x128xf32>, vector<64x128xf32> -> vector<64x128xf32>
    %54 = arith.addf %47, %53 : vector<64x128xf32>
    %c0_55 = arith.constant 0 : index
    %c2_56 = arith.constant 2 : index
    %c2_57 = arith.constant 2 : index
    %c0_58 = arith.constant 0 : index
    %55 = vector.load %arg1[%c0_55, %c2_56, %c2_57, %c0_58] : memref<1x10x10x64xf32, #tpu.memory_space<vmem>>, vector<1x8x8x64xf32>
    %56 = vector.shape_cast %55 : vector<1x8x8x64xf32> to vector<8x8x64xf32>
    %57 = vector.shape_cast %56 : vector<8x8x64xf32> to vector<64x64xf32>
    %c8 = arith.constant 8 : index
    %c0_59 = arith.constant 0 : index
    %c0_60 = arith.constant 0 : index
    %58 = vector.load %arg2[%c8, %c0_59, %c0_60] : memref<9x64x128xf32, #tpu.memory_space<vmem>>, vector<1x64x128xf32>
    %59 = vector.shape_cast %58 : vector<1x64x128xf32> to vector<64x128xf32>
    %cst_61 = arith.constant dense<0.000000e+00> : vector<64x128xf32>
    %60 = tpu.matmul %57, %59, %cst_61 {dimension_numbers = #tpu.dot_dimension_numbers<[1], [0], [0], [1], [0, 0, 1, 1], [], []>} : vector<64x64xf32>, vector<64x128xf32>, vector<64x128xf32> -> vector<64x128xf32>
    %61 = arith.addf %54, %60 : vector<64x128xf32>
    %c0_62 = arith.constant 0 : index
    %c0_63 = arith.constant 0 : index
    %62 = vector.load %arg3[%c0_62, %c0_63] : memref<1x128xf32, #tpu.memory_space<vmem>>, vector<1x128xf32>
    %63 = vector.broadcast %62 : vector<1x128xf32> to vector<64x128xf32>
    %64 = arith.addf %61, %63 : vector<64x128xf32>
    %cst_64 = arith.constant 0.000000e+00 : f32
    %65 = vector.broadcast %cst_64 : f32 to vector<64x128xf32>
    %66 = arith.maximumf %64, %65 : vector<64x128xf32>
    %67 = vector.shape_cast %66 : vector<64x128xf32> to vector<8x4x2x128xf32>
    %cst_65 = arith.constant dense<0xFF800000> : vector<8x4x128xf32>
    %68 = vector.multi_reduction <maximumf>, %67, %cst_65 [2] : vector<8x4x2x128xf32> to vector<8x4x128xf32>
    %69 = vector.shape_cast %68 : vector<8x4x128xf32> to vector<4x2x4x128xf32>
    %cst_66 = arith.constant dense<0xFF800000> : vector<4x4x128xf32>
    %70 = vector.multi_reduction <maximumf>, %69, %cst_66 [1] : vector<4x2x4x128xf32> to vector<4x4x128xf32>
    %c0_67 = arith.constant 0 : index
    %c0_68 = arith.constant 0 : index
    %c0_69 = arith.constant 0 : index
    %c0_70 = arith.constant 0 : index
    %71 = vector.load %arg4[%c0_67, %c0_68, %c0_69, %c0_70] : memref<1x4x4x128xf32, #tpu.memory_space<vmem>>, vector<1x4x4x128xf32>
    %72 = vector.shape_cast %71 : vector<1x4x4x128xf32> to vector<4x4x128xf32>
    %73 = vector.shape_cast %70 : vector<4x4x128xf32> to vector<1x4x4x128xf32>
    tpu.vector_store %arg4[%c0_67, %c0_68, %c0_69, %c0_70], %73 {strides = array<i32>} : memref<1x4x4x128xf32, #tpu.memory_space<vmem>>, vector<1x4x4x128xf32>,
    return
  }
  func.func @transform_0(%arg0: i32) -> (i32, i32, i32, i32) {
    %c0_i32 = arith.constant 0 : i32
    %c0_i32_0 = arith.constant 0 : i32
    %c0_i32_1 = arith.constant 0 : i32
    %c0_i32_2 = arith.constant 0 : i32
    return %arg0, %c0_i32, %c0_i32_0, %c0_i32_1 : i32, i32, i32, i32
  }
  func.func @transform_1(%arg0: i32) -> (i32, i32, i32) {
    %c0_i32 = arith.constant 0 : i32
    %c0_i32_0 = arith.constant 0 : i32
    %c0_i32_1 = arith.constant 0 : i32
    %c0_i32_2 = arith.constant 0 : i32
    return %c0_i32, %c0_i32_0, %c0_i32_1 : i32, i32, i32
  }
  func.func @transform_2(%arg0: i32) -> (i32, i32) {
    %c0_i32 = arith.constant 0 : i32
    %c0_i32_0 = arith.constant 0 : i32
    %c0_i32_1 = arith.constant 0 : i32
    return %c0_i32, %c0_i32_0 : i32, i32
  }
  func.func @transform_3(%arg0: i32) -> (i32, i32, i32, i32) {
    %c0_i32 = arith.constant 0 : i32
    %c0_i32_0 = arith.constant 0 : i32
    %c0_i32_1 = arith.constant 0 : i32
    %c0_i32_2 = arith.constant 0 : i32
    return %arg0, %c0_i32, %c0_i32_0, %c0_i32_1 : i32, i32, i32, i32
  }
}

module attributes {stable_mosaic.version = 11 : i64} {
  func.func @_tail_kernel(%arg0: memref<4x2048xf32, #tpu.memory_space<vmem>>, %arg1: memref<4x16x128xf32, #tpu.memory_space<vmem>>, %arg2: memref<2048x128xf32, #tpu.memory_space<vmem>>, %arg3: memref<1x128xf32, #tpu.memory_space<vmem>>, %arg4: memref<128x1xf32, #tpu.memory_space<vmem>>, %arg5: memref<1x1xf32, #tpu.memory_space<vmem>>, %arg6: memref<256x128xf32, #tpu.memory_space<vmem>>, %arg7: memref<1x128xf32, #tpu.memory_space<vmem>>, %arg8: memref<128x64xf32, #tpu.memory_space<vmem>>, %arg9: memref<1x64xf32, #tpu.memory_space<vmem>>, %arg10: memref<64x128xf32, #tpu.memory_space<vmem>>, %arg11: memref<1x128xf32, #tpu.memory_space<vmem>>, %arg12: memref<4x1xf32, #tpu.memory_space<vmem>>, %arg13: memref<2x128xf32, #tpu.memory_space<vmem>>) attributes {dimension_semantics = [], scalar_prefetch = 0 : i64, scratch_operands = 0 : i64, tpu.core_type = #tpu.core_type<tc>} {
    %c0 = arith.constant 0 : index
    %c0_0 = arith.constant 0 : index
    %0 = vector.load %arg0[%c0, %c0_0] : memref<4x2048xf32, #tpu.memory_space<vmem>>, vector<4x2048xf32>
    %c0_1 = arith.constant 0 : index
    %c0_2 = arith.constant 0 : index
    %1 = vector.load %arg2[%c0_1, %c0_2] : memref<2048x128xf32, #tpu.memory_space<vmem>>, vector<2048x128xf32>
    %cst = arith.constant dense<0.000000e+00> : vector<4x128xf32>
    %2 = tpu.matmul %0, %1, %cst {dimension_numbers = #tpu.dot_dimension_numbers<[1], [0], [0], [1], [0, 0, 1, 1], [], []>} : vector<4x2048xf32>, vector<2048x128xf32>, vector<4x128xf32> -> vector<4x128xf32>
    %c0_3 = arith.constant 0 : index
    %c0_4 = arith.constant 0 : index
    %3 = vector.load %arg3[%c0_3, %c0_4] : memref<1x128xf32, #tpu.memory_space<vmem>>, vector<1x128xf32>
    %4 = vector.broadcast %3 : vector<1x128xf32> to vector<4x128xf32>
    %5 = arith.addf %2, %4 : vector<4x128xf32>
    %cst_5 = arith.constant 0.000000e+00 : f32
    %6 = vector.broadcast %cst_5 : f32 to vector<4x128xf32>
    %7 = arith.maximumf %5, %6 : vector<4x128xf32>
    %c0_6 = arith.constant 0 : index
    %c0_7 = arith.constant 0 : index
    %8 = vector.load %arg4[%c0_6, %c0_7] : memref<128x1xf32, #tpu.memory_space<vmem>>, vector<128x1xf32>
    %cst_8 = arith.constant dense<0.000000e+00> : vector<4x1xf32>
    %9 = tpu.matmul %7, %8, %cst_8 {dimension_numbers = #tpu.dot_dimension_numbers<[1], [0], [0], [1], [0, 0, 1, 1], [], []>} : vector<4x128xf32>, vector<128x1xf32>, vector<4x1xf32> -> vector<4x1xf32>
    %c0_9 = arith.constant 0 : index
    %c0_10 = arith.constant 0 : index
    %10 = vector.load %arg5[%c0_9, %c0_10] : memref<1x1xf32, #tpu.memory_space<vmem>>, vector<1x1xf32>
    %11 = vector.broadcast %10 : vector<1x1xf32> to vector<4x1xf32>
    %12 = arith.addf %9, %11 : vector<4x1xf32>
    %cst_11 = arith.constant dense<0xFF800000> : vector<4xf32>
    %13 = vector.multi_reduction <maximumf>, %12, %cst_11 [1] : vector<4x1xf32> to vector<4xf32>
    %14 = vector.shape_cast %13 : vector<4xf32> to vector<4x1xf32>
    %15 = arith.subf %12, %14 : vector<4x1xf32>
    %16 = math.exp %15 : vector<4x1xf32>
    %cst_12 = arith.constant dense<0.000000e+00> : vector<4xf32>
    %17 = vector.multi_reduction <add>, %16, %cst_12 [1] : vector<4x1xf32> to vector<4xf32>
    %18 = vector.shape_cast %17 : vector<4xf32> to vector<4x1xf32>
    %19 = arith.divf %16, %18 : vector<4x1xf32>
    %c0_13 = arith.constant 0 : index
    %c0_14 = arith.constant 0 : index
    %20 = vector.load %arg12[%c0_13, %c0_14] : memref<4x1xf32, #tpu.memory_space<vmem>>, vector<4x1xf32>
    tpu.vector_store %arg12[%c0_13, %c0_14], %19 {strides = array<i32>} : memref<4x1xf32, #tpu.memory_space<vmem>>, vector<4x1xf32>,
    %c0_15 = arith.constant 0 : index
    %c0_16 = arith.constant 0 : index
    %c0_17 = arith.constant 0 : index
    %21 = vector.load %arg1[%c0_15, %c0_16, %c0_17] : memref<4x16x128xf32, #tpu.memory_space<vmem>>, vector<4x16x128xf32>
    %cst_18 = arith.constant dense<0xFF800000> : vector<4x128xf32>
    %22 = vector.multi_reduction <maximumf>, %21, %cst_18 [1] : vector<4x16x128xf32> to vector<4x128xf32>
    %23 = vector.broadcast %19 : vector<4x1xf32> to vector<4x128xf32>
    %24 = arith.mulf %22, %23 : vector<4x128xf32>
    %25 = vector.extract_strided_slice %24 {offsets = [0, 0], sizes = [2, 128], strides = [1, 1]} : vector<4x128xf32> to vector<2x128xf32>
    %26 = vector.extract_strided_slice %24 {offsets = [2, 0], sizes = [2, 128], strides = [1, 1]} : vector<4x128xf32> to vector<2x128xf32>
    %27 = tpu.concatenate %25, %26 in 1 : vector<2x128xf32>, vector<2x128xf32> -> vector<2x256xf32>
    %c0_19 = arith.constant 0 : index
    %c0_20 = arith.constant 0 : index
    %28 = vector.load %arg6[%c0_19, %c0_20] : memref<256x128xf32, #tpu.memory_space<vmem>>, vector<256x128xf32>
    %cst_21 = arith.constant dense<0.000000e+00> : vector<2x128xf32>
    %29 = tpu.matmul %27, %28, %cst_21 {dimension_numbers = #tpu.dot_dimension_numbers<[1], [0], [0], [1], [0, 0, 1, 1], [], []>} : vector<2x256xf32>, vector<256x128xf32>, vector<2x128xf32> -> vector<2x128xf32>
    %c0_22 = arith.constant 0 : index
    %c0_23 = arith.constant 0 : index
    %30 = vector.load %arg7[%c0_22, %c0_23] : memref<1x128xf32, #tpu.memory_space<vmem>>, vector<1x128xf32>
    %31 = vector.broadcast %30 : vector<1x128xf32> to vector<2x128xf32>
    %32 = arith.addf %29, %31 : vector<2x128xf32>
    %cst_24 = arith.constant 0.000000e+00 : f32
    %33 = vector.broadcast %cst_24 : f32 to vector<2x128xf32>
    %34 = arith.maximumf %32, %33 : vector<2x128xf32>
    %c0_25 = arith.constant 0 : index
    %c0_26 = arith.constant 0 : index
    %35 = vector.load %arg8[%c0_25, %c0_26] : memref<128x64xf32, #tpu.memory_space<vmem>>, vector<128x64xf32>
    %cst_27 = arith.constant dense<0.000000e+00> : vector<2x64xf32>
    %36 = tpu.matmul %34, %35, %cst_27 {dimension_numbers = #tpu.dot_dimension_numbers<[1], [0], [0], [1], [0, 0, 1, 1], [], []>} : vector<2x128xf32>, vector<128x64xf32>, vector<2x64xf32> -> vector<2x64xf32>
    %c0_28 = arith.constant 0 : index
    %c0_29 = arith.constant 0 : index
    %37 = vector.load %arg9[%c0_28, %c0_29] : memref<1x64xf32, #tpu.memory_space<vmem>>, vector<1x64xf32>
    %38 = vector.broadcast %37 : vector<1x64xf32> to vector<2x64xf32>
    %39 = arith.addf %36, %38 : vector<2x64xf32>
    %cst_30 = arith.constant 0.000000e+00 : f32
    %40 = vector.broadcast %cst_30 : f32 to vector<2x64xf32>
    %41 = arith.maximumf %39, %40 : vector<2x64xf32>
    %c0_31 = arith.constant 0 : index
    %c0_32 = arith.constant 0 : index
    %42 = vector.load %arg10[%c0_31, %c0_32] : memref<64x128xf32, #tpu.memory_space<vmem>>, vector<64x128xf32>
    %cst_33 = arith.constant dense<0.000000e+00> : vector<2x128xf32>
    %43 = tpu.matmul %41, %42, %cst_33 {dimension_numbers = #tpu.dot_dimension_numbers<[1], [0], [0], [1], [0, 0, 1, 1], [], []>} : vector<2x64xf32>, vector<64x128xf32>, vector<2x128xf32> -> vector<2x128xf32>
    %c0_34 = arith.constant 0 : index
    %c0_35 = arith.constant 0 : index
    %44 = vector.load %arg11[%c0_34, %c0_35] : memref<1x128xf32, #tpu.memory_space<vmem>>, vector<1x128xf32>
    %45 = vector.broadcast %44 : vector<1x128xf32> to vector<2x128xf32>
    %46 = arith.addf %43, %45 : vector<2x128xf32>
    %c0_36 = arith.constant 0 : index
    %c0_37 = arith.constant 0 : index
    %47 = vector.load %arg13[%c0_36, %c0_37] : memref<2x128xf32, #tpu.memory_space<vmem>>, vector<2x128xf32>
    tpu.vector_store %arg13[%c0_36, %c0_37], %46 {strides = array<i32>} : memref<2x128xf32, #tpu.memory_space<vmem>>, vector<2x128xf32>,
    return
  }
}

</mosaic_0001>

<bundles_post_ra>
// kernel: siamese_forward.4
= control target key start
LH: loop header
LB: loop body
LE: loop exit
PB: predicated region body
PF: predicated region fallthrough
CT: control target
= control target key end

     0   :  { %s2924_s12 = smov 0   ;;  %s3536_s0 = inlined_call_operand.vmem [shape: f32[4,10,10,64], index: 0, kind: input, shape index: {}]   ;;  %s3537_s1 = inlined_call_operand.vmem [shape: f32[9,64,128], index: 1, kind: input, shape index: {}]   ;;  %s3538_s2 = inlined_call_operand.vmem [shape: f32[1,128], index: 2, kind: input, shape index: {}]   ;;  %s3539_s3 = inlined_call_operand.vmem [shape: f32[4,4,4,128], index: 3, kind: output, shape index: {}]  }
   0x1 LB: > { %s2077_s13 = sadd.s32 4294967295, %s2901_s12   ;;  %p2081_p0 = scmp.ge.s32.totalorder %s2901_s12, 1  ;;  %s2901_s12 = sphi %s2924_s12, %s13_s12  }
   0x2   : > { %p137_p1 = scmp.lt.s32.totalorder %s2901_s12, 5 }
   0x4   : > { %p138_p2 = pnand %p2081_p0, %p137_p1 }
   0x5   : > { %v2085_v0 = vld [vmem:[%s3537_s1 + $0x40] sm:$0xff] (!%p138_p2)  ;;  %v2086_v1 = vld [vmem:[%s3537_s1 + $0x48] sm:$0xff] (!%p138_p2)  ;;  %p161_p3 = scmp.lt.s32.totalorder (!%p138_p2), %s2077_s13, 3  ;;  %v2087_v5 = vld [vmem:[%s3537_s1 + $0x50] sm:$0xff] (!%p138_p2)  ;;  %vm204_vm0 = vcmask (!%p138_p2), 523264   ;;  %vm1742_vm1 = vcmask (!%p138_p2), 1041408  }
   0x6   : > { %141 = sbr.rel (%p138_p2) target bundleno = 387 (0x183), region = 32  ;;  %v2157_v2 = vld [vmem:[%s3537_s1 + $0x100] sm:$0xff] (!%p138_p2)  ;;  %v2669_v3 = vpack.c.bf16 (!%p138_p2), %v2086_v1, %v2085_v0  ;;  %v2158_v4 = vld [vmem:[%s3537_s1 + $0x108] sm:$0xff] (!%p138_p2)  ;;  %v2088_v6 = vld [vmem:[%s3537_s1 + $0x58] sm:$0xff] (!%p138_p2)  ;;  %vm1999_vm2 = vcmask (!%p138_p2), 1041409   ;;  %vm2001_vm3 = vcmask (!%p138_p2), 1042434  }
   0x7   : > { %v2733_v7 = vpack.c.bf16 (!%p138_p2), %v2158_v4, %v2157_v2  ;;  %v2673_v8 = vpack.c.bf16 (!%p138_p2), %v2088_v6, %v2087_v5  ;;  %v2159_v9 = vld [vmem:[%s3537_s1 + $0x110] sm:$0xff] (!%p138_p2)  ;;  %v2160_v10 = vld [vmem:[%s3537_s1 + $0x118] sm:$0xff] (!%p138_p2)  ;;  %v2089_v11 = vld [vmem:[%s3537_s1 + $0x60] sm:$0xff] (!%p138_p2)  ;;  %vm2003_vm4 = vcmask (!%p138_p2), 1043459  }
   0x8   : > { %2670 = vmatprep.subr.bf16.mxu1 (!%p138_p2), %v2669_v3  ;;  %v2737_v12 = vpack.c.bf16 (!%p138_p2), %v2160_v10, %v2159_v9  ;;  %v2090_v13 = vld [vmem:[%s3537_s1 + $0x68] sm:$0xff] (!%p138_p2)  ;;  %v2161_v14 = vld [vmem:[%s3537_s1 + $0x120] sm:$0xff] (!%p138_p2)  ;;  %v2091_v18 = vld [vmem:[%s3537_s1 + $0x70] sm:$0xff] (!%p138_p2) }
   0x9   : > { %v2162_v15 = vld [vmem:[%s3537_s1 + $0x128] sm:$0xff] (!%p138_p2)  ;;  %2734 = vmatprep.subr.bf16.mxu0 (!%p138_p2), %v2733_v7  ;;  %2672 = vmatpush3.bf16.msra.mxu1 (!%p138_p2), %v2669_v3  ;;  %v2677_v16 = vpack.c.bf16 (!%p138_p2), %v2090_v13, %v2089_v11  ;;  %v2092_v19 = vld [vmem:[%s3537_s1 + $0x78] sm:$0xff] (!%p138_p2)  ;;  %v2163_v20 = vld [vmem:[%s3537_s1 + $0x130] sm:$0xff] (!%p138_p2) }
   0xa   : > { %2736 = vmatpush3.bf16.msra.mxu0 (!%p138_p2), %v2733_v7  ;;  %2674 = vmatprep.subr.bf16.mxu1 (!%p138_p2), %v2673_v8  ;;  %v2741_v17 = vpack.c.bf16 (!%p138_p2), %v2162_v15, %v2161_v14  ;;  %v2164_v21 = vld [vmem:[%s3537_s1 + $0x138] sm:$0xff] (!%p138_p2)  ;;  %v2681_v24 = vpack.c.bf16 (!%p138_p2), %v2092_v19, %v2091_v18  ;;  %v179_v26 = vld [vmem:[%s3537_s1] sm:$0xff] (!%p138_p2)  ;;  %v180_v27 = vld [vmem:[%s3537_s1 + $0x8] sm:$0xff] (!%p138_p2) }
   0xb   : > { %2738 = vmatprep.subr.bf16.mxu0 (!%p138_p2), %v2737_v12  ;;  %v2745_v25 = vpack.c.bf16 (!%p138_p2), %v2164_v21, %v2163_v20  ;;  %v2181_v28 = vld [vmem:[%s3537_s1 + $0x140] sm:$0xff] (!%p138_p2)  ;;  %v2182_v29 = vld [vmem:[%s3537_s1 + $0x148] sm:$0xff] (!%p138_p2)  ;;  %v2685_v30 = vpack.c.bf16 (!%p138_p2), %v180_v27, %v179_v26  ;;  %v181_v32 = vld [vmem:[%s3537_s1 + $0x10] sm:$0xff] (!%p138_p2) }
   0xc   : > { %v2749_v31 = vpack.c.bf16 (!%p138_p2), %v2182_v29, %v2181_v28  ;;  %v182_v33 = vld [vmem:[%s3537_s1 + $0x18] sm:$0xff] (!%p138_p2)  ;;  %v2183_v34 = vld [vmem:[%s3537_s1 + $0x150] sm:$0xff] (!%p138_p2)  ;;  %v183_v40 = vld [vmem:[%s3537_s1 + $0x20] sm:$0xff] (!%p138_p2) }
   0xd   : > { %s3541_s13 = smov (!%p161_p3, %s2077_s13), 3  ;;  %2676 = vmatpush3.bf16.msra.mxu1 %v2673_v8  ;;  %v2184_v35 = vld [vmem:[%s3537_s1 + $0x158] sm:$0xff]  ;;  %v2689_v37 = vpack.c.bf16 %v182_v33, %v181_v32  ;;  %v184_v41 = vld [vmem:[%s3537_s1 + $0x28] sm:$0xff]  ;;  %v2185_v42 = vld [vmem:[%s3537_s1 + $0x160] sm:$0xff] }
   0xe   : > { %s2885_s11 = smul.u32 160, %s3541_s13  ;;  %2740 = vmatpush3.bf16.msra.mxu0 %v2737_v12  ;;  %2678 = vmatprep.subr.bf16.mxu1 %v2677_v16  ;;  %v2753_v39 = vpack.c.bf16 %v2184_v35, %v2183_v34  ;;  %v2186_v43 = vld [vmem:[%s3537_s1 + $0x168] sm:$0xff]  ;;  %v2693_v45 = vpack.c.bf16 %v184_v41, %v183_v40  ;;  %v185_v48 = vld [vmem:[%s3537_s1 + $0x30] sm:$0xff]  ;;  %v186_v49 = vld [vmem:[%s3537_s1 + $0x38] sm:$0xff]  ;;  %s2272_s17 = sshll.u32 %s3541_s13, 4 }
   0xf   : > { %2742 = vmatprep.subr.bf16.mxu0 %v2741_v17  ;;  %v2757_v47 = vpack.c.bf16 %v2186_v43, %v2185_v42  ;;  %v2187_v50 = vld [vmem:[%s3537_s1 + $0x170] sm:$0xff]  ;;  %v2188_v51 = vld [vmem:[%s3537_s1 + $0x178] sm:$0xff]  ;;  %v2697_v53 = vpack.c.bf16 %v186_v49, %v185_v48  ;;  %v2109_v56 = vld [vmem:[%s3537_s1 + $0x80] sm:$0xff]  ;;  %s3455_s19 = scalar_lea.vmem %s3539_s3, %s2272_s17 }
  0x10   : > { %s2983_s22 = scalar_lea.vmem %s3536_s0, %s2885_s11  ;;  %v2761_v55 = vpack.c.bf16 %v2188_v51, %v2187_v50  ;;  %v2110_v57 = vld [vmem:[%s3537_s1 + $0x88] sm:$0xff]  ;;  %v2205_v58 = vld [vmem:[%s3537_s1 + $0x180] sm:$0xff]  ;;  %v2111_v1 = vld [vmem:[%s3537_s1 + $0x90] sm:$0xff] }
  0x11   : > { %v187_v22 = vld [vmem:[%s2983_s22 + $0x1] sm:$0xff]  ;;  %v2149_v23 = vld [vmem:[%s2983_s22 + $0x11] sm:$0xff]  ;;  %2680 = vmatpush3.bf16.msra.mxu1 %v2677_v16  ;;  %v2701_v62 = vpack.c.bf16 %v2110_v57, %v2109_v56 }
  0x12   : > { %2433 = vmatprep.mubr.msk.f32.mxu1 %vm204_vm0, %v187_v22  ;;  %2545 = vmatprep.mubr.msk.f32.mxu0 %vm204_vm0, %v2149_v23  ;;  %v3017_v36 = vld [vmem:[%s2983_s22 + $0x21] sm:$0xff]  ;;  %v3021_v38 = vld [vmem:[%s2983_s22 + $0x31] sm:$0xff] }
  0x13   : > { %2744 = vmatpush3.bf16.msra.mxu0 %v2741_v17  ;;  %2682 = vmatprep.subr.bf16.mxu1 %v2681_v24  ;;  %v3040_v44 = vld [vmem:[%s2983_s22 + $0x41] sm:$0xff]  ;;  %v3047_v46 = vld [vmem:[%s2983_s22 + $0x51] sm:$0xff] }
  0x14   : > { %2746 = vmatprep.subr.bf16.mxu0 %v2745_v25  ;;  %v3066_v52 = vld [vmem:[%s2983_s22 + $0x61] sm:$0xff]  ;;  %v3073_v54 = vld [vmem:[%s2983_s22 + $0x71] sm:$0xff] }
  0x15   : > { %2684 = vmatpush3.bf16.msra.mxu1 %v2681_v24  ;;  %v2206_v59 = vld [vmem:[%s3537_s1 + $0x188] sm:$0xff]  ;;  %v171_v61 = vld [vmem:[%s2983_s22] sm:$0xff]  ;;  %v3100_v63 = vld [vmem:[%s2983_s22 + $0x12] sm:$0xff] }
  0x16   : > { %2686 = vmatprep.subr.bf16.mxu1 %v2685_v30  ;;  %v3092_v60 = vld [vmem:[%s2983_s22 + $0x81] sm:$0xff]  ;;  %v2765_v0 = vpack.c.bf16 %v2206_v59, %v2205_v58  ;;  %v2112_v2 = vld [vmem:[%s3537_s1 + $0x98] sm:$0xff]  ;;  %v3111_v3 = vld [vmem:[%s2983_s22 + $0x10] sm:$0xff] }
  0x17   : > { %2748 = vmatpush3.bf16.msra.mxu0 %v2745_v25  ;;  %v2207_v4 = vld [vmem:[%s3537_s1 + $0x190] sm:$0xff]  ;;  %v2208_v5 = vld [vmem:[%s3537_s1 + $0x198] sm:$0xff]  ;;  %v3121_v6 = vld [vmem:[%s2983_s22 + $0x22] sm:$0xff]  ;;  %v2705_v8 = vpack.c.bf16 %v2112_v2, %v2111_v1 }
  0x18   : > { %2750 = vmatprep.subr.bf16.mxu0 %v2749_v31  ;;  %2434 = vmatmul.mubr.msk.f32.vlgmr.msra.gmra.mrb[0].mxu1 %vm204_vm0, %v2149_v23  ;;  %v3126_v7 = vld [vmem:[%s2983_s22 + $0x20] sm:$0xff]  ;;  %v3131_v9 = vld [vmem:[%s2983_s22 + $0x32] sm:$0xff]  ;;  %v2769_v10 = vpack.c.bf16 %v2208_v5, %v2207_v4  ;;  %v2114_v12 = vld [vmem:[%s3537_s1 + $0xa8] sm:$0xff] }
  0x19   : > { %2688 = vmatpush3.bf16.msra.mxu1 %v2685_v30  ;;  %2436 = vmatprep.mubr.msk.f32.mxu1 %vm204_vm0, %v3017_v36  ;;  %v2113_v11 = vld [vmem:[%s3537_s1 + $0xa0] sm:$0xff]  ;;  %v3142_v13 = vld [vmem:[%s2983_s22 + $0x30] sm:$0xff]  ;;  %v2210_v15 = vld [vmem:[%s3537_s1 + $0x1a8] sm:$0xff] }
  0x1a   : > { %2546 = vmatmul.mubr.msk.f32.vlgmr.msra.gmra.mrb[0].mxu0 %vm204_vm0, %v3017_v36  ;;  %2690 = vmatprep.subr.bf16.mxu1 %v2689_v37  ;;  %v2209_v14 = vld [vmem:[%s3537_s1 + $0x1a0] sm:$0xff]  ;;  %v2709_v18 = vpack.c.bf16 %v2114_v12, %v2113_v11  ;;  %v3163_v19 = vld [vmem:[%s2983_s22 + $0x52] sm:$0xff]  ;;  %v2134_v32 = vld [vmem:[%s3537_s1 + $0xc8] sm:$0xff] }
  0x1b   : > { %2752 = vmatpush3.bf16.msra.mxu0 %v2749_v31  ;;  %2548 = vmatprep.mubr.msk.f32.mxu0 %vm204_vm0, %v3021_v38  ;;  %v3153_v16 = vld [vmem:[%s2983_s22 + $0x42] sm:$0xff]  ;;  %v2773_v20 = vpack.c.bf16 %v2210_v15, %v2209_v14  ;;  %v2115_v21 = vld [vmem:[%s3537_s1 + $0xb0] sm:$0xff]  ;;  %v2116_v22 = vld [vmem:[%s3537_s1 + $0xb8] sm:$0xff] }
  0x1c   : > { %2437 = vmatmul.mubr.msk.f32.gmra.mrb[2].mxu1 %vm204_vm0, %v3021_v38  ;;  %2754 = vmatprep.subr.bf16.mxu0 %v2753_v39  ;;  %v3158_v17 = vld [vmem:[%s2983_s22 + $0x40] sm:$0xff]  ;;  %v3174_v23 = vld [vmem:[%s2983_s22 + $0x50] sm:$0xff]  ;;  %v2212_v25 = vld [vmem:[%s3537_s1 + $0x1b8] sm:$0xff]  ;;  %v2713_v28 = vpack.c.bf16 %v2116_v22, %v2115_v21  ;;  %v2903_v22 = vmov 1983009808  }
  0x1d   : > { %2692 = vmatpush3.bf16.msra.mxu1 %v2689_v37  ;;  %2439 = vmatprep.mubr.msk.f32.mxu1 %vm204_vm0, %v3040_v44  ;;  %v2211_v24 = vld [vmem:[%s3537_s1 + $0x1b0] sm:$0xff]  ;;  %v3185_v26 = vld [vmem:[%s2983_s22 + $0x62] sm:$0xff]  ;;  %v2136_v43 = vld [vmem:[%s3537_s1 + $0xd8] sm:$0xff] }
  0x1e   : > { %2549 = vmatmul.mubr.msk.f32.gmra.mrb[2].mxu0 %vm204_vm0, %v3040_v44  ;;  %2694 = vmatprep.subr.bf16.mxu1 %v2693_v45  ;;  %v3190_v27 = vld [vmem:[%s2983_s22 + $0x60] sm:$0xff]  ;;  %v3195_v29 = vld [vmem:[%s2983_s22 + $0x72] sm:$0xff]  ;;  %v2777_v30 = vpack.c.bf16 %v2212_v25, %v2211_v24  ;;  %v2230_v35 = vld [vmem:[%s3537_s1 + $0x1c8] sm:$0xff]  ;;  %v1578_v24 = vlaneseq }
  0x1f   : > { %2756 = vmatpush3.bf16.msra.mxu0 %v2753_v39  ;;  %2551 = vmatprep.mubr.msk.f32.mxu0 %vm204_vm0, %v3047_v46  ;;  %v2133_v31 = vld [vmem:[%s3537_s1 + $0xc0] sm:$0xff]  ;;  %v3206_v33 = vld [vmem:[%s2983_s22 + $0x70] sm:$0xff]  ;;  %v2138_v51 = vld [vmem:[%s3537_s1 + $0xe8] sm:$0xff] }
  0x20   : > { %2440 = vmatmul.mubr.msk.f32.gmra.mrb[4].mxu1 %vm204_vm0, %v3047_v46  ;;  %2758 = vmatprep.subr.bf16.mxu0 %v2757_v47  ;;  %v2229_v34 = vld [vmem:[%s3537_s1 + $0x1c0] sm:$0xff]  ;;  %v2717_v40 = vpack.c.bf16 %v2134_v32, %v2133_v31  ;;  %v2135_v42 = vld [vmem:[%s3537_s1 + $0xd0] sm:$0xff]  ;;  %v2140_v59 = vld [vmem:[%s3537_s1 + $0xf8] sm:$0xff] }
  0x21   : > { %2696 = vmatpush3.bf16.msra.mxu1 %v2693_v45  ;;  %2442 = vmatprep.mubr.msk.f32.mxu1 %vm204_vm0, %v3066_v52  ;;  %v3217_v37 = vld [vmem:[%s2983_s22 + $0x82] sm:$0xff]  ;;  %v2781_v41 = vpack.c.bf16 %v2230_v35, %v2229_v34  ;;  %v2231_v45 = vld [vmem:[%s3537_s1 + $0x1d0] sm:$0xff]  ;;  %v2721_v48 = vpack.c.bf16 %v2136_v43, %v2135_v42  ;;  %v2256_v11 = vld [vmem:[%s3537_s1 + $0x218] sm:$0xff] }
  0x22   : > { %2552 = vmatmul.mubr.msk.f32.gmra.mrb[4].mxu0 %vm204_vm0, %v3066_v52  ;;  %2698 = vmatprep.subr.bf16.mxu1 %v2697_v53  ;;  %v463_v39 = vld [vmem:[%s2983_s22 + $0x2] sm:$0xff]  ;;  %v2139_v58 = vld [vmem:[%s3537_s1 + $0xf0] sm:$0xff]  ;;  %v3369_v31 = vld [vmem:[%s3538_s2] ss:$0 sm:$0xff] }
  0x23   : > { %2760 = vmatpush3.bf16.msra.mxu0 %v2757_v47  ;;  %2554 = vmatprep.mubr.msk.f32.mxu0 %vm204_vm0, %v3073_v54  ;;  %v2232_v47 = vld [vmem:[%s3537_s1 + $0x1d8] sm:$0xff]  ;;  %v2137_v50 = vld [vmem:[%s3537_s1 + $0xe0] sm:$0xff]  ;;  %v2254_v4 = vld [vmem:[%s3537_s1 + $0x208] sm:$0xff] }
  0x24   : > { %2443 = vmatmul.mubr.msk.f32.gmra.mrb[6].mxu1 %vm204_vm0, %v3073_v54  ;;  %2762 = vmatprep.subr.bf16.mxu0 %v2761_v55  ;;  %v2785_v49 = vpack.c.bf16 %v2232_v47, %v2231_v45  ;;  %v2725_v56 = vpack.c.bf16 %v2138_v51, %v2137_v50  ;;  %v2253_v2 = vld [vmem:[%s3537_s1 + $0x200] sm:$0xff]  ;;  %v2204_v5 = vld [vmem:[%s2983_s22 + $0x90] sm:$0xff]  ;;  %v2258_v15 = vld [vmem:[%s3537_s1 + $0x228] sm:$0xff] }
  0x25   : > { %2700 = vmatpush3.bf16.msra.mxu1 %v2697_v53  ;;  %2461 = vmatprep.mubr.msk.f32.mxu1 %vm204_vm0, %v171_v61  ;;  %v2233_v53 = vld [vmem:[%s3537_s1 + $0x1e0] sm:$0xff]  ;;  %v2235_v61 = vld [vmem:[%s3537_s1 + $0x1f0] sm:$0xff] }
  0x26   : > { %2555 = vmatmul.mubr.msk.f32.gmra.mrb[6].mxu0 %vm204_vm0, %v3092_v60  ;;  %2702 = vmatprep.subr.bf16.mxu1 %v2701_v62  ;;  %v2257_v14 = vld [vmem:[%s3537_s1 + $0x220] sm:$0xff] }
  0x27   : > { %2764 = vmatpush3.bf16.msra.mxu0 %v2761_v55  ;;  %2573 = vmatprep.mubr.msk.f32.mxu0 %vm204_vm0, %v3100_v63  ;;  %v2234_v55 = vld [vmem:[%s3537_s1 + $0x1e8] sm:$0xff] }
  0x28   : > { %2462 = vmatmul.mubr.msk.f32.vlgmr.msra.gmra.mrb[0].mxu1 %vm204_vm0, %v3111_v3  ;;  %2766 = vmatprep.subr.bf16.mxu0 %v2765_v0  ;;  %v2789_v57 = vpack.c.bf16 %v2234_v55, %v2233_v53 }
  0x29   : > { %2704 = vmatpush3.bf16.msra.mxu1 %v2701_v62  ;;  %2464 = vmatprep.mubr.msk.f32.mxu1 %vm204_vm0, %v3126_v7  ;;  %v2236_v62 = vld [vmem:[%s3537_s1 + $0x1f8] sm:$0xff] }
  0x2a   : > { %2574 = vmatmul.mubr.msk.f32.vlgmr.msra.gmra.mrb[0].mxu0 %vm204_vm0, %v3121_v6  ;;  %2706 = vmatprep.subr.bf16.mxu1 %v2705_v8  ;;  %v2793_v1 = vpack.c.bf16 %v2236_v62, %v2235_v61 }
  0x2b   : > { %2768 = vmatpush3.bf16.msra.mxu0 %v2765_v0  ;;  %2576 = vmatprep.mubr.msk.f32.mxu0 %vm204_vm0, %v3131_v9  ;;  %v2203_v0 = vld [vmem:[%s2983_s22 + $0x80] sm:$0xff] }
  0x2c   : > { %2465 = vmatmul.mubr.msk.f32.gmra.mrb[2].mxu1 %vm204_vm0, %v3142_v13  ;;  %2770 = vmatprep.subr.bf16.mxu0 %v2769_v10 }
  0x2d   : > { %2708 = vmatpush3.bf16.msra.mxu1 %v2705_v8  ;;  %2467 = vmatprep.mubr.msk.f32.mxu1 %vm204_vm0, %v3158_v17  ;;  %v2797_v8 = vpack.c.bf16 %v2254_v4, %v2253_v2 }
  0x2e   : > { %2577 = vmatmul.mubr.msk.f32.gmra.mrb[2].mxu0 %vm204_vm0, %v3153_v16  ;;  %2710 = vmatprep.subr.bf16.mxu1 %v2709_v18 }
  0x2f   : > { %2772 = vmatpush3.bf16.msra.mxu0 %v2769_v10  ;;  %2579 = vmatprep.mubr.msk.f32.mxu0 %vm204_vm0, %v3163_v19  ;;  %v2255_v10 = vld [vmem:[%s3537_s1 + $0x210] sm:$0xff] }
  0x30   : > { %2468 = vmatmul.mubr.msk.f32.gmra.mrb[4].mxu1 %vm204_vm0, %v3174_v23  ;;  %2774 = vmatprep.subr.bf16.mxu0 %v2773_v20  ;;  %v2801_v12 = vpack.c.bf16 %v2256_v11, %v2255_v10 }
  0x31   : > { %2712 = vmatpush3.bf16.msra.mxu1 %v2709_v18  ;;  %2470 = vmatprep.mubr.msk.f32.mxu1 %vm204_vm0, %v3190_v27 }
  0x32   : > { %2580 = vmatmul.mubr.msk.f32.gmra.mrb[4].mxu0 %vm204_vm0, %v3185_v26  ;;  %2714 = vmatprep.subr.bf16.mxu1 %v2713_v28 }
  0x33   : > { %2776 = vmatpush3.bf16.msra.mxu0 %v2773_v20  ;;  %2582 = vmatprep.mubr.msk.f32.mxu0 %vm204_vm0, %v3195_v29 }
  0x34   : > { %2471 = vmatmul.mubr.msk.f32.gmra.mrb[6].mxu1 %vm204_vm0, %v3206_v33  ;;  %2778 = vmatprep.subr.bf16.mxu0 %v2777_v30 }
  0x35   : > { %2716 = vmatpush3.bf16.msra.mxu1 %v2713_v28  ;;  %2489 = vmatprep.mubr.msk.f32.mxu1 %vm204_vm0, %v463_v39 }
  0x36   : > { %2583 = vmatmul.mubr.msk.f32.gmra.mrb[6].mxu0 %vm204_vm0, %v3217_v37  ;;  %2718 = vmatprep.subr.bf16.mxu1 %v2717_v40 }
  0x37   : > { %2780 = vmatpush3.bf16.msra.mxu0 %v2777_v30  ;;  %2601 = vmatprep.mubr.msk.f32.mxu0 %vm204_vm0, %v3126_v7  ;;  %v1579_v30 = vshrl.u32 %v1578_v24, 7 }
  0x38   : > { %2490 = vmatmul.mubr.msk.f32.vlgmr.msra.gmra.mrb[0].mxu1 %vm204_vm0, %v3100_v63  ;;  %2782 = vmatprep.subr.bf16.mxu0 %v2781_v41  ;;  %v2729_v63 = vpack.c.bf16 %v2140_v59, %v2139_v58 }
  0x39   : > { %2720 = vmatpush3.bf16.msra.mxu1 %v2717_v40  ;;  %2492 = vmatprep.mubr.msk.f32.mxu1 %vm204_vm0, %v3121_v6 }
  0x3a   : > { %2602 = vmatmul.mubr.msk.f32.vlgmr.msra.gmra.mrb[0].mxu0 %vm204_vm0, %v3142_v13  ;;  %2722 = vmatprep.subr.bf16.mxu1 %v2721_v48 }
  0x3b   : > { %2784 = vmatpush3.bf16.msra.mxu0 %v2781_v41  ;;  %2604 = vmatprep.mubr.msk.f32.mxu0 %vm204_vm0, %v3158_v17 }
  0x3c   : > { %2493 = vmatmul.mubr.msk.f32.gmra.mrb[2].mxu1 %vm204_vm0, %v3131_v9  ;;  %2786 = vmatprep.subr.bf16.mxu0 %v2785_v49 }
  0x3d   : > { %2724 = vmatpush3.bf16.msra.mxu1 %v2721_v48  ;;  %2495 = vmatprep.mubr.msk.f32.mxu1 %vm204_vm0, %v3153_v16 }
  0x3e   : > { %2605 = vmatmul.mubr.msk.f32.gmra.mrb[2].mxu0 %vm204_vm0, %v3174_v23  ;;  %2726 = vmatprep.subr.bf16.mxu1 %v2725_v56 }
  0x3f   : > { %2788 = vmatpush3.bf16.msra.mxu0 %v2785_v49  ;;  %2607 = vmatprep.mubr.msk.f32.mxu0 %vm204_vm0, %v3190_v27 }
  0x40   : > { %2496 = vmatmul.mubr.msk.f32.gmra.mrb[4].mxu1 %vm204_vm0, %v3163_v19  ;;  %2790 = vmatprep.subr.bf16.mxu0 %v2789_v57 }
  0x41   : > { %2728 = vmatpush3.bf16.msra.mxu1 %v2725_v56  ;;  %2498 = vmatprep.mubr.msk.f32.mxu1 %vm204_vm0, %v3185_v26 }
  0x42   : > { %2608 = vmatmul.mubr.msk.f32.gmra.mrb[4].mxu0 %vm204_vm0, %v3206_v33  ;;  %2730 = vmatprep.subr.bf16.mxu1 %v2729_v63 }
  0x43   : > { %2792 = vmatpush3.bf16.msra.mxu0 %v2789_v57  ;;  %2610 = vmatprep.mubr.msk.f32.mxu0 %vm204_vm0, %v2203_v0 }
  0x44   : > { %2499 = vmatmul.mubr.msk.f32.gmra.mrb[6].mxu1 %vm204_vm0, %v3195_v29  ;;  %2794 = vmatprep.subr.bf16.mxu0 %v2793_v1 }
  0x45   : > { %2732 = vmatpush3.bf16.msra.mxu1 %v2729_v63  ;;  %2517 = vmatprep.mubr.msk.f32.mxu1 %vm204_vm0, %v3111_v3  ;;  %v2259_v3 = vld [vmem:[%s3537_s1 + $0x230] sm:$0xff] }
  0x46   : > { %2611 = vmatmul.mubr.msk.f32.gmra.mrb[6].mxu0 %vm204_vm0, %v2204_v5  ;;  %2813 = vmatprep.subr.bf16.mxu1 %v2797_v8 }
  0x47   : > { %2796 = vmatpush3.bf16.msra.mxu0 %v2793_v1  ;;  %2629 = vmatprep.mubr.msk.f32.mxu0 %vm204_vm0, %v3017_v36  ;;  %v2805_v36 = vpack.c.bf16 %v2258_v15, %v2257_v14 }
  0x48   : > { %2798 = vmatprep.subr.bf16.mxu0 %v2797_v8  ;;  %2518 = vmatmul.mubr.msk.f32.vlgmr.msra.gmra.mrb[0].mxu1 %vm204_vm0, %v3126_v7 }
  0x49   : > { %2817 = vmatpush3.bf16.msra.mxu1 %v2797_v8  ;;  %2520 = vmatprep.mubr.msk.f32.mxu1 %vm204_vm0, %v3142_v13 }
  0x4a   : > { %2630 = vmatmul.mubr.msk.f32.vlgmr.msra.gmra.mrb[0].mxu0 %vm204_vm0, %v3021_v38  ;;  %2814 = vmatprep.subr.bf16.mxu1 %v2801_v12  ;;  %v2260_v38 = vld [vmem:[%s3537_s1 + $0x238] sm:$0xff] }
  0x4b   : > { %2800 = vmatpush3.bf16.msra.mxu0 %v2797_v8  ;;  %2632 = vmatprep.mubr.msk.f32.mxu0 %vm204_vm0, %v3040_v44  ;;  %v2809_v44 = vpack.c.bf16 %v2260_v38, %v2259_v3 }
  0x4c   : > { %2802 = vmatprep.subr.bf16.mxu0 %v2801_v12  ;;  %2521 = vmatmul.mubr.msk.f32.gmra.mrb[2].mxu1 %vm204_vm0, %v3158_v17 }
  0x4d   : > { %2818 = vmatpush3.bf16.msra.mxu1 %v2801_v12  ;;  %2523 = vmatprep.mubr.msk.f32.mxu1 %vm204_vm0, %v3174_v23  ;;  %v1576_v23 = vunpack.c.l.s4 %v2903_v22 }
  0x4e   : > { %2633 = vmatmul.mubr.msk.f32.gmra.mrb[2].mxu0 %vm204_vm0, %v3047_v46  ;;  %2815 = vmatprep.subr.bf16.mxu1 %v2805_v36  ;;  %v2228_v46 = vld [vmem:[%s2983_s22 + $0x91] sm:$0xff] }
  0x4f   : > { %2804 = vmatpush3.bf16.msra.mxu0 %v2801_v12  ;;  %2635 = vmatprep.mubr.msk.f32.mxu0 %vm204_vm0, %v3066_v52  ;;  %v2252_v52 = vld [vmem:[%s2983_s22 + $0x92] sm:$0xff] }
  0x50   : > { %2806 = vmatprep.subr.bf16.mxu0 %v2805_v36  ;;  %2524 = vmatmul.mubr.msk.f32.gmra.mrb[4].mxu1 %vm204_vm0, %v3190_v27 }
  0x51   : > { %2819 = vmatpush3.bf16.msra.mxu1 %v2805_v36  ;;  %2526 = vmatprep.mubr.msk.f32.mxu1 %vm204_vm0, %v3206_v33 }
  0x52   : > { %2636 = vmatmul.mubr.msk.f32.gmra.mrb[4].mxu0 %vm204_vm0, %v3073_v54  ;;  %2816 = vmatprep.subr.bf16.mxu1 %v2809_v44 }
  0x53   : > { %2808 = vmatpush3.bf16.msra.mxu0 %v2805_v36  ;;  %2638 = vmatprep.mubr.msk.f32.mxu0 %vm204_vm0, %v3092_v60 }
  0x54   : > { %2810 = vmatprep.subr.bf16.mxu0 %v2809_v44  ;;  %2527 = vmatmul.mubr.msk.f32.gmra.mrb[6].mxu1 %vm204_vm0, %v2203_v0 }
  0x55   : > { %2820 = vmatpush3.bf16.msra.mxu1 %v2809_v44  ;;  %2663 = vmatprep.mubr.msk.f32.mxu1 %vm204_vm0, %v3185_v26 }
  0x56   : > { %2639 = vmatmul.mubr.msk.f32.gmra.mrb[6].mxu0 %vm204_vm0, %v2228_v46 }
  0x57   : > { %2812 = vmatpush3.bf16.msra.mxu0 %v2809_v44  ;;  %2657 = vmatprep.mubr.msk.f32.mxu0 %vm204_vm0, %v3121_v6 }
  0x58   : > { %2664 = vmatmul.mubr.msk.f32.vlgmr.msra.gmra.mrb[8].mxu1 %vm204_vm0, %v3195_v29  ;;  %v1577_v29 = vunpack.c.0.s8 %v1576_v23 }
  0x59   : > { %2666 = vmatprep.mubr.msk.f32.mxu1 %vm204_vm0, %v3217_v37 }
  0x5a   : > { %2658 = vmatmul.mubr.msk.f32.vlgmr.msra.gmra.mrb[0].mxu0 %vm204_vm0, %v3131_v9  ;;  %v3371_v41 = vsub.s32 %v1577_v29, %v1579_v30 }
  0x5b   : > { %2660 = vmatprep.mubr.msk.f32.mxu0 %vm204_vm0, %v3153_v16 }
  0x5c   : > { %2667 = vmatmul.mubr.msk.f32.gmra.mrb[10].mxu1 %vm204_vm0, %v2252_v52 }
  0x5e   : > { %2661 = vmatmul.mubr.msk.f32.gmra.mrb[2].mxu0 %vm204_vm0, %v3163_v19 }
 0x11b   : > { %v2519_v54 = vpop.f32.mrb[0].mxu1 }
 0x11c   : > { %v725_v60 = vpop.f32.mrb[1].mxu1 }
 0x11f   : > { %v2522_v6 = vpop.f32.mrb[2].mxu1 }
 0x120   : > { %v3364_v7 = vpop.f32.mrb[3].mxu1 }
 0x123   : > { %v2525_v13 = vpop.f32.mrb[4].mxu1 }
 0x124   : > { %v745_v9 = vpop.f32.mrb[5].mxu1 }
 0x125   : > { %v2637_v17 = vpop.f32.mrb[4].mxu0 }
 0x126   : > { %v2825_v18 = vadd.f32 %v2637_v17, %v2525_v13  ;;  %v1362_v20 = vpop.f32.mrb[5].mxu0 }
 0x127   : > { %v2827_v21 = vadd.f32 %v1362_v20, %v745_v9  ;;  %v2528_v16 = vpop.f32.mrb[6].mxu1 }
 0x128   : > { %v755_v26 = vpop.f32.mrb[7].mxu1 }
 0x129   : > { %v2640_v25 = vpop.f32.mrb[6].mxu0 }
 0x12a   : > { %v2829_v27 = vadd.f32 %v2640_v25, %v2528_v16  ;;  %v1372_v28 = vpop.f32.mrb[7].mxu0 }
 0x12b   : > { %v2831_v19 = vadd.f32 %v1372_v28, %v755_v26  ;;  %v2665_v32 = vpop.f32.mrb[8].mxu1 }
 0x12c   : > { %v2826_v34 = vadd.f32 %v2825_v18, %v2665_v32  ;;  %v1516_v35 = vpop.f32.mrb[9].mxu1 }
 0x12d   : > { %v2659_v33 = vpop.f32.mrb[0].mxu0  ;;  %v2828_v40 = vadd.f32 %v2827_v21, %v1516_v35 }
 0x12e   : > { %v2821_v37 = vadd.f32 %v2659_v33, %v2519_v54  ;;  %v1496_v39 = vpop.f32.mrb[1].mxu0  ;;  %v1555_v42 = vadd.f32 %v2826_v34, %v3369_v31 }
 0x12f   : > { %v2822_v43 = vadd.f32 %v1496_v39, %v725_v60  ;;  %v1554_v47 = vadd.f32 %v2828_v40, %v3369_v31  ;;  %v2668_v48 = vpop.f32.mrb[10].mxu1 }
 0x130   : > { %v1551_v45 = vadd.f32 %v2821_v37, %v3369_v31  ;;  %v1563_v49 = vmax.f32 %v1555_v42, 0.0  ;;  %v2830_v53 = vadd.f32 %v2829_v27, %v2668_v48  ;;  %v1526_v55 = vpop.f32.mrb[11].mxu1 }
 0x131   : > { %v1550_v50 = vadd.f32 %v2822_v43, %v3369_v31  ;;  %v2662_v51 = vpop.f32.mrb[2].mxu0  ;;  %v3377_v57 = vmax.f32 %v1554_v47, 0.0  ;;  %v3383_v61 = vadd.f32 %v2831_v19, %v1526_v55 }
 0x132   : > { %v1559_v56 = vmax.f32 %v1551_v45, 0.0  ;;  %v3379_v58 = vadd.f32 %v2662_v51, %v2522_v6  ;;  %v3381_v59 = vpop.f32.mrb[3].mxu0  ;;  %v1659_v62 = vcombine.high %v1563_v49, %v1563_v49  ;;  %v1666_v63 = vrot.slane %v1563_v49, %v3371_v41 }
 0x133   : > { %v3386_v0 = vmax.f32 %v1550_v50, 0.0  ;;  %v3389_v1 = vadd.f32 %v2830_v53, %v3369_v31  ;;  %v1642_v5 = vcombine.high %v3377_v57, %v3377_v57  ;;  %v3396_v8 = vrot.slane %v3377_v57, %v3371_v41 }
 0x134   : > { %v1591_v2 = vcombine.high %v1559_v56, %v1559_v56  ;;  %v1598_v4 = vrot.slane %v1559_v56, %v3371_v41  ;;  %v1673_v10 = vrot.slane %v1659_v62, %v3371_v41  ;;  %v1674_v11 = vcombine.high %v1666_v63, %v1666_v63 }
 0x135   : > { %v1883_v12 = vsel %vm1742_vm1, %v1666_v63, -inf  ;;  %v1574_v14 = vcombine.high %v3386_v0, %v3386_v0 }
 0x136   : > { %v1605_v15 = vrot.slane %v1591_v2, %v3371_v41  ;;  %v1606_v36 = vcombine.high %v1598_v4, %v1598_v4  ;;  %v1771_v3 = vsel %vm1742_vm1, %v1598_v4, -inf  ;;  %v1884_v38 = vrot.slane %v1883_v12, 4 }
 0x137   : > { %v1772_v44 = vrot.slane %v1771_v3, 4  ;;  %v1675_v46 = vcombine.high %v1673_v10, %v1673_v10  ;;  %v1890_v52 = vsel %vm1742_vm1, %v1674_v11, -inf  ;;  %v1897_v54 = vsel %vm1742_vm1, %v1673_v10, -inf }
 0x138   : > { %v1607_v60 = vcombine.high %v1605_v15, %v1605_v15  ;;  %v1778_v6 = vsel %vm1742_vm1, %v1606_v36, -inf  ;;  %v1785_v13 = vsel %vm1742_vm1, %v1605_v15, -inf  ;;  %v1885_v17 = vmax.f32 %v1883_v12, %v1884_v38 }
 0x139   : > { %v1773_v9 = vmax.f32 %v1771_v3, %v1772_v44  ;;  %v1779_v18 = vrot.slane %v1778_v6, 4  ;;  %v1786_v20 = vrot.slane %v1785_v13, 4  ;;  %v1891_v21 = vrot.slane %v1890_v52, 4 }
 0x13a   : > { %v1792_v22 = vsel %vm1742_vm1, %v1607_v60, -inf  ;;  %v1886_v23 = vrot.slane %v1885_v17, 2  ;;  %v1898_v24 = vrot.slane %v1897_v54, 4  ;;  %v1904_v16 = vsel %vm1742_vm1, %v1675_v46, -inf }
 0x13b   : > { %v1774_v25 = vrot.slane %v1773_v9, 2  ;;  %v1780_v26 = vmax.f32 %v1778_v6, %v1779_v18  ;;  %v1787_v27 = vmax.f32 %v1785_v13, %v1786_v20  ;;  %v1793_v28 = vrot.slane %v1792_v22, 4 }
 0x13c   : > { %v1887_v19 = vmax.f32 %v1885_v17, %v1886_v23  ;;  %v1892_v29 = vmax.f32 %v1890_v52, %v1891_v21  ;;  %v1899_v30 = vmax.f32 %v1897_v54, %v1898_v24  ;;  %v1905_v32 = vrot.slane %v1904_v16, 4 }
 0x13d   : > { %v1775_v33 = vmax.f32 %v1773_v9, %v1774_v25  ;;  %v1781_v34 = vrot.slane %v1780_v26, 2  ;;  %v1788_v35 = vrot.slane %v1787_v27, 2  ;;  %v1794_v37 = vmax.f32 %v1792_v22, %v1793_v28 }
 0x13e   : > { %v1888_v39 = vrot.slane %v1887_v19, 1  ;;  %v1893_v40 = vrot.slane %v1892_v29, 2  ;;  %v1900_v42 = vrot.slane %v1899_v30, 2  ;;  %v1906_v43 = vmax.f32 %v1904_v16, %v1905_v32 }
 0x13f   : > { %v1776_v45 = vrot.slane %v1775_v33, 1  ;;  %v1782_v47 = vmax.f32 %v1780_v26, %v1781_v34  ;;  %v1789_v48 = vmax.f32 %v1787_v27, %v1788_v35  ;;  %v1795_v49 = vrot.slane %v1794_v37, 2 }
 0x140   : > { %v3410_v50 = vmax.f32 %v1887_v19, %v1888_v39  ;;  %v1894_v51 = vmax.f32 %v1892_v29, %v1893_v40  ;;  %v1901_v53 = vmax.f32 %v1899_v30, %v1900_v42  ;;  %v1907_v55 = vrot.slane %v1906_v43, 2 }
 0x141   : > { %v3412_v56 = vmax.f32 %v1775_v33, %v1776_v45  ;;  %v1783_v62 = vrot.slane %v1782_v47, 1  ;;  %v1790_v63 = vrot.slane %v1789_v48, 1  ;;  %v1796_v2 = vmax.f32 %v1794_v37, %v1795_v49 }
 0x142   : > { %v1895_v4 = vrot.slane %v1894_v51, 1  ;;  %v1902_v10 = vrot.slane %v1901_v53, 1  ;;  %v1908_v11 = vmax.f32 %v1906_v43, %v1907_v55  ;;  %v1581_v12 = vrot.slane %v3386_v0, %v3371_v41 }
 0x143   : > { %v3416_v15 = vmax.f32 %v1782_v47, %v1783_v62  ;;  %v3418_v36 = vmax.f32 %v1789_v48, %v1790_v63  ;;  %v1797_v3 = vrot.slane %v1796_v2, 1  ;;  %v1588_v38 = vrot.slane %v1574_v14, %v3371_v41 }
 0x144   : > { %v3421_v44 = vmax.f32 %v1894_v51, %v1895_v4  ;;  %v3423_v46 = vmax.f32 %v1901_v53, %v1902_v10  ;;  %v1909_v52 = vrot.slane %v1908_v11, 1  ;;  %v1589_v54 = vcombine.high %v1581_v12, %v1581_v12 }
 0x145   : > { %v3425_v60 = vmax.f32 %v1796_v2, %v1797_v3  ;;  %v1590_v6 = vcombine.high %v1588_v38, %v1588_v38  ;;  %v1743_v13 = vsel %vm1742_vm1, %v1581_v12, -inf  ;;  %v1757_v0 = vsel %vm1742_vm1, %v1588_v38, -inf }
 0x146   : > { %v3429_v17 = vmax.f32 %v1908_v11, %v1909_v52  ;;  %v1744_v9 = vrot.slane %v1743_v13, 4  ;;  %v1750_v18 = vsel %vm1742_vm1, %v1589_v54, -inf  ;;  %v1758_v20 = vrot.slane %v1757_v0, 4 }
 0x147   : > { %v1751_v14 = vrot.slane %v1750_v18, 4  ;;  %v1764_v21 = vsel %vm1742_vm1, %v1590_v6, -inf  ;;  %v1656_v22 = vrot.slane %v1642_v5, %v3371_v41  ;;  %v1657_v23 = vcombine.high %v3396_v8, %v3396_v8 }
 0x148   : > { %v1745_v24 = vmax.f32 %v1743_v13, %v1744_v9  ;;  %v1759_v16 = vmax.f32 %v1757_v0, %v1758_v20  ;;  %v1765_v25 = vrot.slane %v1764_v21, 4  ;;  %v1855_v26 = vsel %vm1742_vm1, %v3396_v8, -inf }
 0x149   : > { %v1752_v27 = vmax.f32 %v1750_v18, %v1751_v14  ;;  %v1658_v28 = vcombine.high %v1656_v22, %v1656_v22  ;;  %v1856_v19 = vrot.slane %v1855_v26, 4  ;;  %v1862_v29 = vsel %vm1742_vm1, %v1657_v23, -inf }
 0x14a   : > { %v1746_v30 = vrot.slane %v1745_v24, 2  ;;  %v1760_v32 = vrot.slane %v1759_v16, 2  ;;  %v1766_v33 = vmax.f32 %v1764_v21, %v1765_v25  ;;  %v1863_v57 = vrot.slane %v1862_v29, 4 }
 0x14b   : > { %v1753_v5 = vrot.slane %v1752_v27, 2  ;;  %v1857_v34 = vmax.f32 %v1855_v26, %v1856_v19  ;;  %v1869_v35 = vsel %vm1742_vm1, %v1656_v22, -inf  ;;  %v1876_v37 = vsel %vm1742_vm1, %v1658_v28, -inf }
 0x14c   : > { %v1747_v39 = vmax.f32 %v1745_v24, %v1746_v30  ;;  %v1761_v40 = vmax.f32 %v1759_v16, %v1760_v32  ;;  %v1767_v8 = vrot.slane %v1766_v33, 2  ;;  %v1864_v42 = vmax.f32 %v1862_v29, %v1863_v57 }
 0x14d   : > { %v1754_v43 = vmax.f32 %v1752_v27, %v1753_v5  ;;  %v1858_v45 = vrot.slane %v1857_v34, 2  ;;  %v1870_v47 = vrot.slane %v1869_v35, 4  ;;  %v1877_v48 = vrot.slane %v1876_v37, 4 }
 0x14e   : > { %v1748_v49 = vrot.slane %v1747_v39, 1  ;;  %v1762_v51 = vrot.slane %v1761_v40, 1  ;;  %v1768_v53 = vmax.f32 %v1766_v33, %v1767_v8  ;;  %v1865_v55 = vrot.slane %v1864_v42, 2 }
 0x14f   : > { %v1755_v62 = vrot.slane %v1754_v43, 1  ;;  %v1859_v63 = vmax.f32 %v1857_v34, %v1858_v45  ;;  %v1871_v2 = vmax.f32 %v1869_v35, %v1870_v47  ;;  %v1878_v4 = vmax.f32 %v1876_v37, %v1877_v48 }
 0x150   : > { %v1749_v10 = vmax.f32 %v1747_v39, %v1748_v49  ;;  %v1763_v11 = vmax.f32 %v1761_v40, %v1762_v51  ;;  %v1769_v12 = vrot.slane %v1768_v53, 1  ;;  %v1866_v3 = vmax.f32 %v1864_v42, %v1865_v55 }
 0x151   : > { %v1756_v38 = vmax.f32 %v1754_v43, %v1755_v62  ;;  %v1860_v52 = vrot.slane %v1859_v63, 1  ;;  %v1872_v54 = vrot.slane %v1871_v2, 2  ;;  %v1879_v6 = vrot.slane %v1878_v4, 2 }
 0x152   : > { %v1770_v13 = vmax.f32 %v1768_v53, %v1769_v12  ;;  %v1967_v0 = vmax.f32 %v1749_v10, %v3412_v56  ;;  %v1969_v9 = vmax.f32 %v1763_v11, %v3418_v36  ;;  %v1867_v18 = vrot.slane %v1866_v3, 1 }
 0x153   : > { %v1968_v20 = vmax.f32 %v1756_v38, %v3416_v15  ;;  %v1861_v14 = vmax.f32 %v1859_v63, %v1860_v52  ;;  %v1873_v21 = vmax.f32 %v1871_v2, %v1872_v54  ;;  %v1880_v22 = vmax.f32 %v1878_v4, %v1879_v6 }
 0x154   : > { %v1970_v23 = vmax.f32 %v1770_v13, %v3425_v60  ;;  %v1868_v24 = vmax.f32 %v1866_v3, %v1867_v18  ;;  %v1553_v16 = vadd.f32 %v3379_v58, %v3369_v31  ;;  %v1565_v25 = vmax.f32 %v3389_v1, 0.0 }
 0x155   : > { %v2000_v56 = vsel %vm1999_vm2, %v1968_v20, %v1967_v0  ;;  %v1874_v15 = vrot.slane %v1873_v21, 1  ;;  %v1881_v36 = vrot.slane %v1880_v22, 1  ;;  %v1975_v26 = vmax.f32 %v1861_v14, %v3410_v50 }
 0x156   : > { %v2002_v60 = vsel %vm2001_vm3, %v1969_v9, %v2000_v56  ;;  %v1976_v27 = vmax.f32 %v1868_v24, %v3421_v44  ;;  %v1561_v28 = vmax.f32 %v1553_v16, 0.0  ;;  %v1693_v58 = vcombine.high %v1565_v25, %v1565_v25 }
 0x157   : > { %v2004_v1 = vsel %vm2003_vm4, %v1970_v23, %v2002_v60  ;;  %v1875_v19 = vmax.f32 %v1873_v21, %v1874_v15  ;;  %v1882_v29 = vmax.f32 %v1880_v22, %v1881_v36  ;;  %v1700_v30 = vrot.slane %v1565_v25, %v3371_v41 }
 0x158   : > { %2018 = vst [vmem:[%s3455_s19] sm:$0xf] %v2004_v1  ;;  %v2008_v32 = vsel %vm1999_vm2, %v1976_v27, %v1975_v26  ;;  %v1625_v33 = vcombine.high %v1561_v28, %v1561_v28  ;;  %v1632_v57 = vrot.slane %v1561_v28, %v3371_v41  ;;  %v1707_v50 = vrot.slane %v1693_v58, %v3371_v41 }
 0x159   : > { %v1977_v5 = vmax.f32 %v1875_v19, %v3423_v46  ;;  %v1978_v44 = vmax.f32 %v1882_v29, %v3429_v17  ;;  %v1708_v34 = vcombine.high %v1700_v30, %v1700_v30  ;;  %v1939_v35 = vsel %vm1742_vm1, %v1700_v30, -inf }
 0x15a   : > { %v1639_v37 = vrot.slane %v1625_v33, %v3371_v41  ;;  %v1640_v39 = vcombine.high %v1632_v57, %v1632_v57  ;;  %v1827_v40 = vsel %vm1742_vm1, %v1632_v57, -inf  ;;  %v1709_v8 = vcombine.high %v1707_v50, %v1707_v50 }
 0x15b   : > { %v2009_v42 = vsel %vm2001_vm3, %v1977_v5, %v2008_v32  ;;  %v1828_v43 = vrot.slane %v1827_v40, 4  ;;  %v1940_v45 = vrot.slane %v1939_v35, 4  ;;  %v1946_v47 = vsel %vm1742_vm1, %v1708_v34, -inf }
 0x15c   : > { %v2010_v46 = vsel %vm2003_vm4, %v1978_v44, %v2009_v42  ;;  %v1641_v48 = vcombine.high %v1639_v37, %v1639_v37  ;;  %v1834_v17 = vsel %vm1742_vm1, %v1640_v39, -inf  ;;  %v1841_v49 = vsel %vm1742_vm1, %v1639_v37, -inf }
 0x15d   : > { %2020 = vst [vmem:[%s3455_s19 + $0x8] sm:$0xf] %v2010_v46  ;;  %v1829_v51 = vmax.f32 %v1827_v40, %v1828_v43  ;;  %v1835_v53 = vrot.slane %v1834_v17, 4  ;;  %v1842_v55 = vrot.slane %v1841_v49, 4  ;;  %v1941_v62 = vmax.f32 %v1939_v35, %v1940_v45 }
 0x15e   : > { %v1848_v63 = vsel %vm1742_vm1, %v1641_v48, -inf  ;;  %v1947_v2 = vrot.slane %v1946_v47, 4  ;;  %v1953_v4 = vsel %vm1742_vm1, %v1707_v50, -inf  ;;  %v1960_v10 = vsel %vm1742_vm1, %v1709_v8, -inf }
 0x15f   : > { %v1830_v11 = vrot.slane %v1829_v51, 2  ;;  %v1836_v12 = vmax.f32 %v1834_v17, %v1835_v53  ;;  %v1843_v3 = vmax.f32 %v1841_v49, %v1842_v55  ;;  %v1849_v38 = vrot.slane %v1848_v63, 4 }
 0x160   : > { %v1942_v52 = vrot.slane %v1941_v62, 2  ;;  %v1948_v54 = vmax.f32 %v1946_v47, %v1947_v2  ;;  %v1954_v6 = vrot.slane %v1953_v4, 4  ;;  %v1961_v13 = vrot.slane %v1960_v10, 4 }
 0x161   : > { %v1837_v0 = vrot.slane %v1836_v12, 2  ;;  %v1844_v9 = vrot.slane %v1843_v3, 2  ;;  %v1850_v18 = vmax.f32 %v1848_v63, %v1849_v38  ;;  %v1831_v22 = vmax.f32 %v1829_v51, %v1830_v11 }
 0x162   : > { %v1949_v20 = vrot.slane %v1948_v54, 2  ;;  %v1955_v14 = vmax.f32 %v1953_v4, %v1954_v6  ;;  %v1962_v21 = vmax.f32 %v1960_v10, %v1961_v13  ;;  %v1943_v16 = vmax.f32 %v1941_v62, %v1942_v52 }
 0x163   : > { %v1838_v23 = vmax.f32 %v1836_v12, %v1837_v0  ;;  %v1851_v24 = vrot.slane %v1850_v18, 2  ;;  %v1845_v25 = vmax.f32 %v1843_v3, %v1844_v9  ;;  %v1832_v27 = vrot.slane %v1831_v22, 1 }
 0x164   : > { %v1950_v56 = vmax.f32 %v1948_v54, %v1949_v20  ;;  %v1956_v15 = vrot.slane %v1955_v14, 2  ;;  %v1963_v26 = vrot.slane %v1962_v21, 2  ;;  %v1944_v58 = vrot.slane %v1943_v16, 1 }
 0x165   : > { %v1852_v36 = vmax.f32 %v1850_v18, %v1851_v24  ;;  %v1839_v28 = vrot.slane %v1838_v23, 1  ;;  %v2824_v1 = vadd.f32 %v3381_v59, %v3364_v7  ;;  %v1846_v19 = vrot.slane %v1845_v25, 1 }
 0x166   : > { %v1957_v60 = vmax.f32 %v1955_v14, %v1956_v15  ;;  %v1951_v29 = vrot.slane %v1950_v56, 1  ;;  %v1556_v30 = vadd.f32 %v3383_v61, %v3369_v31  ;;  %v3485_v33 = vmax.f32 %v1962_v21, %v1963_v26 }
 0x167   : > { %v1853_v32 = vrot.slane %v1852_v36, 1  ;;  %v1552_v57 = vadd.f32 %v2824_v1, %v3369_v31  ;;  %v3488_v44 = vmax.f32 %v1831_v22, %v1832_v27  ;;  %v3490_v34 = vmax.f32 %v1838_v23, %v1839_v28 }
 0x168   : > { %v1958_v50 = vrot.slane %v1957_v60, 1  ;;  %v1564_v5 = vmax.f32 %v1556_v30, 0.0  ;;  %v3492_v35 = vmax.f32 %v1943_v16, %v1944_v58  ;;  %v3494_v7 = vmax.f32 %v1845_v25, %v1846_v19 }
 0x169   : > { %v1560_v37 = vmax.f32 %v1552_v57, 0.0  ;;  %v3496_v59 = vmax.f32 %v1950_v56, %v1951_v29  ;;  %v3499_v40 = vmax.f32 %v1852_v36, %v1853_v32  ;;  %v1965_v31 = vrot.slane %v3485_v33, 1 }
 0x16a   : > { %v1676_v39 = vcombine.high %v1564_v5, %v1564_v5  ;;  %v1683_v61 = vrot.slane %v1564_v5, %v3371_v41  ;;  %v3503_v43 = vmax.f32 %v1957_v60, %v1958_v50 }
 0x16b   : > { %v1608_v8 = vcombine.high %v1560_v37, %v1560_v37  ;;  %v1615_v42 = vrot.slane %v1560_v37, %v3371_v41 }
 0x16c   : > { %v1690_v45 = vrot.slane %v1676_v39, %v3371_v41  ;;  %v1691_v47 = vcombine.high %v1683_v61, %v1683_v61  ;;  %v1911_v46 = vsel %vm1742_vm1, %v1683_v61, -inf }
 0x16d   : > { %v1622_v48 = vrot.slane %v1608_v8, %v3371_v41  ;;  %v1623_v17 = vcombine.high %v1615_v42, %v1615_v42  ;;  %v1799_v49 = vsel %vm1742_vm1, %v1615_v42, -inf  ;;  %v1912_v51 = vrot.slane %v1911_v46, 4 }
 0x16e   : > { %v1800_v53 = vrot.slane %v1799_v49, 4  ;;  %v1692_v55 = vcombine.high %v1690_v45, %v1690_v45  ;;  %v1918_v62 = vsel %vm1742_vm1, %v1691_v47, -inf  ;;  %v1925_v63 = vsel %vm1742_vm1, %v1690_v45, -inf }
 0x16f   : > { %v1624_v2 = vcombine.high %v1622_v48, %v1622_v48  ;;  %v1806_v4 = vsel %vm1742_vm1, %v1623_v17, -inf  ;;  %v1813_v10 = vsel %vm1742_vm1, %v1622_v48, -inf  ;;  %v1913_v11 = vmax.f32 %v1911_v46, %v1912_v51 }
 0x170   : > { %v1801_v12 = vmax.f32 %v1799_v49, %v1800_v53  ;;  %v1807_v3 = vrot.slane %v1806_v4, 4  ;;  %v1814_v38 = vrot.slane %v1813_v10, 4  ;;  %v1919_v41 = vrot.slane %v1918_v62, 4 }
 0x171   : > { %v1820_v52 = vsel %vm1742_vm1, %v1624_v2, -inf  ;;  %v1914_v54 = vrot.slane %v1913_v11, 2  ;;  %v1926_v6 = vrot.slane %v1925_v63, 4  ;;  %v1932_v13 = vsel %vm1742_vm1, %v1692_v55, -inf }
 0x172   : > { %v1802_v0 = vrot.slane %v1801_v12, 2  ;;  %v1808_v9 = vmax.f32 %v1806_v4, %v1807_v3  ;;  %v1815_v18 = vmax.f32 %v1813_v10, %v1814_v38  ;;  %v1821_v20 = vrot.slane %v1820_v52, 4 }
 0x173   : > { %v1915_v14 = vmax.f32 %v1913_v11, %v1914_v54  ;;  %v1920_v21 = vmax.f32 %v1918_v62, %v1919_v41  ;;  %v1927_v22 = vmax.f32 %v1925_v63, %v1926_v6  ;;  %v1933_v23 = vrot.slane %v1932_v13, 4 }
 0x174   : > { %v1803_v24 = vmax.f32 %v1801_v12, %v1802_v0  ;;  %v1809_v16 = vrot.slane %v1808_v9, 2  ;;  %v1816_v25 = vrot.slane %v1815_v18, 2  ;;  %v1822_v56 = vmax.f32 %v1820_v52, %v1821_v20 }
 0x175   : > { %v1916_v15 = vrot.slane %v1915_v14, 1  ;;  %v1921_v36 = vrot.slane %v1920_v21, 2  ;;  %v1928_v26 = vrot.slane %v1927_v22, 2  ;;  %v1934_v60 = vmax.f32 %v1932_v13, %v1933_v23 }
 0x176   : > { %v1804_v27 = vrot.slane %v1803_v24, 1  ;;  %v1810_v28 = vmax.f32 %v1808_v9, %v1809_v16  ;;  %v1817_v58 = vmax.f32 %v1815_v18, %v1816_v25  ;;  %v1823_v1 = vrot.slane %v1822_v56, 2 }
 0x177   : > { %v1917_v19 = vmax.f32 %v1915_v14, %v1916_v15  ;;  %v1922_v29 = vmax.f32 %v1920_v21, %v1921_v36  ;;  %v1929_v30 = vmax.f32 %v1927_v22, %v1928_v26  ;;  %v1935_v32 = vrot.slane %v1934_v60, 2 }
 0x178   : > { %v1805_v57 = vmax.f32 %v1803_v24, %v1804_v27  ;;  %v1811_v50 = vrot.slane %v1810_v28, 1  ;;  %v1818_v5 = vrot.slane %v1817_v58, 1  ;;  %v1824_v37 = vmax.f32 %v1822_v56, %v1823_v1 }
 0x179   : > { %v1923_v39 = vrot.slane %v1922_v29, 1  ;;  %v1930_v61 = vrot.slane %v1929_v30, 1  ;;  %v1936_v8 = vmax.f32 %v1934_v60, %v1935_v32  ;;  %v1979_v42 = vmax.f32 %v1917_v19, %v3492_v35 }
 0x17a   : > { %v1812_v45 = vmax.f32 %v1810_v28, %v1811_v50  ;;  %v1819_v47 = vmax.f32 %v1817_v58, %v1818_v5  ;;  %v1825_v46 = vrot.slane %v1824_v37, 1  ;;  %v1971_v48 = vmax.f32 %v1805_v57, %v3488_v44 }
 0x17b   : > { %v1966_v17 = vmax.f32 %v3485_v33, %v1965_v31  ;;  %v1924_v49 = vmax.f32 %v1922_v29, %v1923_v39  ;;  %v1931_v51 = vmax.f32 %v1929_v30, %v1930_v61  ;;  %v1937_v53 = vrot.slane %v1936_v8, 1 }
 0x17c   : > { %v1826_v55 = vmax.f32 %v1824_v37, %v1825_v46  ;;  %v1972_v62 = vmax.f32 %v1812_v45, %v3490_v34  ;;  %v1973_v63 = vmax.f32 %v1819_v47, %v3494_v7 }
 0x17d   : > { %v1938_v35 = vmax.f32 %v1936_v8, %v1937_v53  ;;  %v1980_v2 = vmax.f32 %v1924_v49, %v3496_v59  ;;  %v1981_v4 = vmax.f32 %v1931_v51, %v3503_v43 }
 0x17e   : > { %v1974_v44 = vmax.f32 %v1826_v55, %v3499_v40  ;;  %v2005_v10 = vsel %vm1999_vm2, %v1972_v62, %v1971_v48 }
 0x17f   : > { %v2006_v33 = vsel %vm2001_vm3, %v1973_v63, %v2005_v10  ;;  %v1982_v31 = vmax.f32 %v1938_v35, %v1966_v17  ;;  %v2011_v11 = vsel %vm1999_vm2, %v1980_v2, %v1979_v42 }
 0x180   : > { %v2007_v12 = vsel %vm2003_vm4, %v1974_v44, %v2006_v33  ;;  %v2012_v34 = vsel %vm2001_vm3, %v1981_v4, %v2011_v11 }
 0x181   : > { %2019 = vst [vmem:[%s3455_s19 + $0x4] sm:$0xf] %v2007_v12  ;;  %v2013_v7 = vsel %vm2003_vm4, %v1982_v31, %v2012_v34 }
 0x182   : > { %2021 = vst [vmem:[%s3455_s19 + $0xc] sm:$0xf] %v2013_v7 }
 0x183 PF: > { %s13_s12 = sadd.s32 1, %s2901_s12  }
 0x184   : > { %p10_p4 = scmp.ge.s32.totalorder %s13_s12, 6  }
 0x186   :  { %12 = sbr.rel (!%p10_p4) target bundleno = 1 (0x1), region = 72 }

// kernel: siamese_forward.3
= control target key start
LH: loop header
LB: loop body
LE: loop exit
PB: predicated region body
PF: predicated region fallthrough
CT: control target
= control target key end

     0   :  { %s7238_s12 = smov 0   ;;  %s9142_s0 = inlined_call_operand.vmem [shape: f32[4,18,18,3], index: 0, kind: input, shape index: {}]   ;;  %s9143_s1 = inlined_call_operand.vmem [shape: f32[9,3,64], index: 1, kind: input, shape index: {}]   ;;  %s9144_s2 = inlined_call_operand.vmem [shape: f32[1,64], index: 2, kind: input, shape index: {}]   ;;  %s9145_s3 = inlined_call_operand.vmem [shape: f32[4,8,8,64], index: 3, kind: output, shape index: {}]  }
   0x1 LB: > { %s5683_s13 = sadd.s32 4294967295, %s7215_s12   ;;  %p5687_p0 = scmp.ge.s32.totalorder %s7215_s12, 1  ;;  %s7215_s12 = sphi %s7238_s12, %s13_s12  }
   0x2   : > { %p137_p1 = scmp.lt.s32.totalorder %s7215_s12, 5 }
   0x4   : > { %p138_p2 = pnand %p5687_p0, %p137_p1 }
   0x6   : > { %141 = sbr.rel (%p138_p2) target bundleno = 822 (0x336), region = 32 }
   0xd   : > { %v5691_v0 = vld [vmem:[%s9143_s1 + $0x4] sm:$0x7]  ;;  %vm335_vm0 = vcmask 1042432   ;;  %v7252_v1 = vld [vmem:[%s9143_s1 + $0x10] sm:$0x7]  ;;  %p161_p3 = scmp.lt.s32.totalorder %s5683_s13, 3 }
   0xe   : > { %6489 = vmatprep.subr.msk.mxu1 %vm335_vm0, %v5691_v0  ;;  %6689 = vmatprep.subr.msk.mxu0 %vm335_vm0, %v7252_v1  ;;  %v203_v2 = vld [vmem:[%s9143_s1] sm:$0x7]  ;;  %v5956_v3 = vld [vmem:[%s9143_s1 + $0x14] sm:$0x7]  ;;  %vm238_vm1 = vcmask 23552   ;;  %vm4395_vm2 = vcmask 517120  }
   0xf   : > { %6490 = vmatpush3.msk.msra.mxu1 %vm335_vm0, %v5691_v0  ;;  %6690 = vmatpush3.msk.msra.mxu0 %vm335_vm0, %v7252_v1  ;;  %s9274_s13 = smov (!%p161_p3, %s5683_s13), 3  ;;  %v6022_v9 = vld [vmem:[%s9143_s1 + $0x18] sm:$0x7]  ;;  %v7293_v10 = vld [vmem:[%s9143_s1 + $0x8] sm:$0x7]  ;;  %vm5292_vm3 = vcmask 523264  }
  0x10   : > { %6539 = vmatprep.subr.msk.mxu1 %vm335_vm0, %v203_v2  ;;  %6739 = vmatprep.subr.msk.mxu0 %vm335_vm0, %v5956_v3  ;;  %s7197_s22 = smul.u32 432, %s9274_s13  ;;  %v7412_v28 = vld [vmem:[%s9143_s1 + $0x1c] sm:$0x7]  ;;  %v7575_v61 = vld [vmem:[%s9143_s1 + $0xc] sm:$0x7]  ;;  %vm5549_vm4 = vcmask 1041409  }
  0x11   : > { %vm5551_vm5 = vcmask 1042434   ;;  %vm5553_vm6 = vcmask 1043459   ;;  %vm5555_vm7 = vcmask 1044484   ;;  %vm5557_vm8 = vcmask 1045509   ;;  %s6191_s11 = sshll.u32 %s9274_s13, 6 }
  0x12   : > { %s7274_s25 = scalar_lea.vmem %s9142_s0, %s7197_s22  ;;  %vm5559_vm9 = vcmask 1046534   ;;  %vm5561_vm10 = vcmask 1047559   ;;  %s8351_s13 = scalar_lea.vmem %s9145_s3, %s6191_s11 }
  0x13   : > { %v204_v4 = vld [vmem:[%s7274_s25 + $0x1] sm:$0xff]  ;;  %v5858_v5 = vld [vmem:[%s7274_s25 + $0x19] sm:$0xff]  ;;  %v205_v6 = vld [vmem:[%s7274_s25 + $0x9] sm:$0xff] }
  0x14   : > { %6491 = vmatprep.mubr.msk.f32.mxu1 %vm238_vm1, %v204_v4  ;;  %6691 = vmatprep.mubr.msk.f32.mxu0 %vm238_vm1, %v5858_v5  ;;  %v5859_v7 = vld [vmem:[%s7274_s25 + $0x21] sm:$0xff]  ;;  %v7283_v8 = vld [vmem:[%s7274_s25 + $0x31] sm:$0xff]  ;;  %v7298_v11 = vld [vmem:[%s7274_s25 + $0x39] sm:$0xff] }
  0x15   : > { %6492 = vmatmul.mubr.msk.f32.vlgmr.msra.gmra.mrb[0].mxu1 %vm238_vm1, %v205_v6  ;;  %6692 = vmatmul.mubr.msk.f32.vlgmr.msra.gmra.mrb[0].mxu0 %vm238_vm1, %v5859_v7  ;;  %v7304_v12 = vld [vmem:[%s7274_s25 + $0x49] sm:$0xff]  ;;  %v7317_v13 = vld [vmem:[%s7274_s25 + $0x51] sm:$0xff]  ;;  %v7320_v14 = vld [vmem:[%s7274_s25 + $0x61] sm:$0xff] }
  0x16   : > { %6540 = vmatpush3.msk.msra.mxu1 %vm335_vm0, %v203_v2  ;;  %6740 = vmatpush3.msk.msra.mxu0 %vm335_vm0, %v5956_v3  ;;  %v7331_v15 = vld [vmem:[%s7274_s25 + $0x69] sm:$0xff]  ;;  %v7334_v16 = vld [vmem:[%s7274_s25 + $0x79] sm:$0xff]  ;;  %v7345_v17 = vld [vmem:[%s7274_s25 + $0x81] sm:$0xff] }
  0x17   : > { %6494 = vmatprep.mubr.msk.f32.mxu1 %vm238_vm1, %v5858_v5  ;;  %6694 = vmatprep.mubr.msk.f32.mxu0 %vm238_vm1, %v7283_v8  ;;  %v7348_v18 = vld [vmem:[%s7274_s25 + $0x91] sm:$0xff]  ;;  %v7359_v19 = vld [vmem:[%s7274_s25 + $0x99] sm:$0xff]  ;;  %v7362_v20 = vld [vmem:[%s7274_s25 + $0xa9] sm:$0xff] }
  0x18   : > { %6789 = vmatprep.subr.msk.mxu0 %vm335_vm0, %v6022_v9  ;;  %6589 = vmatprep.subr.msk.mxu1 %vm335_vm0, %v7293_v10  ;;  %v7373_v21 = vld [vmem:[%s7274_s25 + $0xb1] sm:$0xff]  ;;  %v7376_v22 = vld [vmem:[%s7274_s25 + $0xc1] sm:$0xff]  ;;  %v7387_v23 = vld [vmem:[%s7274_s25 + $0xc9] sm:$0xff] }
  0x19   : > { %6495 = vmatmul.mubr.msk.f32.gmra.mrb[2].mxu1 %vm238_vm1, %v5859_v7  ;;  %6695 = vmatmul.mubr.msk.f32.gmra.mrb[2].mxu0 %vm238_vm1, %v7298_v11  ;;  %v7390_v24 = vld [vmem:[%s7274_s25 + $0x1a] sm:$0xff]  ;;  %v7401_v25 = vld [vmem:[%s7274_s25 + $0x22] sm:$0xff]  ;;  %v7407_v27 = vld [vmem:[%s7274_s25 + $0x32] sm:$0xff] }
  0x1a   : > { %6497 = vmatprep.mubr.msk.f32.mxu1 %vm238_vm1, %v7283_v8  ;;  %6697 = vmatprep.mubr.msk.f32.mxu0 %vm238_vm1, %v7304_v12  ;;  %v7404_v26 = vld [vmem:[%s7274_s25 + $0xd9] sm:$0xff]  ;;  %v7422_v29 = vld [vmem:[%s7274_s25 + $0xe1] sm:$0xff]  ;;  %v7430_v31 = vld [vmem:[%s7274_s25 + $0xf1] sm:$0xff] }
  0x1b   : > { %9191 = vst [vmem:[#allocation2_spill] sm:$0xff] %v7422_v29  ;;  %v7425_v30 = vld [vmem:[%s7274_s25 + $0x3a] sm:$0xff]  ;;  %9192 = vst [vmem:[#allocation3_spill] sm:$0xff] %v7430_v31  ;;  %v7433_v32 = vld [vmem:[%s7274_s25 + $0x4a] sm:$0xff] }
  0x1c   : > { %v7446_v33 = vld [vmem:[%s7274_s25 + $0xf9] sm:$0xff]  ;;  %v7452_v35 = vld [vmem:[%s7274_s25 + $0x109] sm:$0xff]  ;;  %v7466_v37 = vld [vmem:[%s7274_s25 + $0x111] sm:$0xff] }
  0x1d   : > { %6498 = vmatmul.mubr.msk.f32.gmra.mrb[4].mxu1 %vm238_vm1, %v7298_v11  ;;  %6698 = vmatmul.mubr.msk.f32.gmra.mrb[4].mxu0 %vm238_vm1, %v7317_v13  ;;  %9193 = vst [vmem:[#allocation4_spill] sm:$0xff] %v7446_v33  ;;  %v7449_v34 = vld [vmem:[%s7274_s25 + $0x52] sm:$0xff]  ;;  %9194 = vst [vmem:[#allocation5_spill] sm:$0xff] %v7452_v35  ;;  %v7455_v36 = vld [vmem:[%s7274_s25 + $0x62] sm:$0xff] }
  0x1e   : > { %6500 = vmatprep.mubr.msk.f32.mxu1 %vm238_vm1, %v7304_v12  ;;  %6700 = vmatprep.mubr.msk.f32.mxu0 %vm238_vm1, %v7320_v14  ;;  %9195 = vst [vmem:[#allocation6_spill] sm:$0xff] %v7466_v37  ;;  %v7469_v38 = vld [vmem:[%s7274_s25 + $0x6a] sm:$0xff]  ;;  %v7472_v39 = vld [vmem:[%s7274_s25 + $0x121] sm:$0xff]  ;;  %v7492_v43 = vld [vmem:[%s7274_s25 + $0x139] sm:$0xff] }
  0x1f   : > { %9196 = vst [vmem:[#allocation7_spill] sm:$0xff] %v7472_v39  ;;  %v7475_v40 = vld [vmem:[%s7274_s25 + $0x7a] sm:$0xff]  ;;  %v7486_v41 = vld [vmem:[%s7274_s25 + $0x129] sm:$0xff]  ;;  %9198 = vst [vmem:[#allocation9_spill] sm:$0xff] %v7492_v43 }
  0x20   : > { %9197 = vst [vmem:[#allocation8_spill] sm:$0xff] %v7486_v41  ;;  %v7489_v42 = vld [vmem:[%s7274_s25 + $0x82] sm:$0xff]  ;;  %v7495_v44 = vld [vmem:[%s7274_s25 + $0x92] sm:$0xff]  ;;  %v7509_v46 = vld [vmem:[%s7274_s25 + $0x9a] sm:$0xff] }
  0x21   : > { %6501 = vmatmul.mubr.msk.f32.gmra.mrb[6].mxu1 %vm238_vm1, %v7317_v13  ;;  %6701 = vmatmul.mubr.msk.f32.gmra.mrb[6].mxu0 %vm238_vm1, %v7331_v15  ;;  %v7506_v45 = vld [vmem:[%s7274_s25 + $0x141] sm:$0xff]  ;;  %v7512_v47 = vld [vmem:[%s7274_s25 + $0x151] sm:$0xff]  ;;  %v7526_v49 = vld [vmem:[%s7274_s25 + $0x159] sm:$0xff] }
  0x22   : > { %6503 = vmatprep.mubr.msk.f32.mxu1 %vm238_vm1, %v7320_v14  ;;  %6703 = vmatprep.mubr.msk.f32.mxu0 %vm238_vm1, %v7334_v16  ;;  %9199 = vst [vmem:[#allocation10_spill] sm:$0xff] %v7506_v45  ;;  %9200 = vst [vmem:[#allocation11_spill] sm:$0xff] %v7512_v47  ;;  %v7515_v48 = vld [vmem:[%s7274_s25 + $0xaa] sm:$0xff]  ;;  %v7529_v50 = vld [vmem:[%s7274_s25 + $0xb2] sm:$0xff] }
  0x23   : > { %9201 = vst [vmem:[#allocation12_spill] sm:$0xff] %v7526_v49  ;;  %v7532_v51 = vld [vmem:[%s7274_s25 + $0x169] sm:$0xff]  ;;  %v7546_v53 = vld [vmem:[%s7274_s25 + $0x171] sm:$0xff]  ;;  %v171_v55 = vld [vmem:[%s7274_s25] sm:$0xff] }
  0x24   : > { %9202 = vst [vmem:[#allocation13_spill] sm:$0xff] %v7532_v51  ;;  %v7535_v52 = vld [vmem:[%s7274_s25 + $0xc2] sm:$0xff]  ;;  %9203 = vst [vmem:[#allocation14_spill] sm:$0xff] %v7546_v53  ;;  %v7549_v54 = vld [vmem:[%s7274_s25 + $0xca] sm:$0xff] }
  0x25   : > { %6504 = vmatmul.mubr.msk.f32.gmra.mrb[8].mxu1 %vm238_vm1, %v7331_v15  ;;  %6704 = vmatmul.mubr.msk.f32.gmra.mrb[8].mxu0 %vm238_vm1, %v7345_v17  ;;  %v7553_v56 = vld [vmem:[%s7274_s25 + $0xda] sm:$0xff]  ;;  %v172_v57 = vld [vmem:[%s7274_s25 + $0x8] sm:$0xff]  ;;  %v7570_v60 = vld [vmem:[%s7274_s25 + $0xf2] sm:$0xff] }
  0x26   : > { %6506 = vmatprep.mubr.msk.f32.mxu1 %vm238_vm1, %v7334_v16  ;;  %6706 = vmatprep.mubr.msk.f32.mxu0 %vm238_vm1, %v7348_v18  ;;  %v7564_v58 = vld [vmem:[%s7274_s25 + $0xe2] sm:$0xff]  ;;  %v7567_v59 = vld [vmem:[%s7274_s25 + $0x18] sm:$0xff]  ;;  %v7593_v0 = vld [vmem:[%s7274_s25 + $0x30] sm:$0xff] }
  0x27   : > { %9204 = vst [vmem:[#allocation15_spill] sm:$0xff] %v7567_v59  ;;  %v7585_v62 = vld [vmem:[%s7274_s25 + $0x20] sm:$0xff]  ;;  %9206 = vst [vmem:[#allocation17_spill] sm:$0xff] %v7593_v0  ;;  %v7596_v2 = vld [vmem:[%s7274_s25 + $0x10a] sm:$0xff] }
  0x28   : > { %9205 = vst [vmem:[#allocation16_spill] sm:$0xff] %v7585_v62  ;;  %v7588_v63 = vld [vmem:[%s7274_s25 + $0xfa] sm:$0xff]  ;;  %v7612_v4 = vld [vmem:[%s7274_s25 + $0x112] sm:$0xff]  ;;  %v7615_v5 = vld [vmem:[%s7274_s25 + $0x48] sm:$0xff] }
  0x29   : > { %6507 = vmatmul.mubr.msk.f32.gmra.mrb[10].mxu1 %vm238_vm1, %v7345_v17  ;;  %6707 = vmatmul.mubr.msk.f32.gmra.mrb[10].mxu0 %vm238_vm1, %v7359_v19  ;;  %v7609_v3 = vld [vmem:[%s7274_s25 + $0x38] sm:$0xff]  ;;  %9208 = vst [vmem:[#allocation19_spill] sm:$0xff] %v7615_v5  ;;  %v7618_v6 = vld [vmem:[%s7274_s25 + $0x122] sm:$0xff]  ;;  %v7629_v7 = vld [vmem:[%s7274_s25 + $0x50] sm:$0xff] }
  0x2a   : > { %6509 = vmatprep.mubr.msk.f32.mxu1 %vm238_vm1, %v7348_v18  ;;  %6709 = vmatprep.mubr.msk.f32.mxu0 %vm238_vm1, %v7362_v20  ;;  %9207 = vst [vmem:[#allocation18_spill] sm:$0xff] %v7609_v3  ;;  %9209 = vst [vmem:[#allocation20_spill] sm:$0xff] %v7629_v7 }
  0x2d   : > { %6510 = vmatmul.mubr.msk.f32.gmra.mrb[12].mxu1 %vm238_vm1, %v7359_v19  ;;  %6710 = vmatmul.mubr.msk.f32.gmra.mrb[12].mxu0 %vm238_vm1, %v7373_v21 }
  0x2e   : > { %6512 = vmatprep.mubr.msk.f32.mxu1 %vm238_vm1, %v7362_v20  ;;  %6712 = vmatprep.mubr.msk.f32.mxu0 %vm238_vm1, %v7376_v22 }
  0x31   : > { %6513 = vmatmul.mubr.msk.f32.gmra.mrb[14].mxu1 %vm238_vm1, %v7373_v21  ;;  %6713 = vmatmul.mubr.msk.f32.gmra.mrb[14].mxu0 %vm238_vm1, %v7387_v23 }
  0x32   : > { %6515 = vmatprep.mubr.msk.f32.mxu1 %vm238_vm1, %v7376_v22  ;;  %6741 = vmatprep.mubr.msk.f32.mxu0 %vm238_vm1, %v7390_v24 }
  0x35   : > { %6516 = vmatmul.mubr.msk.f32.gmra.mrb[16].mxu1 %vm238_vm1, %v7387_v23  ;;  %6742 = vmatmul.mubr.msk.f32.vlgmr.msra.gmra.mrb[0].mxu0 %vm238_vm1, %v7401_v25 }
  0x36   : > { %6790 = vmatpush3.msk.msra.mxu0 %vm335_vm0, %v6022_v9  ;;  %6518 = vmatprep.mubr.msk.f32.mxu1 %vm238_vm1, %v7404_v26  ;;  %v7632_v9 = vld [vmem:[%s7274_s25 + $0x12a] sm:$0xff] }
  0x37   : > { %6744 = vmatprep.mubr.msk.f32.mxu0 %vm238_vm1, %v7407_v27  ;;  %6839 = vmatprep.subr.msk.mxu0 %vm335_vm0, %v7412_v28 }
  0x39   : > { %6519 = vmatmul.mubr.msk.f32.gmra.mrb[18].mxu1 %vm238_vm1, %v7422_v29  ;;  %6745 = vmatmul.mubr.msk.f32.gmra.mrb[2].mxu0 %vm238_vm1, %v7425_v30  ;;  %v7729_v29 = vld [vmem:[%s7274_s25 + $0xd8] sm:$0xff] }
  0x3a   : > { %6521 = vmatprep.mubr.msk.f32.mxu1 %vm238_vm1, %v7430_v31  ;;  %6747 = vmatprep.mubr.msk.f32.mxu0 %vm238_vm1, %v7433_v32  ;;  %v7712_v31 = vld [vmem:[%s7274_s25 + $0x18a] sm:$0xff] }
  0x3b   : > { %9220 = vst [vmem:[#allocation31_spill] sm:$0xff] %v7712_v31 }
  0x3d   : > { %6522 = vmatmul.mubr.msk.f32.gmra.mrb[20].mxu1 %vm238_vm1, %v7446_v33  ;;  %6748 = vmatmul.mubr.msk.f32.gmra.mrb[4].mxu0 %vm238_vm1, %v7449_v34  ;;  %v7698_v33 = vld [vmem:[%s7274_s25 + $0x182] sm:$0xff] }
  0x3e   : > { %6524 = vmatprep.mubr.msk.f32.mxu1 %vm238_vm1, %v7452_v35  ;;  %6750 = vmatprep.mubr.msk.f32.mxu0 %vm238_vm1, %v7455_v36  ;;  %v7695_v35 = vld [vmem:[%s7274_s25 + $0xa8] sm:$0xff]  ;;  %9218 = vst [vmem:[#allocation29_spill] sm:$0xff] %v7698_v33 }
  0x3f   : > { %9217 = vst [vmem:[#allocation28_spill] sm:$0xff] %v7695_v35 }
  0x41   : > { %6525 = vmatmul.mubr.msk.f32.gmra.mrb[22].mxu1 %vm238_vm1, %v7466_v37  ;;  %6751 = vmatmul.mubr.msk.f32.gmra.mrb[6].mxu0 %vm238_vm1, %v7469_v38  ;;  %v7692_v37 = vld [vmem:[%s7274_s25 + $0x172] sm:$0xff] }
  0x42   : > { %6527 = vmatprep.mubr.msk.f32.mxu1 %vm238_vm1, %v7472_v39  ;;  %6753 = vmatprep.mubr.msk.f32.mxu0 %vm238_vm1, %v7475_v40  ;;  %v7689_v39 = vld [vmem:[%s7274_s25 + $0x98] sm:$0xff]  ;;  %9216 = vst [vmem:[#allocation27_spill] sm:$0xff] %v7692_v37 }
  0x43   : > { %9215 = vst [vmem:[#allocation26_spill] sm:$0xff] %v7689_v39 }
  0x45   : > { %6528 = vmatmul.mubr.msk.f32.gmra.mrb[24].mxu1 %vm238_vm1, %v7486_v41  ;;  %6754 = vmatmul.mubr.msk.f32.gmra.mrb[8].mxu0 %vm238_vm1, %v7489_v42  ;;  %v7678_v41 = vld [vmem:[%s7274_s25 + $0x16a] sm:$0xff] }
  0x46   : > { %6530 = vmatprep.mubr.msk.f32.mxu1 %vm238_vm1, %v7492_v43  ;;  %6756 = vmatprep.mubr.msk.f32.mxu0 %vm238_vm1, %v7495_v44  ;;  %v7675_v43 = vld [vmem:[%s7274_s25 + $0x90] sm:$0xff] }
  0x47   : > { %9214 = vst [vmem:[#allocation25_spill] sm:$0xff] %v7675_v43 }
  0x49   : > { %6531 = vmatmul.mubr.msk.f32.gmra.mrb[26].mxu1 %vm238_vm1, %v7506_v45  ;;  %6757 = vmatmul.mubr.msk.f32.gmra.mrb[10].mxu0 %vm238_vm1, %v7509_v46  ;;  %v7672_v45 = vld [vmem:[%s7274_s25 + $0x15a] sm:$0xff] }
  0x4a   : > { %6533 = vmatprep.mubr.msk.f32.mxu1 %vm238_vm1, %v7512_v47  ;;  %6759 = vmatprep.mubr.msk.f32.mxu0 %vm238_vm1, %v7515_v48  ;;  %v7669_v47 = vld [vmem:[%s7274_s25 + $0x80] sm:$0xff] }
  0x4b   : > { %9213 = vst [vmem:[#allocation24_spill] sm:$0xff] %v7669_v47 }
  0x4d   : > { %6534 = vmatmul.mubr.msk.f32.gmra.mrb[28].mxu1 %vm238_vm1, %v7526_v49  ;;  %6760 = vmatmul.mubr.msk.f32.gmra.mrb[12].mxu0 %vm238_vm1, %v7529_v50  ;;  %v7658_v49 = vld [vmem:[%s7274_s25 + $0x152] sm:$0xff] }
  0x4e   : > { %6536 = vmatprep.mubr.msk.f32.mxu1 %vm238_vm1, %v7532_v51  ;;  %6762 = vmatprep.mubr.msk.f32.mxu0 %vm238_vm1, %v7535_v52  ;;  %v7655_v51 = vld [vmem:[%s7274_s25 + $0x78] sm:$0xff] }
  0x4f   : > { %9212 = vst [vmem:[#allocation23_spill] sm:$0xff] %v7655_v51 }
  0x51   : > { %6537 = vmatmul.mubr.msk.f32.gmra.mrb[30].mxu1 %vm238_vm1, %v7546_v53  ;;  %6763 = vmatmul.mubr.msk.f32.gmra.mrb[14].mxu0 %vm238_vm1, %v7549_v54  ;;  %v7652_v53 = vld [vmem:[%s7274_s25 + $0x142] sm:$0xff] }
  0x52   : > { %6541 = vmatprep.mubr.msk.f32.mxu1 %vm238_vm1, %v171_v55  ;;  %6765 = vmatprep.mubr.msk.f32.mxu0 %vm238_vm1, %v7553_v56  ;;  %v7638_v55 = vld [vmem:[%s7274_s25 + $0x13a] sm:$0xff] }
  0x55   : > { %6542 = vmatmul.mubr.msk.f32.vlgmr.msra.gmra.mrb[0].mxu1 %vm238_vm1, %v172_v57  ;;  %6766 = vmatmul.mubr.msk.f32.gmra.mrb[16].mxu0 %vm238_vm1, %v7564_v58  ;;  %v7649_v57 = vld [vmem:[%s7274_s25 + $0x68] sm:$0xff] }
  0x56   : > { %6590 = vmatpush3.msk.msra.mxu1 %vm335_vm0, %v7293_v10  ;;  %6544 = vmatprep.mubr.msk.f32.mxu1 %vm238_vm1, %v7567_v59  ;;  %v7635_v10 = vld [vmem:[%s7274_s25 + $0x60] sm:$0xff]  ;;  %9211 = vst [vmem:[#allocation22_spill] sm:$0xff] %v7649_v57 }
  0x57   : > { %6768 = vmatprep.mubr.msk.f32.mxu0 %vm238_vm1, %v7570_v60  ;;  %6639 = vmatprep.subr.msk.mxu1 %vm335_vm0, %v7575_v61  ;;  %9210 = vst [vmem:[#allocation21_spill] sm:$0xff] %v7635_v10  ;;  %v7715_v59 = vld [vmem:[%s7274_s25 + $0xc0] sm:$0xff] }
  0x59   : > { %6545 = vmatmul.mubr.msk.f32.gmra.mrb[2].mxu1 %vm238_vm1, %v7585_v62  ;;  %6769 = vmatmul.mubr.msk.f32.gmra.mrb[18].mxu0 %vm238_vm1, %v7588_v63  ;;  %v7709_v62 = vld [vmem:[%s7274_s25 + $0xb0] sm:$0xff] }
  0x5a   : > { %6547 = vmatprep.mubr.msk.f32.mxu1 %vm238_vm1, %v7593_v0  ;;  %6771 = vmatprep.mubr.msk.f32.mxu0 %vm238_vm1, %v7596_v2  ;;  %9219 = vst [vmem:[#allocation30_spill] sm:$0xff] %v7709_v62 }
  0x5d   : > { %6548 = vmatmul.mubr.msk.f32.gmra.mrb[4].mxu1 %vm238_vm1, %v7609_v3  ;;  %6772 = vmatmul.mubr.msk.f32.gmra.mrb[20].mxu0 %vm238_vm1, %v7612_v4 }
  0x5e   : > { %6550 = vmatprep.mubr.msk.f32.mxu1 %vm238_vm1, %v7615_v5  ;;  %6774 = vmatprep.mubr.msk.f32.mxu0 %vm238_vm1, %v7618_v6 }
  0x61   : > { %6551 = vmatmul.mubr.msk.f32.gmra.mrb[6].mxu1 %vm238_vm1, %v7629_v7  ;;  %6775 = vmatmul.mubr.msk.f32.gmra.mrb[22].mxu0 %vm238_vm1, %v7632_v9 }
  0x62   : > { %6553 = vmatprep.mubr.msk.f32.mxu1 %vm238_vm1, %v7635_v10  ;;  %6777 = vmatprep.mubr.msk.f32.mxu0 %vm238_vm1, %v7638_v55 }
  0x65   : > { %6554 = vmatmul.mubr.msk.f32.gmra.mrb[8].mxu1 %vm238_vm1, %v7649_v57  ;;  %6778 = vmatmul.mubr.msk.f32.gmra.mrb[24].mxu0 %vm238_vm1, %v7652_v53 }
  0x66   : > { %6556 = vmatprep.mubr.msk.f32.mxu1 %vm238_vm1, %v7655_v51  ;;  %6780 = vmatprep.mubr.msk.f32.mxu0 %vm238_vm1, %v7658_v49 }
  0x69   : > { %6557 = vmatmul.mubr.msk.f32.gmra.mrb[10].mxu1 %vm238_vm1, %v7669_v47  ;;  %6781 = vmatmul.mubr.msk.f32.gmra.mrb[26].mxu0 %vm238_vm1, %v7672_v45 }
  0x6a   : > { %6559 = vmatprep.mubr.msk.f32.mxu1 %vm238_vm1, %v7675_v43  ;;  %6783 = vmatprep.mubr.msk.f32.mxu0 %vm238_vm1, %v7678_v41 }
  0x6d   : > { %6560 = vmatmul.mubr.msk.f32.gmra.mrb[12].mxu1 %vm238_vm1, %v7689_v39  ;;  %6784 = vmatmul.mubr.msk.f32.gmra.mrb[28].mxu0 %vm238_vm1, %v7692_v37  ;;  %v7734_v37 = vld [vmem:[%s9143_s1 + $0x20] sm:$0x7] }
  0x6e   : > { %6562 = vmatprep.mubr.msk.f32.mxu1 %vm238_vm1, %v7695_v35  ;;  %6786 = vmatprep.mubr.msk.f32.mxu0 %vm238_vm1, %v7698_v33  ;;  %v7726_v33 = vld [vmem:[%s7274_s25 + $0xc8] sm:$0xff] }
  0x6f   : > { %9221 = vst [vmem:[#allocation32_spill] sm:$0xff] %v7726_v33 }
  0x71   : > { %6563 = vmatmul.mubr.msk.f32.gmra.mrb[14].mxu1 %vm238_vm1, %v7709_v62  ;;  %6787 = vmatmul.mubr.msk.f32.gmra.mrb[30].mxu0 %vm238_vm1, %v7712_v31  ;;  %v7745_v31 = vld [vmem:[%s7274_s25 + $0xe0] sm:$0xff] }
  0x72   : > { %6565 = vmatprep.mubr.msk.f32.mxu1 %vm238_vm1, %v7715_v59  ;;  %6791 = vmatprep.mubr.msk.f32.mxu0 %vm238_vm1, %v7593_v0  ;;  %v7750_v0 = vld [vmem:[%s7274_s25 + $0xf0] sm:$0xff] }
  0x75   : > { %6566 = vmatmul.mubr.msk.f32.gmra.mrb[16].mxu1 %vm238_vm1, %v7726_v33  ;;  %6792 = vmatmul.mubr.msk.f32.vlgmr.msra.gmra.mrb[0].mxu0 %vm238_vm1, %v7609_v3  ;;  %v888_v3 = vld [vmem:[%s7274_s25 + $0x2] sm:$0xff] }
  0x76   : > { %6840 = vmatpush3.msk.msra.mxu0 %vm335_vm0, %v7412_v28  ;;  %6568 = vmatprep.mubr.msk.f32.mxu1 %vm238_vm1, %v7729_v29  ;;  %v7763_v28 = vld [vmem:[%s7274_s25 + $0xf8] sm:$0xff] }
  0x77   : > { %6794 = vmatprep.mubr.msk.f32.mxu0 %vm238_vm1, %v7615_v5  ;;  %6889 = vmatprep.subr.msk.mxu0 %vm335_vm0, %v7734_v37  ;;  %v7766_v5 = vld [vmem:[%s7274_s25 + $0x108] sm:$0xff] }
  0x79   : > { %6569 = vmatmul.mubr.msk.f32.gmra.mrb[18].mxu1 %vm238_vm1, %v7745_v31  ;;  %6795 = vmatmul.mubr.msk.f32.gmra.mrb[2].mxu0 %vm238_vm1, %v7629_v7  ;;  %v7777_v7 = vld [vmem:[%s7274_s25 + $0x110] sm:$0xff] }
  0x7a   : > { %6571 = vmatprep.mubr.msk.f32.mxu1 %vm238_vm1, %v7750_v0  ;;  %6797 = vmatprep.mubr.msk.f32.mxu0 %vm238_vm1, %v7635_v10  ;;  %v7780_v10 = vld [vmem:[%s7274_s25 + $0x120] sm:$0xff] }
  0x7d   : > { %6572 = vmatmul.mubr.msk.f32.gmra.mrb[20].mxu1 %vm238_vm1, %v7763_v28  ;;  %6798 = vmatmul.mubr.msk.f32.gmra.mrb[4].mxu0 %vm238_vm1, %v7649_v57  ;;  %v7791_v57 = vld [vmem:[%s7274_s25 + $0x128] sm:$0xff] }
  0x7e   : > { %6574 = vmatprep.mubr.msk.f32.mxu1 %vm238_vm1, %v7766_v5  ;;  %6800 = vmatprep.mubr.msk.f32.mxu0 %vm238_vm1, %v7655_v51  ;;  %v7794_v51 = vld [vmem:[%s7274_s25 + $0x138] sm:$0xff] }
  0x81   : > { %6575 = vmatmul.mubr.msk.f32.gmra.mrb[22].mxu1 %vm238_vm1, %v7777_v7  ;;  %6801 = vmatmul.mubr.msk.f32.gmra.mrb[6].mxu0 %vm238_vm1, %v7669_v47  ;;  %v7805_v47 = vld [vmem:[%s7274_s25 + $0x140] sm:$0xff] }
  0x82   : > { %6577 = vmatprep.mubr.msk.f32.mxu1 %vm238_vm1, %v7780_v10  ;;  %6803 = vmatprep.mubr.msk.f32.mxu0 %vm238_vm1, %v7675_v43  ;;  %v7808_v43 = vld [vmem:[%s7274_s25 + $0x150] sm:$0xff] }
  0x85   : > { %6578 = vmatmul.mubr.msk.f32.gmra.mrb[24].mxu1 %vm238_vm1, %v7791_v57  ;;  %6804 = vmatmul.mubr.msk.f32.gmra.mrb[8].mxu0 %vm238_vm1, %v7689_v39  ;;  %v7819_v39 = vld [vmem:[%s7274_s25 + $0x158] sm:$0xff] }
  0x86   : > { %6580 = vmatprep.mubr.msk.f32.mxu1 %vm238_vm1, %v7794_v51  ;;  %6806 = vmatprep.mubr.msk.f32.mxu0 %vm238_vm1, %v7695_v35  ;;  %v7822_v35 = vld [vmem:[%s7274_s25 + $0x168] sm:$0xff] }
  0x89   : > { %6581 = vmatmul.mubr.msk.f32.gmra.mrb[26].mxu1 %vm238_vm1, %v7805_v47  ;;  %6807 = vmatmul.mubr.msk.f32.gmra.mrb[10].mxu0 %vm238_vm1, %v7709_v62  ;;  %v7833_v62 = vld [vmem:[%s7274_s25 + $0x170] sm:$0xff] }
  0x8a   : > { %6583 = vmatprep.mubr.msk.f32.mxu1 %vm238_vm1, %v7808_v43  ;;  %6809 = vmatprep.mubr.msk.f32.mxu0 %vm238_vm1, %v7715_v59 }
  0x8d   : > { %6584 = vmatmul.mubr.msk.f32.gmra.mrb[28].mxu1 %vm238_vm1, %v7819_v39  ;;  %6810 = vmatmul.mubr.msk.f32.gmra.mrb[12].mxu0 %vm238_vm1, %v7726_v33  ;;  %v889_v33 = vld [vmem:[%s7274_s25 + $0xa] sm:$0xff] }
  0x8e   : > { %6586 = vmatprep.mubr.msk.f32.mxu1 %vm238_vm1, %v7822_v35  ;;  %6812 = vmatprep.mubr.msk.f32.mxu0 %vm238_vm1, %v7729_v29 }
  0x91   : > { %6587 = vmatmul.mubr.msk.f32.gmra.mrb[30].mxu1 %vm238_vm1, %v7833_v62  ;;  %6813 = vmatmul.mubr.msk.f32.gmra.mrb[14].mxu0 %vm238_vm1, %v7745_v31 }
  0x92   : > { %6591 = vmatprep.mubr.msk.f32.mxu1 %vm238_vm1, %v888_v3  ;;  %6815 = vmatprep.mubr.msk.f32.mxu0 %vm238_vm1, %v7750_v0  ;;  %v9238_v3 = vld [vmem:[#allocation22_spill] sm:$0xff] }
  0x95   : > { %6592 = vmatmul.mubr.msk.f32.vlgmr.msra.gmra.mrb[0].mxu1 %vm238_vm1, %v889_v33  ;;  %6816 = vmatmul.mubr.msk.f32.gmra.mrb[16].mxu0 %vm238_vm1, %v7763_v28  ;;  %v6020_v33 = vld [vmem:[%s7274_s25 + $0x198] sm:$0xff] }
  0x96   : > { %6640 = vmatpush3.msk.msra.mxu1 %vm335_vm0, %v7575_v61  ;;  %6594 = vmatprep.mubr.msk.f32.mxu1 %vm238_vm1, %v7390_v24  ;;  %v7888_v24 = vld [vmem:[%s7274_s25 + $0x180] sm:$0xff] }
  0x97   : > { %6818 = vmatprep.mubr.msk.f32.mxu0 %vm238_vm1, %v7766_v5  ;;  %6939 = vmatprep.subr.msk.mxu1 %vm335_vm0, %v7252_v1  ;;  %v6021_v61 = vld [vmem:[%s7274_s25 + $0x1a0] sm:$0xff] }
  0x99   : > { %6595 = vmatmul.mubr.msk.f32.gmra.mrb[2].mxu1 %vm238_vm1, %v7401_v25  ;;  %6819 = vmatmul.mubr.msk.f32.gmra.mrb[18].mxu0 %vm238_vm1, %v7777_v7  ;;  %v7899_v25 = vld [vmem:[%s7274_s25 + $0x188] sm:$0xff] }
  0x9a   : > { %6597 = vmatprep.mubr.msk.f32.mxu1 %vm238_vm1, %v7407_v27  ;;  %6821 = vmatprep.mubr.msk.f32.mxu0 %vm238_vm1, %v7780_v10 }
  0x9d   : > { %6598 = vmatmul.mubr.msk.f32.gmra.mrb[4].mxu1 %vm238_vm1, %v7425_v30  ;;  %6822 = vmatmul.mubr.msk.f32.gmra.mrb[20].mxu0 %vm238_vm1, %v7791_v57 }
  0x9e   : > { %6600 = vmatprep.mubr.msk.f32.mxu1 %vm238_vm1, %v7433_v32  ;;  %6824 = vmatprep.mubr.msk.f32.mxu0 %vm238_vm1, %v7794_v51 }
  0xa1   : > { %6601 = vmatmul.mubr.msk.f32.gmra.mrb[6].mxu1 %vm238_vm1, %v7449_v34  ;;  %6825 = vmatmul.mubr.msk.f32.gmra.mrb[22].mxu0 %vm238_vm1, %v7805_v47 }
  0xa2   : > { %6603 = vmatprep.mubr.msk.f32.mxu1 %vm238_vm1, %v7455_v36  ;;  %6827 = vmatprep.mubr.msk.f32.mxu0 %vm238_vm1, %v7808_v43 }
  0xa5   : > { %6604 = vmatmul.mubr.msk.f32.gmra.mrb[8].mxu1 %vm238_vm1, %v7469_v38  ;;  %6828 = vmatmul.mubr.msk.f32.gmra.mrb[24].mxu0 %vm238_vm1, %v7819_v39 }
  0xa6   : > { %6606 = vmatprep.mubr.msk.f32.mxu1 %vm238_vm1, %v7475_v40  ;;  %6830 = vmatprep.mubr.msk.f32.mxu0 %vm238_vm1, %v7822_v35 }
  0xa9   : > { %6607 = vmatmul.mubr.msk.f32.gmra.mrb[10].mxu1 %vm238_vm1, %v7489_v42  ;;  %6831 = vmatmul.mubr.msk.f32.gmra.mrb[26].mxu0 %vm238_vm1, %v7833_v62 }
  0xaa   : > { %6609 = vmatprep.mubr.msk.f32.mxu1 %vm238_vm1, %v7495_v44  ;;  %6833 = vmatprep.mubr.msk.f32.mxu0 %vm238_vm1, %v7888_v24 }
  0xad   : > { %6610 = vmatmul.mubr.msk.f32.gmra.mrb[12].mxu1 %vm238_vm1, %v7509_v46  ;;  %6834 = vmatmul.mubr.msk.f32.gmra.mrb[28].mxu0 %vm238_vm1, %v7899_v25 }
  0xae   : > { %6612 = vmatprep.mubr.msk.f32.mxu1 %vm238_vm1, %v7515_v48  ;;  %6836 = vmatprep.mubr.msk.f32.mxu0 %vm238_vm1, %v6020_v33  ;;  %v9239_v33 = vld [vmem:[#allocation10_spill] sm:$0xff] }
  0xb1   : > { %6613 = vmatmul.mubr.msk.f32.gmra.mrb[14].mxu1 %vm238_vm1, %v7529_v50  ;;  %6837 = vmatmul.mubr.msk.f32.gmra.mrb[30].mxu0 %vm238_vm1, %v6021_v61  ;;  %v9240_v61 = vld [vmem:[#allocation23_spill] sm:$0xff] }
  0xb2   : > { %6615 = vmatprep.mubr.msk.f32.mxu1 %vm238_vm1, %v7535_v52  ;;  %6841 = vmatprep.mubr.msk.f32.mxu0 %vm238_vm1, %v7283_v8  ;;  %v9222_v8 = vld [vmem:[#allocation27_spill] sm:$0xff] }
  0xb5   : > { %6616 = vmatmul.mubr.msk.f32.gmra.mrb[16].mxu1 %vm238_vm1, %v7549_v54  ;;  %6842 = vmatmul.mubr.msk.f32.vlgmr.msra.gmra.mrb[0].mxu0 %vm238_vm1, %v7298_v11  ;;  %v9223_v11 = vld [vmem:[#allocation2_spill] sm:$0xff] }
  0xb6   : > { %6890 = vmatpush3.msk.msra.mxu0 %vm335_vm0, %v7734_v37  ;;  %6618 = vmatprep.mubr.msk.f32.mxu1 %vm238_vm1, %v7553_v56  ;;  %v9237_v37 = vld [vmem:[#allocation9_spill] sm:$0xff] }
  0xb7   : > { %6844 = vmatprep.mubr.msk.f32.mxu0 %vm238_vm1, %v7304_v12  ;;  %v9224_v12 = vld [vmem:[#allocation15_spill] sm:$0xff] }
  0xb9   : > { %6619 = vmatmul.mubr.msk.f32.gmra.mrb[18].mxu1 %vm238_vm1, %v7564_v58  ;;  %6845 = vmatmul.mubr.msk.f32.gmra.mrb[2].mxu0 %vm238_vm1, %v7317_v13  ;;  %v9225_v13 = vld [vmem:[#allocation3_spill] sm:$0xff] }
  0xba   : > { %6621 = vmatprep.mubr.msk.f32.mxu1 %vm238_vm1, %v7570_v60  ;;  %6847 = vmatprep.mubr.msk.f32.mxu0 %vm238_vm1, %v7320_v14  ;;  %v9226_v14 = vld [vmem:[#allocation16_spill] sm:$0xff] }
  0xbd   : > { %6622 = vmatmul.mubr.msk.f32.gmra.mrb[20].mxu1 %vm238_vm1, %v7588_v63  ;;  %6848 = vmatmul.mubr.msk.f32.gmra.mrb[4].mxu0 %vm238_vm1, %v7331_v15  ;;  %v9227_v15 = vld [vmem:[#allocation4_spill] sm:$0xff] }
  0xbe   : > { %6624 = vmatprep.mubr.msk.f32.mxu1 %vm238_vm1, %v7596_v2  ;;  %6850 = vmatprep.mubr.msk.f32.mxu0 %vm238_vm1, %v7334_v16  ;;  %v9228_v16 = vld [vmem:[#allocation17_spill] sm:$0xff] }
  0xc1   : > { %6625 = vmatmul.mubr.msk.f32.gmra.mrb[22].mxu1 %vm238_vm1, %v7612_v4  ;;  %6851 = vmatmul.mubr.msk.f32.gmra.mrb[6].mxu0 %vm238_vm1, %v7345_v17  ;;  %v9229_v17 = vld [vmem:[#allocation5_spill] sm:$0xff] }
  0xc2   : > { %6627 = vmatprep.mubr.msk.f32.mxu1 %vm238_vm1, %v7618_v6  ;;  %6853 = vmatprep.mubr.msk.f32.mxu0 %vm238_vm1, %v7348_v18  ;;  %v9230_v18 = vld [vmem:[#allocation18_spill] sm:$0xff] }
  0xc5   : > { %6628 = vmatmul.mubr.msk.f32.gmra.mrb[24].mxu1 %vm238_vm1, %v7632_v9  ;;  %6854 = vmatmul.mubr.msk.f32.gmra.mrb[8].mxu0 %vm238_vm1, %v7359_v19  ;;  %v9231_v19 = vld [vmem:[#allocation6_spill] sm:$0xff] }
  0xc6   : > { %6630 = vmatprep.mubr.msk.f32.mxu1 %vm238_vm1, %v7638_v55  ;;  %6856 = vmatprep.mubr.msk.f32.mxu0 %vm238_vm1, %v7362_v20  ;;  %v9232_v20 = vld [vmem:[#allocation19_spill] sm:$0xff] }
  0xc9   : > { %6631 = vmatmul.mubr.msk.f32.gmra.mrb[26].mxu1 %vm238_vm1, %v7652_v53  ;;  %6857 = vmatmul.mubr.msk.f32.gmra.mrb[10].mxu0 %vm238_vm1, %v7373_v21  ;;  %v9233_v21 = vld [vmem:[#allocation7_spill] sm:$0xff] }
  0xca   : > { %6633 = vmatprep.mubr.msk.f32.mxu1 %vm238_vm1, %v7658_v49  ;;  %6859 = vmatprep.mubr.msk.f32.mxu0 %vm238_vm1, %v7376_v22  ;;  %v9235_v22 = vld [vmem:[#allocation8_spill] sm:$0xff] }
  0xcd   : > { %6634 = vmatmul.mubr.msk.f32.gmra.mrb[28].mxu1 %vm238_vm1, %v7672_v45  ;;  %6860 = vmatmul.mubr.msk.f32.gmra.mrb[12].mxu0 %vm238_vm1, %v7387_v23  ;;  %v9236_v23 = vld [vmem:[#allocation21_spill] sm:$0xff] }
  0xce   : > { %6636 = vmatprep.mubr.msk.f32.mxu1 %vm238_vm1, %v7678_v41  ;;  %6862 = vmatprep.mubr.msk.f32.mxu0 %vm238_vm1, %v7404_v26 }
  0xd1   : > { %6637 = vmatmul.mubr.msk.f32.gmra.mrb[30].mxu1 %vm238_vm1, %v9222_v8  ;;  %6863 = vmatmul.mubr.msk.f32.gmra.mrb[14].mxu0 %vm238_vm1, %v9223_v11  ;;  %v9249_v8 = vld [vmem:[#allocation30_spill] sm:$0xff] }
  0xd2   : > { %6641 = vmatprep.mubr.msk.f32.mxu1 %vm238_vm1, %v9224_v12  ;;  %6865 = vmatprep.mubr.msk.f32.mxu0 %vm238_vm1, %v9225_v13  ;;  %v9241_v12 = vld [vmem:[#allocation11_spill] sm:$0xff] }
  0xd5   : > { %6642 = vmatmul.mubr.msk.f32.vlgmr.msra.gmra.mrb[0].mxu1 %vm238_vm1, %v9226_v14  ;;  %6866 = vmatmul.mubr.msk.f32.gmra.mrb[16].mxu0 %vm238_vm1, %v9227_v15  ;;  %v9242_v14 = vld [vmem:[#allocation24_spill] sm:$0xff] }
  0xd6   : > { %6940 = vmatpush3.msk.msra.mxu1 %vm335_vm0, %v7252_v1  ;;  %6644 = vmatprep.mubr.msk.f32.mxu1 %vm238_vm1, %v9228_v16  ;;  %v9234_v1 = vld [vmem:[#allocation20_spill] sm:$0xff] }
  0xd7   : > { %6868 = vmatprep.mubr.msk.f32.mxu0 %vm238_vm1, %v9229_v17  ;;  %v9243_v16 = vld [vmem:[#allocation12_spill] sm:$0xff] }
  0xd9   : > { %6645 = vmatmul.mubr.msk.f32.gmra.mrb[2].mxu1 %vm238_vm1, %v9230_v18  ;;  %6869 = vmatmul.mubr.msk.f32.gmra.mrb[18].mxu0 %vm238_vm1, %v9231_v19  ;;  %v9244_v18 = vld [vmem:[#allocation25_spill] sm:$0xff] }
  0xda   : > { %6647 = vmatprep.mubr.msk.f32.mxu1 %vm238_vm1, %v9232_v20  ;;  %6871 = vmatprep.mubr.msk.f32.mxu0 %vm238_vm1, %v9233_v21  ;;  %v9245_v20 = vld [vmem:[#allocation13_spill] sm:$0xff] }
  0xdd   : > { %6648 = vmatmul.mubr.msk.f32.gmra.mrb[4].mxu1 %vm238_vm1, %v9234_v1  ;;  %6872 = vmatmul.mubr.msk.f32.gmra.mrb[20].mxu0 %vm238_vm1, %v9235_v22  ;;  %v8026_v1 = vld [vmem:[%s7274_s25 + $0x181] sm:$0xff] }
  0xde   : > { %6650 = vmatprep.mubr.msk.f32.mxu1 %vm238_vm1, %v9236_v23  ;;  %6874 = vmatprep.mubr.msk.f32.mxu0 %vm238_vm1, %v9237_v37  ;;  %v9246_v23 = vld [vmem:[#allocation26_spill] sm:$0xff] }
  0xe1   : > { %6651 = vmatmul.mubr.msk.f32.gmra.mrb[6].mxu1 %vm238_vm1, %v9238_v3  ;;  %6875 = vmatmul.mubr.msk.f32.gmra.mrb[22].mxu0 %vm238_vm1, %v9239_v33  ;;  %v9247_v3 = vld [vmem:[#allocation14_spill] sm:$0xff] }
  0xe2   : > { %6653 = vmatprep.mubr.msk.f32.mxu1 %vm238_vm1, %v9240_v61  ;;  %6877 = vmatprep.mubr.msk.f32.mxu0 %vm238_vm1, %v9241_v12  ;;  %v9248_v61 = vld [vmem:[#allocation28_spill] sm:$0xff] }
  0xe5   : > { %6654 = vmatmul.mubr.msk.f32.gmra.mrb[8].mxu1 %vm238_vm1, %v9242_v14  ;;  %6878 = vmatmul.mubr.msk.f32.gmra.mrb[24].mxu0 %vm238_vm1, %v9243_v16  ;;  %v8037_v14 = vld [vmem:[%s7274_s25 + $0x189] sm:$0xff] }
  0xe6   : > { %6656 = vmatprep.mubr.msk.f32.mxu1 %vm238_vm1, %v9244_v18  ;;  %6880 = vmatprep.mubr.msk.f32.mxu0 %vm238_vm1, %v9245_v20  ;;  %v6086_v18 = vld [vmem:[%s7274_s25 + $0x199] sm:$0xff] }
  0xe9   : > { %6657 = vmatmul.mubr.msk.f32.gmra.mrb[10].mxu1 %vm238_vm1, %v9246_v23  ;;  %6881 = vmatmul.mubr.msk.f32.gmra.mrb[26].mxu0 %vm238_vm1, %v9247_v3  ;;  %v6087_v23 = vld [vmem:[%s7274_s25 + $0x1a1] sm:$0xff]  ;;  %v9250_v3 = vld [vmem:[#allocation32_spill] sm:$0xff] }
  0xea   : > { %6659 = vmatprep.mubr.msk.f32.mxu1 %vm238_vm1, %v9248_v61  ;;  %6883 = vmatprep.mubr.msk.f32.mxu0 %vm238_vm1, %v8026_v1 }
  0xed   : > { %6660 = vmatmul.mubr.msk.f32.gmra.mrb[12].mxu1 %vm238_vm1, %v9249_v8  ;;  %6884 = vmatmul.mubr.msk.f32.gmra.mrb[28].mxu0 %vm238_vm1, %v8037_v14 }
  0xee   : > { %6662 = vmatprep.mubr.msk.f32.mxu1 %vm238_vm1, %v7715_v59  ;;  %6886 = vmatprep.mubr.msk.f32.mxu0 %vm238_vm1, %v6086_v18  ;;  %v8206_v59 = vld [vmem:[%s9144_s2] ss:$0 sm:$0xff] }
  0xf1   : > { %6663 = vmatmul.mubr.msk.f32.gmra.mrb[14].mxu1 %vm238_vm1, %v9250_v3  ;;  %6887 = vmatmul.mubr.msk.f32.gmra.mrb[30].mxu0 %vm238_vm1, %v6087_v23 }
  0xf2   : > { %6665 = vmatprep.mubr.msk.f32.mxu1 %vm238_vm1, %v7729_v29  ;;  %6891 = vmatprep.mubr.msk.f32.mxu0 %vm238_vm1, %v7407_v27  ;;  %v9252_v27 = vld [vmem:[#allocation29_spill] sm:$0xff] }
  0xf3   : > { %v6152_v29 = vld [vmem:[%s7274_s25 + $0x19a] sm:$0xff] }
  0xf5   : > { %6666 = vmatmul.mubr.msk.f32.gmra.mrb[16].mxu1 %vm238_vm1, %v7745_v31  ;;  %6892 = vmatmul.mubr.msk.f32.vlgmr.msra.gmra.mrb[0].mxu0 %vm238_vm1, %v7425_v30  ;;  %v9253_v30 = vld [vmem:[#allocation14_spill] sm:$0xff]  ;;  %v9254_v31 = vld [vmem:[#allocation31_spill] sm:$0xff] }
  0xf6   : > { %6668 = vmatprep.mubr.msk.f32.mxu1 %vm238_vm1, %v7750_v0  ;;  %6894 = vmatprep.mubr.msk.f32.mxu0 %vm238_vm1, %v7433_v32  ;;  %v6153_v32 = vld [vmem:[%s7274_s25 + $0x1a2] sm:$0xff] }
  0xf9   : > { %6669 = vmatmul.mubr.msk.f32.gmra.mrb[18].mxu1 %vm238_vm1, %v7763_v28  ;;  %6895 = vmatmul.mubr.msk.f32.gmra.mrb[2].mxu0 %vm238_vm1, %v7449_v34 }
  0xfa   : > { %6671 = vmatprep.mubr.msk.f32.mxu1 %vm238_vm1, %v7766_v5  ;;  %6897 = vmatprep.mubr.msk.f32.mxu0 %vm238_vm1, %v7455_v36 }
  0xfd   : > { %6672 = vmatmul.mubr.msk.f32.gmra.mrb[20].mxu1 %vm238_vm1, %v7777_v7  ;;  %6898 = vmatmul.mubr.msk.f32.gmra.mrb[4].mxu0 %vm238_vm1, %v7469_v38 }
  0xfe   : > { %6674 = vmatprep.mubr.msk.f32.mxu1 %vm238_vm1, %v7780_v10  ;;  %6900 = vmatprep.mubr.msk.f32.mxu0 %vm238_vm1, %v7475_v40 }
 0x101   : > { %6675 = vmatmul.mubr.msk.f32.gmra.mrb[22].mxu1 %vm238_vm1, %v7791_v57  ;;  %6901 = vmatmul.mubr.msk.f32.gmra.mrb[6].mxu0 %vm238_vm1, %v7489_v42 }
 0x102   : > { %6677 = vmatprep.mubr.msk.f32.mxu1 %vm238_vm1, %v7794_v51  ;;  %6903 = vmatprep.mubr.msk.f32.mxu0 %vm238_vm1, %v7495_v44  ;;  %v3727_v51 = vlaneseq }
 0x105   : > { %6678 = vmatmul.mubr.msk.f32.gmra.mrb[24].mxu1 %vm238_vm1, %v7805_v47  ;;  %6904 = vmatmul.mubr.msk.f32.gmra.mrb[8].mxu0 %vm238_vm1, %v7509_v46 }
 0x106   : > { %6680 = vmatprep.mubr.msk.f32.mxu1 %vm238_vm1, %v7808_v43  ;;  %6906 = vmatprep.mubr.msk.f32.mxu0 %vm238_vm1, %v7515_v48 }
 0x109   : > { %6681 = vmatmul.mubr.msk.f32.gmra.mrb[26].mxu1 %vm238_vm1, %v7819_v39  ;;  %6907 = vmatmul.mubr.msk.f32.gmra.mrb[10].mxu0 %vm238_vm1, %v7529_v50 }
 0x10a   : > { %6683 = vmatprep.mubr.msk.f32.mxu1 %vm238_vm1, %v7822_v35  ;;  %6909 = vmatprep.mubr.msk.f32.mxu0 %vm238_vm1, %v7535_v52 }
 0x10d   : > { %6684 = vmatmul.mubr.msk.f32.gmra.mrb[28].mxu1 %vm238_vm1, %v7833_v62  ;;  %6910 = vmatmul.mubr.msk.f32.gmra.mrb[12].mxu0 %vm238_vm1, %v7549_v54 }
 0x10e   : > { %6686 = vmatprep.mubr.msk.f32.mxu1 %vm238_vm1, %v7888_v24  ;;  %6912 = vmatprep.mubr.msk.f32.mxu0 %vm238_vm1, %v7553_v56  ;;  %v3728_v56 = vshrl.u32 %v3727_v51, 7 }
 0x111   : > { %6687 = vmatmul.mubr.msk.f32.gmra.mrb[30].mxu1 %vm238_vm1, %v7899_v25  ;;  %6913 = vmatmul.mubr.msk.f32.gmra.mrb[14].mxu0 %vm238_vm1, %v7564_v58 }
 0x112   : > { %6715 = vmatprep.mubr.msk.f32.mxu1 %vm238_vm1, %v7404_v26  ;;  %6915 = vmatprep.mubr.msk.f32.mxu0 %vm238_vm1, %v7570_v60  ;;  %v9251_v26 = vld [vmem:[#allocation27_spill] sm:$0xff] }
 0x115   : > { %6716 = vmatmul.mubr.msk.f32.vlgmr.msra.gmra.mrb[16].mxu1 %vm238_vm1, %v9223_v11  ;;  %6916 = vmatmul.mubr.msk.f32.gmra.mrb[16].mxu0 %vm238_vm1, %v7588_v63 }
 0x116   : > { %6718 = vmatprep.mubr.msk.f32.mxu1 %vm238_vm1, %v9225_v13  ;;  %6918 = vmatprep.mubr.msk.f32.mxu0 %vm238_vm1, %v7596_v2 }
 0x119   : > { %6719 = vmatmul.mubr.msk.f32.gmra.mrb[18].mxu1 %vm238_vm1, %v9227_v15  ;;  %6919 = vmatmul.mubr.msk.f32.gmra.mrb[18].mxu0 %vm238_vm1, %v7612_v4 }
 0x11a   : > { %6721 = vmatprep.mubr.msk.f32.mxu1 %vm238_vm1, %v9229_v17  ;;  %6921 = vmatprep.mubr.msk.f32.mxu0 %vm238_vm1, %v7618_v6 }
 0x11d   : > { %6722 = vmatmul.mubr.msk.f32.gmra.mrb[20].mxu1 %vm238_vm1, %v9231_v19  ;;  %6922 = vmatmul.mubr.msk.f32.gmra.mrb[20].mxu0 %vm238_vm1, %v7632_v9 }
 0x11e   : > { %6724 = vmatprep.mubr.msk.f32.mxu1 %vm238_vm1, %v9233_v21  ;;  %6924 = vmatprep.mubr.msk.f32.mxu0 %vm238_vm1, %v7638_v55 }
 0x121   : > { %6725 = vmatmul.mubr.msk.f32.gmra.mrb[22].mxu1 %vm238_vm1, %v9235_v22  ;;  %6925 = vmatmul.mubr.msk.f32.gmra.mrb[22].mxu0 %vm238_vm1, %v7652_v53 }
 0x122   : > { %6727 = vmatprep.mubr.msk.f32.mxu1 %vm238_vm1, %v9237_v37  ;;  %6927 = vmatprep.mubr.msk.f32.mxu0 %vm238_vm1, %v7658_v49  ;;  %v7217_v49 = vmov 1983009808  }
 0x123   : > { %v3725_v50 = vunpack.c.l.s4 %v7217_v49 }
 0x125   : > { %6728 = vmatmul.mubr.msk.f32.gmra.mrb[24].mxu1 %vm238_vm1, %v9239_v33  ;;  %6928 = vmatmul.mubr.msk.f32.gmra.mrb[24].mxu0 %vm238_vm1, %v7672_v45  ;;  %v3726_v54 = vunpack.c.0.s8 %v3725_v50 }
 0x126   : > { %6730 = vmatprep.mubr.msk.f32.mxu1 %vm238_vm1, %v9241_v12  ;;  %6930 = vmatprep.mubr.msk.f32.mxu0 %vm238_vm1, %v7678_v41 }
 0x127   : > { %v8209_v2 = vsub.s32 %v3726_v54, %v3728_v56 }
 0x129   : > { %6731 = vmatmul.mubr.msk.f32.gmra.mrb[26].mxu1 %vm238_vm1, %v9243_v16  ;;  %6931 = vmatmul.mubr.msk.f32.gmra.mrb[26].mxu0 %vm238_vm1, %v9251_v26 }
 0x12a   : > { %6733 = vmatprep.mubr.msk.f32.mxu1 %vm238_vm1, %v9245_v20  ;;  %6933 = vmatprep.mubr.msk.f32.mxu0 %vm238_vm1, %v9252_v27 }
 0x12d   : > { %6734 = vmatmul.mubr.msk.f32.gmra.mrb[28].mxu1 %vm238_vm1, %v9253_v30  ;;  %6934 = vmatmul.mubr.msk.f32.gmra.mrb[28].mxu0 %vm238_vm1, %v9254_v31 }
 0x12e   : > { %6736 = vmatprep.mubr.msk.f32.mxu1 %vm238_vm1, %v8026_v1  ;;  %6936 = vmatprep.mubr.msk.f32.mxu0 %vm238_vm1, %v6152_v29 }
 0x131   : > { %6737 = vmatmul.mubr.msk.f32.gmra.mrb[30].mxu1 %vm238_vm1, %v8037_v14  ;;  %6937 = vmatmul.mubr.msk.f32.gmra.mrb[30].mxu0 %vm238_vm1, %v6153_v32 }
 0x1a8   : > { %v6643_v34 = vpop.f32.mrb[0].mxu1 }
 0x1a9   : > { %v1478_v35 = vpop.f32.mrb[1].mxu1 }
 0x1ac   : > { %v6646_v36 = vpop.f32.mrb[2].mxu1 }
 0x1ad   : > { %v1488_v38 = vpop.f32.mrb[3].mxu1 }
 0x1b0   : > { %v8179_v39 = vpop.f32.mrb[4].mxu1 }
 0x1b1   : > { %v8181_v40 = vpop.f32.mrb[5].mxu1 }
 0x1b4   : > { %v8183_v41 = vpop.f32.mrb[6].mxu1 }
 0x1b5   : > { %v8185_v42 = vpop.f32.mrb[7].mxu1 }
 0x1b8   : > { %v8187_v43 = vpop.f32.mrb[8].mxu1 }
 0x1b9   : > { %v8189_v44 = vpop.f32.mrb[9].mxu1 }
 0x1bc   : > { %v8191_v45 = vpop.f32.mrb[10].mxu1 }
 0x1bd   : > { %v8193_v46 = vpop.f32.mrb[11].mxu1 }
 0x1c0   : > { %v8195_v47 = vpop.f32.mrb[12].mxu1 }
 0x1c1   : > { %v8197_v48 = vpop.f32.mrb[13].mxu1 }
 0x1c4   : > { %v8199_v52 = vpop.f32.mrb[14].mxu1 }
 0x1c5   : > { %v8201_v53 = vpop.f32.mrb[15].mxu1 }
 0x1c8   : > { %v6893_v58 = vpop.f32.mrb[0].mxu0 }
 0x1c9   : > { %v6941_v60 = vadd.f32 %v6893_v58, %v6643_v34  ;;  %v3429_v62 = vpop.f32.mrb[1].mxu0 }
 0x1ca   : > { %v6942_v63 = vadd.f32 %v3429_v62, %v1478_v35 }
 0x1cb   : > { %v3628_v0 = vadd.f32 %v6941_v60, %v8206_v59 }
 0x1cc   : > { %v3627_v4 = vadd.f32 %v6942_v63, %v8206_v59  ;;  %v6896_v5 = vpop.f32.mrb[2].mxu0 }
 0x1cd   : > { %v3660_v6 = vmax.f32 %v3628_v0, 0.0  ;;  %v6943_v7 = vadd.f32 %v6896_v5, %v6646_v36  ;;  %v3439_v9 = vpop.f32.mrb[3].mxu0 }
 0x1ce   : > { %v3659_v10 = vmax.f32 %v3627_v4, 0.0  ;;  %v6944_v55 = vadd.f32 %v3439_v9, %v1488_v38 }
 0x1cf   : > { %v3740_v57 = vcombine.high %v3660_v6, %v3660_v6  ;;  %v3747_v28 = vrot.slane %v3660_v6, %v8209_v2  ;;  %v3630_v24 = vadd.f32 %v6943_v7, %v8206_v59 }
 0x1d0   : > { %v3723_v25 = vcombine.high %v3659_v10, %v3659_v10  ;;  %v3730_v8 = vrot.slane %v3659_v10, %v8209_v2  ;;  %v8216_v11 = vadd.f32 %v6944_v55, %v8206_v59  ;;  %v8218_v13 = vpop.f32.mrb[4].mxu0 }
 0x1d1   : > { %v3754_v15 = vrot.slane %v3740_v57, %v8209_v2  ;;  %v3755_v17 = vcombine.high %v3747_v28, %v3747_v28  ;;  %v4424_v19 = vsel %vm4395_vm2, %v3747_v28, -inf  ;;  %v8222_v21 = vmax.f32 %v3630_v24, 0.0  ;;  %v8224_v22 = vpop.f32.mrb[5].mxu0 }
 0x1d2   : > { %v4425_v37 = vrot.slane %v4424_v19, 4  ;;  %v3737_v33 = vrot.slane %v3723_v25, %v8209_v2  ;;  %v3738_v12 = vcombine.high %v3730_v8, %v3730_v8  ;;  %v4396_v16 = vsel %vm4395_vm2, %v3730_v8, -inf }
 0x1d3   : > { %v3756_v20 = vcombine.high %v3754_v15, %v3754_v15  ;;  %v4431_v1 = vsel %vm4395_vm2, %v3755_v17, -inf  ;;  %v4438_v3 = vsel %vm4395_vm2, %v3754_v15, -inf  ;;  %v4397_v61 = vrot.slane %v4396_v16, 4 }
 0x1d4   : > { %v4426_v14 = vmax.f32 %v4424_v19, %v4425_v37  ;;  %v4432_v18 = vrot.slane %v4431_v1, 4  ;;  %v4439_v23 = vrot.slane %v4438_v3, 4  ;;  %v3739_v26 = vcombine.high %v3737_v33, %v3737_v33  ;;  %v8230_v27 = vpop.f32.mrb[6].mxu0 }
 0x1d5   : > { %v4445_v29 = vsel %vm4395_vm2, %v3756_v20, -inf  ;;  %v4398_v30 = vmax.f32 %v4396_v16, %v4397_v61  ;;  %v4403_v31 = vsel %vm4395_vm2, %v3738_v12, -inf  ;;  %v4410_v32 = vsel %vm4395_vm2, %v3737_v33, -inf  ;;  %v8235_v34 = vpop.f32.mrb[7].mxu0 }
 0x1d6   : > { %v4427_v35 = vrot.slane %v4426_v14, 2  ;;  %v4433_v36 = vmax.f32 %v4431_v1, %v4432_v18  ;;  %v4440_v38 = vmax.f32 %v4438_v3, %v4439_v23  ;;  %v4446_v49 = vrot.slane %v4445_v29, 4 }
 0x1d7   : > { %v4399_v50 = vrot.slane %v4398_v30, 2  ;;  %v4404_v51 = vrot.slane %v4403_v31, 4  ;;  %v4411_v54 = vrot.slane %v4410_v32, 4  ;;  %v4417_v56 = vsel %vm4395_vm2, %v3739_v26, -inf }
 0x1d8   : > { %v4428_v58 = vmax.f32 %v4426_v14, %v4427_v35  ;;  %v4434_v60 = vrot.slane %v4433_v36, 2  ;;  %v4441_v62 = vrot.slane %v4440_v38, 2  ;;  %v4447_v63 = vmax.f32 %v4445_v29, %v4446_v49  ;;  %v8238_v0 = vpop.f32.mrb[8].mxu0 }
 0x1d9   : > { %v4400_v4 = vmax.f32 %v4398_v30, %v4399_v50  ;;  %v4405_v5 = vmax.f32 %v4403_v31, %v4404_v51  ;;  %v4412_v6 = vmax.f32 %v4410_v32, %v4411_v54  ;;  %v4418_v7 = vrot.slane %v4417_v56, 4  ;;  %v8240_v9 = vpop.f32.mrb[9].mxu0 }
 0x1da   : > { %v4429_v10 = vrot.slane %v4428_v58, 1  ;;  %v4435_v55 = vmax.f32 %v4433_v36, %v4434_v60  ;;  %v4442_v57 = vmax.f32 %v4440_v38, %v4441_v62  ;;  %v4448_v28 = vrot.slane %v4447_v63, 2 }
 0x1db   : > { %v4401_v24 = vrot.slane %v4400_v4, 1  ;;  %v4406_v25 = vrot.slane %v4405_v5, 2  ;;  %v4413_v8 = vrot.slane %v4412_v6, 2  ;;  %v4419_v15 = vmax.f32 %v4417_v56, %v4418_v7 }
 0x1dc   : > { %v4430_v17 = vmax.f32 %v4428_v58, %v4429_v10  ;;  %v4436_v19 = vrot.slane %v4435_v55, 1  ;;  %v4443_v37 = vrot.slane %v4442_v57, 1  ;;  %v4449_v33 = vmax.f32 %v4447_v63, %v4448_v28  ;;  %v8242_v12 = vpop.f32.mrb[10].mxu0 }
 0x1dd   : > { %v4402_v16 = vmax.f32 %v4400_v4, %v4401_v24  ;;  %v4407_v20 = vmax.f32 %v4405_v5, %v4406_v25  ;;  %v4414_v1 = vmax.f32 %v4412_v6, %v4413_v8  ;;  %v4420_v3 = vrot.slane %v4419_v15, 2  ;;  %v8244_v61 = vpop.f32.mrb[11].mxu0 }
 0x1de   : > { %v4437_v14 = vmax.f32 %v4435_v55, %v4436_v19  ;;  %v4444_v18 = vmax.f32 %v4442_v57, %v4443_v37  ;;  %v4450_v23 = vrot.slane %v4449_v33, 1  ;;  %v8247_v26 = vsel %vm5292_vm3, %v4430_v17, -inf }
 0x1df   : > { %v4408_v29 = vrot.slane %v4407_v20, 1  ;;  %v4415_v30 = vrot.slane %v4414_v1, 1  ;;  %v4421_v31 = vmax.f32 %v4419_v15, %v4420_v3  ;;  %v8250_v32 = vsel %vm5292_vm3, %v4402_v16, -inf }
 0x1e0   : > { %v4451_v35 = vmax.f32 %v4449_v33, %v4450_v23  ;;  %v8253_v36 = vsel %vm5292_vm3, %v4437_v14, -inf  ;;  %v8256_v38 = vsel %vm5292_vm3, %v4444_v18, -inf  ;;  %v3774_v49 = vcombine.high %v8222_v21, %v8222_v21  ;;  %v8260_v50 = vpop.f32.mrb[12].mxu0 }
 0x1e1   : > { %v4409_v51 = vmax.f32 %v4407_v20, %v4408_v29  ;;  %v4416_v54 = vmax.f32 %v4414_v1, %v4415_v30  ;;  %v4422_v56 = vrot.slane %v4421_v31, 1  ;;  %v3781_v58 = vrot.slane %v8222_v21, %v8209_v2  ;;  %v8264_v60 = vpop.f32.mrb[13].mxu0 }
 0x1e2   : > { %v8267_v62 = vsel %vm5292_vm3, %v4451_v35, -inf  ;;  %v3788_v63 = vrot.slane %v3774_v49, %v8209_v2  ;;  %v3661_v4 = vmax.f32 %v8216_v11, 0.0  ;;  %v6945_v5 = vadd.f32 %v8218_v13, %v8179_v39 }
 0x1e3   : > { %v4423_v6 = vmax.f32 %v4421_v31, %v4422_v56  ;;  %v8274_v7 = vsel %vm5292_vm3, %v4409_v51, -inf  ;;  %v8277_v10 = vsel %vm5292_vm3, %v4416_v54, -inf  ;;  %v3789_v21 = vcombine.high %v3781_v58, %v3781_v58 }
 0x1e4   : > { %v3790_v55 = vcombine.high %v3788_v63, %v3788_v63  ;;  %v4480_v57 = vsel %vm4395_vm2, %v3781_v58, -inf  ;;  %v4494_v28 = vsel %vm4395_vm2, %v3788_v63, -inf  ;;  %v3757_v24 = vcombine.high %v3661_v4, %v3661_v4  ;;  %v8281_v25 = vpop.f32.mrb[14].mxu0 }
 0x1e5   : > { %v8284_v11 = vsel %vm5292_vm3, %v4423_v6, -inf  ;;  %v4481_v39 = vrot.slane %v4480_v57, 4  ;;  %v4487_v13 = vsel %vm4395_vm2, %v3789_v21, -inf  ;;  %v4495_v8 = vrot.slane %v4494_v28, 4  ;;  %v8287_v15 = vpop.f32.mrb[15].mxu0 }
 0x1e6   : > { %9255 = vst [vmem:[#allocation2_spill] sm:$0xff] %v8287_v15  ;;  %v4488_v17 = vrot.slane %v4487_v13, 4  ;;  %v4501_v19 = vsel %vm4395_vm2, %v3790_v55, -inf  ;;  %v3764_v37 = vrot.slane %v3661_v4, %v8209_v2  ;;  %v3771_v33 = vrot.slane %v3757_v24, %v8209_v2 }
 0x1e7   : > { %v4482_v16 = vmax.f32 %v4480_v57, %v4481_v39  ;;  %v4496_v20 = vmax.f32 %v4494_v28, %v4495_v8  ;;  %v4502_v1 = vrot.slane %v4501_v19, 4  ;;  %v3632_v3 = vadd.f32 %v6945_v5, %v8206_v59 }
 0x1e8   : > { %v4489_v14 = vmax.f32 %v4487_v13, %v4488_v17  ;;  %v3772_v18 = vcombine.high %v3764_v37, %v3764_v37  ;;  %v3773_v23 = vcombine.high %v3771_v33, %v3771_v33  ;;  %v4452_v29 = vsel %vm4395_vm2, %v3764_v37, -inf  ;;  %v8294_v30 = vpop.f32.mrb[16].mxu1  ;;  %v8296_v31 = vpop.f32.mrb[16].mxu0 }
 0x1e9   : > { %9256 = vst [vmem:[#allocation15_spill] sm:$0xff] %v8294_v30  ;;  %9257 = vst [vmem:[#allocation3_spill] sm:$0xff] %v8296_v31  ;;  %v4483_v35 = vrot.slane %v4482_v16, 2  ;;  %v4497_v49 = vrot.slane %v4496_v20, 2  ;;  %v4503_v51 = vmax.f32 %v4501_v19, %v4502_v1  ;;  %v4453_v54 = vrot.slane %v4452_v29, 4 }
 0x1ea   : > { %v4490_v56 = vrot.slane %v4489_v14, 2  ;;  %v4459_v58 = vsel %vm4395_vm2, %v3772_v18, -inf  ;;  %v4466_v63 = vsel %vm4395_vm2, %v3771_v33, -inf  ;;  %v4473_v4 = vsel %vm4395_vm2, %v3773_v23, -inf }
 0x1eb   : > { %v4484_v5 = vmax.f32 %v4482_v16, %v4483_v35  ;;  %v4498_v6 = vmax.f32 %v4496_v20, %v4497_v49  ;;  %v4504_v21 = vrot.slane %v4503_v51, 2  ;;  %v4454_v55 = vmax.f32 %v4452_v29, %v4453_v54 }
 0x1ec   : > { %v4491_v57 = vmax.f32 %v4489_v14, %v4490_v56  ;;  %v4460_v28 = vrot.slane %v4459_v58, 4  ;;  %v4467_v24 = vrot.slane %v4466_v63, 4  ;;  %v4474_v39 = vrot.slane %v4473_v4, 4 }
 0x1ed   : > { %v4485_v13 = vrot.slane %v4484_v5, 1  ;;  %v4499_v8 = vrot.slane %v4498_v6, 1  ;;  %v4505_v17 = vmax.f32 %v4503_v51, %v4504_v21  ;;  %v4455_v19 = vrot.slane %v4454_v55, 2 }
 0x1ee   : > { %v4492_v37 = vrot.slane %v4491_v57, 1  ;;  %v4461_v1 = vmax.f32 %v4459_v58, %v4460_v28  ;;  %v4468_v31 = vmax.f32 %v4466_v63, %v4467_v24  ;;  %v4475_v18 = vmax.f32 %v4473_v4, %v4474_v39 }
 0x1ef   : > { %v4486_v30 = vmax.f32 %v4484_v5, %v4485_v13  ;;  %v4500_v33 = vmax.f32 %v4498_v6, %v4499_v8  ;;  %v4506_v15 = vrot.slane %v4505_v17, 1  ;;  %v4456_v23 = vmax.f32 %v4454_v55, %v4455_v19  ;;  %v8309_v5 = vpop.f32.mrb[17].mxu1  ;;  %v8311_v6 = vpop.f32.mrb[17].mxu0 }
 0x1f0   : > { %v4493_v16 = vmax.f32 %v4491_v57, %v4492_v37  ;;  %v4462_v20 = vrot.slane %v4461_v1, 2  ;;  %v4469_v35 = vrot.slane %v4468_v31, 2  ;;  %v4476_v29 = vrot.slane %v4475_v18, 2 }
 0x1f1   : > { %v4507_v14 = vmax.f32 %v4505_v17, %v4506_v15  ;;  %v5306_v49 = vsel %vm5292_vm3, %v4486_v30, -inf  ;;  %v8303_v54 = vsel %vm5292_vm3, %v4500_v33, -inf  ;;  %v4457_v51 = vrot.slane %v4456_v23, 1 }
 0x1f2   : > { %v5307_v56 = vmax.f32 %v8247_v26, %v5306_v49  ;;  %v5309_v58 = vsel %vm5292_vm3, %v4493_v16, -inf  ;;  %v5313_v63 = vmax.f32 %v8256_v38, %v8303_v54  ;;  %v4463_v4 = vmax.f32 %v4461_v1, %v4462_v20  ;;  %v8366_v38 = vpop.f32.mrb[18].mxu0 }
 0x1f3   : > { %v5310_v15 = vmax.f32 %v8253_v36, %v5309_v58  ;;  %v8315_v30 = vsel %vm5292_vm3, %v4507_v14, -inf  ;;  %v4458_v21 = vmax.f32 %v4456_v23, %v4457_v51  ;;  %v4470_v55 = vmax.f32 %v4468_v31, %v4469_v35 }
 0x1f4   : > { %v5316_v26 = vmax.f32 %v8267_v62, %v8315_v30  ;;  %v4464_v57 = vrot.slane %v4463_v4, 1  ;;  %v4477_v28 = vmax.f32 %v4475_v18, %v4476_v29  ;;  %v3664_v24 = vmax.f32 %v3632_v3, 0.0 }
 0x1f5   : > { %v4471_v39 = vrot.slane %v4470_v55, 1  ;;  %v5294_v13 = vsel %vm5292_vm3, %v4458_v21, -inf  ;;  %v6946_v36 = vadd.f32 %v8224_v22, %v8181_v40  ;;  %v6947_v8 = vadd.f32 %v8230_v27, %v8183_v41 }
 0x1f6   : > { %v4465_v17 = vmax.f32 %v4463_v4, %v4464_v57  ;;  %v4478_v31 = vrot.slane %v4477_v28, 1  ;;  %v5295_v19 = vmax.f32 %v8250_v32, %v5294_v13  ;;  %v3808_v62 = vcombine.high %v3664_v24, %v3664_v24 }
 0x1f7   : > { %v4472_v37 = vmax.f32 %v4470_v55, %v4471_v39  ;;  %v3815_v1 = vrot.slane %v3664_v24, %v8209_v2  ;;  %v3631_v3 = vadd.f32 %v6946_v36, %v8206_v59  ;;  %v3634_v18 = vadd.f32 %v6947_v8, %v8206_v59 }
 0x1f8   : > { %v4479_v33 = vmax.f32 %v4477_v28, %v4478_v31  ;;  %v5297_v40 = vsel %vm5292_vm3, %v4465_v17, -inf  ;;  %v3822_v22 = vrot.slane %v3808_v62, %v8209_v2  ;;  %v8332_v41 = vadd.f32 %v8235_v34, %v8185_v42 }
 0x1f9   : > { %v5298_v27 = vmax.f32 %v8274_v7, %v5297_v40  ;;  %v5300_v32 = vsel %vm5292_vm3, %v4472_v37, -inf  ;;  %v3823_v23 = vcombine.high %v3815_v1, %v3815_v1  ;;  %v4536_v16 = vsel %vm4395_vm2, %v3815_v1, -inf }
 0x1fa   : > { %v5301_v20 = vmax.f32 %v8277_v10, %v5300_v32  ;;  %v5303_v35 = vsel %vm5292_vm3, %v4479_v33, -inf  ;;  %v3824_v29 = vcombine.high %v3822_v22, %v3822_v22  ;;  %v4537_v14 = vrot.slane %v4536_v16, 4 }
 0x1fb   : > { %v5304_v49 = vmax.f32 %v8284_v11, %v5303_v35  ;;  %v5550_v51 = vsel %vm5549_vm4, %v5298_v27, %v5295_v19  ;;  %v4543_v42 = vsel %vm4395_vm2, %v3823_v23, -inf  ;;  %v4550_v34 = vsel %vm4395_vm2, %v3822_v22, -inf  ;;  %v8364_v27 = vpop.f32.mrb[18].mxu1 }
 0x1fc   : > { %v5552_v7 = vsel %vm5551_vm5, %v5301_v20, %v5550_v51  ;;  %v4538_v58 = vmax.f32 %v4536_v16, %v4537_v14  ;;  %v4544_v4 = vrot.slane %v4543_v42, 4  ;;  %v4551_v30 = vrot.slane %v4550_v34, 4 }
 0x1fd   : > { %v5554_v10 = vsel %vm5553_vm6, %v5304_v49, %v5552_v7  ;;  %v4557_v21 = vsel %vm4395_vm2, %v3824_v29, -inf  ;;  %v3663_v55 = vmax.f32 %v3631_v3, 0.0  ;;  %v3666_v57 = vmax.f32 %v3634_v18, 0.0 }
 0x1fe   : > { %v5556_v11 = vsel %vm5555_vm7, %v5307_v56, %v5554_v10  ;;  %v4539_v28 = vrot.slane %v4538_v58, 2  ;;  %v4545_v24 = vmax.f32 %v4543_v42, %v4544_v4  ;;  %v4552_v39 = vmax.f32 %v4550_v34, %v4551_v30  ;;  %v8371_v42 = vpop.f32.mrb[19].mxu1  ;;  %v8373_v34 = vpop.f32.mrb[19].mxu0 }
 0x1ff   : > { %v5558_v13 = vsel %vm5557_vm8, %v5310_v15, %v5556_v11  ;;  %v4558_v36 = vrot.slane %v4557_v21, 4  ;;  %v3791_v8 = vcombine.high %v3663_v55, %v3663_v55  ;;  %v3798_v17 = vrot.slane %v3663_v55, %v8209_v2 }
 0x200   : > { %v5560_v56 = vsel %vm5559_vm9, %v5313_v63, %v5558_v13  ;;  %v4540_v31 = vmax.f32 %v4538_v58, %v4539_v28  ;;  %v4546_v19 = vrot.slane %v4545_v24, 2  ;;  %v4553_v62 = vrot.slane %v4552_v39, 2 }
 0x201   : > { %v5562_v37 = vsel %vm5561_vm10, %v5316_v26, %v5560_v56  ;;  %v4559_v1 = vmax.f32 %v4557_v21, %v4558_v36  ;;  %v3805_v3 = vrot.slane %v3791_v8, %v8209_v2  ;;  %v3806_v18 = vcombine.high %v3798_v17, %v3798_v17 }
 0x202   : > { %5620 = vst.msk [vmem:[%s8351_s13] sm:$0xff] %vm5292_vm3, %v5562_v37  ;;  %v4541_v15 = vrot.slane %v4540_v31, 1  ;;  %v4547_v33 = vmax.f32 %v4545_v24, %v4546_v19  ;;  %v4554_v40 = vmax.f32 %v4552_v39, %v4553_v62  ;;  %v4508_v22 = vsel %vm4395_vm2, %v3798_v17, -inf }
 0x203   : > { %v4560_v54 = vrot.slane %v4559_v1, 2  ;;  %v3807_v63 = vcombine.high %v3805_v3, %v3805_v3  ;;  %v4509_v32 = vrot.slane %v4508_v22, 4  ;;  %v4515_v26 = vsel %vm4395_vm2, %v3806_v18, -inf }
 0x204   : > { %v4542_v23 = vmax.f32 %v4540_v31, %v4541_v15  ;;  %v4548_v16 = vrot.slane %v4547_v33, 1  ;;  %v4555_v20 = vrot.slane %v4554_v40, 1  ;;  %v4516_v35 = vrot.slane %v4515_v26, 4 }
 0x205   : > { %v4561_v29 = vmax.f32 %v4559_v1, %v4560_v54  ;;  %v4510_v14 = vmax.f32 %v4508_v22, %v4509_v32  ;;  %v4522_v49 = vsel %vm4395_vm2, %v3805_v3, -inf  ;;  %v4529_v51 = vsel %vm4395_vm2, %v3807_v63, -inf }
 0x206   : > { %v4549_v7 = vmax.f32 %v4547_v33, %v4548_v16  ;;  %v4556_v58 = vmax.f32 %v4554_v40, %v4555_v20  ;;  %v8376_v4 = vsel %vm5292_vm3, %v4542_v23, -inf  ;;  %v4517_v30 = vmax.f32 %v4515_v26, %v4516_v35 }
 0x207   : > { %v4562_v10 = vrot.slane %v4561_v29, 1  ;;  %v4511_v21 = vrot.slane %v4510_v14, 2  ;;  %v4523_v55 = vrot.slane %v4522_v49, 4  ;;  %v4530_v11 = vrot.slane %v4529_v51, 4 }
 0x208   : > { %v8379_v28 = vsel %vm5292_vm3, %v4549_v7, -inf  ;;  %v8382_v24 = vsel %vm5292_vm3, %v4556_v58, -inf  ;;  %v4518_v39 = vrot.slane %v4517_v30, 2  ;;  %v3842_v13 = vcombine.high %v3666_v57, %v3666_v57 }
 0x209   : > { %v4563_v36 = vmax.f32 %v4561_v29, %v4562_v10  ;;  %v4512_v8 = vmax.f32 %v4510_v14, %v4511_v21  ;;  %v4524_v17 = vmax.f32 %v4522_v49, %v4523_v55  ;;  %v4531_v56 = vmax.f32 %v4529_v51, %v4530_v11 }
 0x20a   : > { %v4519_v31 = vmax.f32 %v4517_v30, %v4518_v39  ;;  %v3849_v19 = vrot.slane %v3666_v57, %v8209_v2  ;;  %v3856_v62 = vrot.slane %v3842_v13, %v8209_v2  ;;  %v3633_v37 = vadd.f32 %v8332_v41, %v8206_v59 }
 0x20b   : > { %v8389_v1 = vsel %vm5292_vm3, %v4563_v36, -inf  ;;  %v4513_v3 = vrot.slane %v4512_v8, 1  ;;  %v4525_v18 = vrot.slane %v4524_v17, 2  ;;  %v4532_v15 = vrot.slane %v4531_v56, 2 }
 0x20c   : > { %v4520_v33 = vrot.slane %v4519_v31, 1  ;;  %v3857_v40 = vcombine.high %v3849_v19, %v3849_v19  ;;  %v3858_v22 = vcombine.high %v3856_v62, %v3856_v62  ;;  %v4592_v54 = vsel %vm4395_vm2, %v3849_v19, -inf }
 0x20d   : > { %v4514_v63 = vmax.f32 %v4512_v8, %v4513_v3  ;;  %v4526_v32 = vmax.f32 %v4524_v17, %v4525_v18  ;;  %v4533_v26 = vmax.f32 %v4531_v56, %v4532_v15  ;;  %v4593_v57 = vrot.slane %v4592_v54, 4 }
 0x20e   : > { %v4521_v23 = vmax.f32 %v4519_v31, %v4520_v33  ;;  %v4599_v16 = vsel %vm4395_vm2, %v3857_v40, -inf  ;;  %v4606_v41 = vsel %vm4395_vm2, %v3856_v62, -inf  ;;  %v4613_v20 = vsel %vm4395_vm2, %v3858_v22, -inf }
 0x20f   : > { %v4527_v35 = vrot.slane %v4526_v32, 1  ;;  %v4534_v29 = vrot.slane %v4533_v26, 1  ;;  %v8396_v14 = vsel %vm5292_vm3, %v4514_v63, -inf  ;;  %v4594_v49 = vmax.f32 %v4592_v54, %v4593_v57 }
 0x210   : > { %v8399_v51 = vsel %vm5292_vm3, %v4521_v23, -inf  ;;  %v4600_v7 = vrot.slane %v4599_v16, 4  ;;  %v4607_v58 = vrot.slane %v4606_v41, 4  ;;  %v4614_v30 = vrot.slane %v4613_v20, 4 }
 0x211   : > { %v4528_v10 = vmax.f32 %v4526_v32, %v4527_v35  ;;  %v4535_v21 = vmax.f32 %v4533_v26, %v4534_v29  ;;  %v4595_v55 = vrot.slane %v4594_v49, 2  ;;  %v3665_v11 = vmax.f32 %v3633_v37, 0.0  ;;  %v8416_v29 = vpop.f32.mrb[20].mxu1 }
 0x212   : > { %v4601_v39 = vmax.f32 %v4599_v16, %v4600_v7  ;;  %v4608_v13 = vmax.f32 %v4606_v41, %v4607_v58  ;;  %v4615_v36 = vmax.f32 %v4613_v20, %v4614_v30  ;;  %v6949_v8 = vadd.f32 %v8238_v0, %v8187_v43 }
 0x213   : > { %v8404_v17 = vsel %vm5292_vm3, %v4528_v10, -inf  ;;  %v8407_v56 = vsel %vm5292_vm3, %v4535_v21, -inf  ;;  %v4596_v31 = vmax.f32 %v4594_v49, %v4595_v55  ;;  %v3825_v19 = vcombine.high %v3665_v11, %v3665_v11  ;;  %v8418_v49 = vpop.f32.mrb[20].mxu0 }
 0x214   : > { %v4602_v62 = vrot.slane %v4601_v39, 2  ;;  %v4609_v3 = vrot.slane %v4608_v13, 2  ;;  %v4616_v18 = vrot.slane %v4615_v36, 2  ;;  %v3832_v15 = vrot.slane %v3665_v11, %v8209_v2 }
 0x215   : > { %v4597_v37 = vrot.slane %v4596_v31, 1  ;;  %v3839_v33 = vrot.slane %v3825_v19, %v8209_v2  ;;  %v3636_v40 = vadd.f32 %v6949_v8, %v8206_v59  ;;  %v6950_v43 = vadd.f32 %v8240_v9, %v8189_v44 }
 0x216   : > { %v4603_v0 = vmax.f32 %v4601_v39, %v4602_v62  ;;  %v4610_v22 = vmax.f32 %v4608_v13, %v4609_v3  ;;  %v4617_v54 = vmax.f32 %v4615_v36, %v4616_v18  ;;  %v3840_v63 = vcombine.high %v3832_v15, %v3832_v15 }
 0x217   : > { %v4598_v32 = vmax.f32 %v4596_v31, %v4597_v37  ;;  %v3841_v26 = vcombine.high %v3839_v33, %v3839_v33  ;;  %v4564_v57 = vsel %vm4395_vm2, %v3832_v15, -inf  ;;  %v4578_v23 = vsel %vm4395_vm2, %v3839_v33, -inf  ;;  %v8442_v33 = vpop.f32.mrb[21].mxu1 }
 0x218   : > { %v4604_v16 = vrot.slane %v4603_v0, 1  ;;  %v4611_v41 = vrot.slane %v4610_v22, 1  ;;  %v4618_v20 = vrot.slane %v4617_v54, 1  ;;  %v4565_v35 = vrot.slane %v4564_v57, 4 }
 0x219   : > { %v8421_v44 = vsel %vm5292_vm3, %v4598_v32, -inf  ;;  %v4571_v9 = vsel %vm4395_vm2, %v3840_v63, -inf  ;;  %v4579_v7 = vrot.slane %v4578_v23, 4  ;;  %v4585_v58 = vsel %vm4395_vm2, %v3841_v26, -inf }
 0x21a   : > { %v4605_v30 = vmax.f32 %v4603_v0, %v4604_v16  ;;  %v4612_v10 = vmax.f32 %v4610_v22, %v4611_v41  ;;  %v4619_v21 = vmax.f32 %v4617_v54, %v4618_v20  ;;  %v5331_v55 = vmax.f32 %v8376_v4, %v8421_v44  ;;  %v8444_v0 = vpop.f32.mrb[21].mxu0 }
 0x21b   : > { %v4566_v11 = vmax.f32 %v4564_v57, %v4565_v35  ;;  %v4572_v39 = vrot.slane %v4571_v9, 4  ;;  %v4580_v13 = vmax.f32 %v4578_v23, %v4579_v7  ;;  %v4586_v36 = vrot.slane %v4585_v58, 4 }
 0x21c   : > { %v8428_v8 = vsel %vm5292_vm3, %v4605_v30, -inf  ;;  %v8431_v31 = vsel %vm5292_vm3, %v4612_v10, -inf  ;;  %v8434_v19 = vsel %vm5292_vm3, %v4619_v21, -inf  ;;  %v3668_v62 = vmax.f32 %v3636_v40, 0.0 }
 0x21d   : > { %v5334_v3 = vmax.f32 %v8379_v28, %v8428_v8  ;;  %v4567_v37 = vrot.slane %v4566_v11, 2  ;;  %v4573_v22 = vmax.f32 %v4571_v9, %v4572_v39  ;;  %v4581_v54 = vrot.slane %v4580_v13, 2 }
 0x21e   : > { %v4587_v63 = vmax.f32 %v4585_v58, %v4586_v36  ;;  %v3876_v32 = vcombine.high %v3668_v62, %v3668_v62  ;;  %v3883_v40 = vrot.slane %v3668_v62, %v8209_v2  ;;  %v3635_v57 = vadd.f32 %v6950_v43, %v8206_v59 }
 0x21f   : > { %v4568_v26 = vmax.f32 %v4566_v11, %v4567_v37  ;;  %v6951_v23 = vadd.f32 %v8242_v12, %v8191_v45  ;;  %v4574_v16 = vrot.slane %v4573_v22, 2  ;;  %v4582_v41 = vmax.f32 %v4580_v13, %v4581_v54 }
 0x220   : > { %v4588_v20 = vrot.slane %v4587_v63, 2  ;;  %v3890_v35 = vrot.slane %v3876_v32, %v8209_v2  ;;  %v3891_v30 = vcombine.high %v3883_v40, %v3883_v40  ;;  %v4648_v9 = vsel %vm4395_vm2, %v3883_v40, -inf }
 0x221   : > { %v4569_v7 = vrot.slane %v4568_v26, 1  ;;  %v3667_v10 = vmax.f32 %v3635_v57, 0.0  ;;  %v4575_v58 = vmax.f32 %v4573_v22, %v4574_v16  ;;  %v4583_v21 = vrot.slane %v4582_v41, 1 }
 0x222   : > { %v4589_v11 = vmax.f32 %v4587_v63, %v4588_v20  ;;  %v3892_v39 = vcombine.high %v3890_v35, %v3890_v35  ;;  %v4649_v62 = vrot.slane %v4648_v9, 4  ;;  %v4655_v43 = vsel %vm4395_vm2, %v3891_v30, -inf }
 0x223   : > { %v4570_v36 = vmax.f32 %v4568_v26, %v4569_v7  ;;  %v4662_v45 = vsel %vm4395_vm2, %v3890_v35, -inf  ;;  %v4576_v12 = vrot.slane %v4575_v58, 1  ;;  %v4584_v13 = vmax.f32 %v4582_v41, %v4583_v21 }
 0x224   : > { %v4590_v37 = vrot.slane %v4589_v11, 1  ;;  %v4656_v54 = vrot.slane %v4655_v43, 4  ;;  %v4650_v15 = vmax.f32 %v4648_v9, %v4649_v62  ;;  %v4663_v18 = vrot.slane %v4662_v45, 4 }
 0x225   : > { %v5318_v32 = vsel %vm5292_vm3, %v4570_v36, -inf  ;;  %v4669_v40 = vsel %vm4395_vm2, %v3892_v39, -inf  ;;  %v4577_v22 = vmax.f32 %v4575_v58, %v4576_v12  ;;  %v5324_v26 = vsel %vm5292_vm3, %v4584_v13, -inf }
 0x226   : > { %v4591_v57 = vmax.f32 %v4589_v11, %v4590_v37  ;;  %v5319_v63 = vmax.f32 %v8396_v14, %v5318_v32  ;;  %v5325_v16 = vmax.f32 %v8404_v17, %v5324_v26  ;;  %v4651_v20 = vrot.slane %v4650_v15, 2 }
 0x227   : > { %v4657_v35 = vmax.f32 %v4655_v43, %v4656_v54  ;;  %v4664_v7 = vmax.f32 %v4662_v45, %v4663_v18  ;;  %v5321_v41 = vsel %vm5292_vm3, %v4577_v22, -inf  ;;  %v4670_v21 = vrot.slane %v4669_v40, 4 }
 0x228   : > { %v5327_v30 = vsel %vm5292_vm3, %v4591_v57, -inf  ;;  %v3859_v9 = vcombine.high %v3667_v10, %v3667_v10  ;;  %v5322_v36 = vmax.f32 %v8399_v51, %v5321_v41  ;;  %v4652_v11 = vmax.f32 %v4650_v15, %v4651_v20  ;;  %v8470_v15 = vpop.f32.mrb[22].mxu0 }
 0x229   : > { %v5328_v58 = vmax.f32 %v8407_v56, %v5327_v30  ;;  %v4658_v39 = vrot.slane %v4657_v35, 2  ;;  %v4665_v14 = vrot.slane %v4664_v7, 2  ;;  %v4671_v62 = vmax.f32 %v4669_v40, %v4670_v21  ;;  %v8468_v56 = vpop.f32.mrb[22].mxu1 }
 0x22a   : > { %v3866_v12 = vrot.slane %v3667_v10, %v8209_v2  ;;  %v3873_v17 = vrot.slane %v3859_v9, %v8209_v2  ;;  %v5563_v18 = vsel %vm5549_vm4, %v5322_v36, %v5319_v63  ;;  %v4653_v43 = vrot.slane %v4652_v11, 1 }
 0x22b   : > { %v4659_v45 = vmax.f32 %v4657_v35, %v4658_v39  ;;  %v3638_v13 = vadd.f32 %v6951_v23, %v8206_v59  ;;  %v5564_v37 = vsel %vm5551_vm5, %v5325_v16, %v5563_v18  ;;  %v4666_v54 = vmax.f32 %v4664_v7, %v4665_v14 }
 0x22c   : > { %v4672_v51 = vrot.slane %v4671_v62, 2  ;;  %v3874_v32 = vcombine.high %v3866_v12, %v3866_v12  ;;  %v5565_v40 = vsel %vm5553_vm6, %v5328_v58, %v5564_v37  ;;  %v4654_v10 = vmax.f32 %v4652_v11, %v4653_v43 }
 0x22d   : > { %v4660_v22 = vrot.slane %v4659_v45, 1  ;;  %v3875_v57 = vcombine.high %v3873_v17, %v3873_v17  ;;  %v5566_v63 = vsel %vm5555_vm7, %v5331_v55, %v5565_v40  ;;  %v4667_v23 = vrot.slane %v4666_v54, 1 }
 0x22e   : > { %v4673_v26 = vmax.f32 %v4671_v62, %v4672_v51  ;;  %v4620_v16 = vsel %vm4395_vm2, %v3866_v12, -inf  ;;  %v5567_v20 = vsel %vm5557_vm8, %v5334_v3, %v5566_v63  ;;  %v8483_v7 = vsel %vm5292_vm3, %v4654_v10, -inf  ;;  %v8511_v51 = vpop.f32.mrb[23].mxu1 }
 0x22f   : > { %v4661_v35 = vmax.f32 %v4659_v45, %v4660_v22  ;;  %v4621_v41 = vrot.slane %v4620_v16, 4  ;;  %v9258_v4 = vmax.f32 %v8382_v24, %v8431_v31  ;;  %v4668_v55 = vmax.f32 %v4666_v54, %v4667_v23 }
 0x230   : > { %v4674_v30 = vrot.slane %v4673_v26, 1  ;;  %v4627_v21 = vsel %vm4395_vm2, %v3874_v32, -inf  ;;  %v9259_v9 = vmax.f32 %v8389_v1, %v8434_v19  ;;  %v4634_v31 = vsel %vm4395_vm2, %v3873_v17, -inf  ;;  %v8513_v32 = vpop.f32.mrb[23].mxu0 }
 0x231   : > { %v5568_v44 = vsel %vm5559_vm9, %v9258_v4, %v5567_v20  ;;  %v8495_v8 = vsel %vm5292_vm3, %v4661_v35, -inf  ;;  %v4622_v3 = vmax.f32 %v4620_v16, %v4621_v41  ;;  %v4628_v36 = vrot.slane %v4627_v21, 4 }
 0x232   : > { %v5569_v28 = vsel %vm5561_vm10, %v9259_v9, %v5568_v44  ;;  %v4675_v58 = vmax.f32 %v4673_v26, %v4674_v30  ;;  %v8500_v24 = vsel %vm5292_vm3, %v4668_v55, -inf  ;;  %v4641_v11 = vsel %vm4395_vm2, %v3875_v57, -inf }
 0x233   : > { %5621 = vst.msk [vmem:[%s8351_s13 + $0x8] sm:$0xff] %vm5292_vm3, %v5569_v28  ;;  %v4623_v39 = vrot.slane %v4622_v3, 2  ;;  %v4629_v14 = vmax.f32 %v4627_v21, %v4628_v36  ;;  %v4635_v1 = vrot.slane %v4634_v31, 4  ;;  %v4642_v19 = vrot.slane %v4641_v11, 4 }
 0x234   : > { %v8505_v62 = vsel %vm5292_vm3, %v4675_v58, -inf  ;;  %v3670_v12 = vmax.f32 %v3638_v13, 0.0  ;;  %v6952_v18 = vadd.f32 %v8244_v61, %v8193_v46  ;;  %v6953_v43 = vadd.f32 %v8260_v50, %v8195_v47 }
 0x235   : > { %v4624_v45 = vmax.f32 %v4622_v3, %v4623_v39  ;;  %v4630_v37 = vrot.slane %v4629_v14, 2  ;;  %v4636_v54 = vmax.f32 %v4634_v31, %v4635_v1  ;;  %v4643_v17 = vmax.f32 %v4641_v11, %v4642_v19 }
 0x236   : > { %v3910_v40 = vcombine.high %v3670_v12, %v3670_v12  ;;  %v3917_v10 = vrot.slane %v3670_v12, %v8209_v2  ;;  %v3637_v22 = vadd.f32 %v6952_v18, %v8206_v59  ;;  %v3640_v13 = vadd.f32 %v6953_v43, %v8206_v59 }
 0x237   : > { %v4625_v57 = vrot.slane %v4624_v45, 1  ;;  %v4631_v46 = vmax.f32 %v4629_v14, %v4630_v37  ;;  %v4637_v61 = vrot.slane %v4636_v54, 2  ;;  %v4644_v63 = vrot.slane %v4643_v17, 2 }
 0x238   : > { %v3924_v47 = vrot.slane %v3910_v40, %v8209_v2  ;;  %v3925_v50 = vcombine.high %v3917_v10, %v3917_v10  ;;  %v4704_v23 = vsel %vm4395_vm2, %v3917_v10, -inf  ;;  %v3669_v26 = vmax.f32 %v3637_v22, 0.0 }
 0x239   : > { %v4626_v16 = vmax.f32 %v4624_v45, %v4625_v57  ;;  %v4632_v20 = vrot.slane %v4631_v46, 1  ;;  %v4638_v35 = vmax.f32 %v4636_v54, %v4637_v61  ;;  %v4645_v41 = vmax.f32 %v4643_v17, %v4644_v63  ;;  %v8539_v61 = vpop.f32.mrb[24].mxu0 }
 0x23a   : > { %v3926_v4 = vcombine.high %v3924_v47, %v3924_v47  ;;  %v4705_v44 = vrot.slane %v4704_v23, 4  ;;  %v4711_v55 = vsel %vm4395_vm2, %v3925_v50, -inf  ;;  %v4718_v59 = vsel %vm4395_vm2, %v3924_v47, -inf }
 0x23b   : > { %v4633_v30 = vmax.f32 %v4631_v46, %v4632_v20  ;;  %v4639_v21 = vrot.slane %v4638_v35, 1  ;;  %v4646_v9 = vrot.slane %v4645_v41, 1  ;;  %v8523_v28 = vsel %vm5292_vm3, %v4626_v16, -inf  ;;  %v8537_v46 = vpop.f32.mrb[24].mxu1 }
 0x23c   : > { %v4706_v3 = vmax.f32 %v4704_v23, %v4705_v44  ;;  %v4712_v36 = vrot.slane %v4711_v55, 4  ;;  %v4719_v58 = vrot.slane %v4718_v59, 4  ;;  %v4725_v31 = vsel %vm4395_vm2, %v3926_v4, -inf }
 0x23d   : > { %v4640_v11 = vmax.f32 %v4638_v35, %v4639_v21  ;;  %v4647_v39 = vmax.f32 %v4645_v41, %v4646_v9  ;;  %v8527_v14 = vsel %vm5292_vm3, %v4633_v30, -inf  ;;  %v4726_v1 = vrot.slane %v4725_v31, 4 }
 0x23e   : > { %v4707_v19 = vrot.slane %v4706_v3, 2  ;;  %v4713_v12 = vmax.f32 %v4711_v55, %v4712_v36  ;;  %v4720_v18 = vmax.f32 %v4718_v59, %v4719_v58  ;;  %v3893_v43 = vcombine.high %v3669_v26, %v3669_v26 }
 0x23f   : > { %v8530_v45 = vsel %vm5292_vm3, %v4640_v11, -inf  ;;  %v8533_v37 = vsel %vm5292_vm3, %v4647_v39, -inf  ;;  %v4727_v54 = vmax.f32 %v4725_v31, %v4726_v1  ;;  %v3900_v17 = vrot.slane %v3669_v26, %v8209_v2 }
 0x240   : > { %v4708_v40 = vmax.f32 %v4706_v3, %v4707_v19  ;;  %v4714_v10 = vrot.slane %v4713_v12, 2  ;;  %v4721_v22 = vrot.slane %v4720_v18, 2  ;;  %v3907_v57 = vrot.slane %v3893_v43, %v8209_v2 }
 0x241   : > { %v4728_v63 = vrot.slane %v4727_v54, 2  ;;  %v3908_v47 = vcombine.high %v3900_v17, %v3900_v17  ;;  %v4676_v50 = vsel %vm4395_vm2, %v3900_v17, -inf  ;;  %v3672_v23 = vmax.f32 %v3640_v13, 0.0 }
 0x242   : > { %v4709_v16 = vrot.slane %v4708_v40, 1  ;;  %v4715_v20 = vmax.f32 %v4713_v12, %v4714_v10  ;;  %v4722_v35 = vmax.f32 %v4720_v18, %v4721_v22  ;;  %v3909_v41 = vcombine.high %v3907_v57, %v3907_v57 }
 0x243   : > { %v4729_v4 = vmax.f32 %v4727_v54, %v4728_v63  ;;  %v4677_v26 = vrot.slane %v4676_v50, 4  ;;  %v4683_v44 = vsel %vm4395_vm2, %v3908_v47, -inf  ;;  %v4690_v55 = vsel %vm4395_vm2, %v3907_v57, -inf }
 0x244   : > { %v4710_v59 = vmax.f32 %v4708_v40, %v4709_v16  ;;  %v4716_v30 = vrot.slane %v4715_v20, 1  ;;  %v4723_v21 = vrot.slane %v4722_v35, 1  ;;  %v4684_v9 = vrot.slane %v4683_v44, 4 }
 0x245   : > { %v4730_v3 = vrot.slane %v4729_v4, 1  ;;  %v4678_v36 = vmax.f32 %v4676_v50, %v4677_v26  ;;  %v4691_v58 = vrot.slane %v4690_v55, 4  ;;  %v4697_v31 = vsel %vm4395_vm2, %v3909_v41, -inf }
 0x246   : > { %v4717_v13 = vmax.f32 %v4715_v20, %v4716_v30  ;;  %v4724_v11 = vmax.f32 %v4722_v35, %v4723_v21  ;;  %v8546_v39 = vsel %vm5292_vm3, %v4710_v59, -inf  ;;  %v4685_v1 = vmax.f32 %v4683_v44, %v4684_v9  ;;  %v8570_v9 = vpop.f32.mrb[25].mxu1 }
 0x247   : > { %v4731_v19 = vmax.f32 %v4729_v4, %v4730_v3  ;;  %v5355_v12 = vmax.f32 %v8483_v7, %v8546_v39  ;;  %v4679_v18 = vrot.slane %v4678_v36, 2  ;;  %v4692_v43 = vmax.f32 %v4690_v55, %v4691_v58  ;;  %v8572_v3 = vpop.f32.mrb[25].mxu0 }
 0x248   : > { %v8551_v54 = vsel %vm5292_vm3, %v4717_v13, -inf  ;;  %v8554_v17 = vsel %vm5292_vm3, %v4724_v11, -inf  ;;  %v4686_v40 = vrot.slane %v4685_v1, 2  ;;  %v4698_v10 = vrot.slane %v4697_v31, 4 }
 0x249   : > { %v5358_v22 = vmax.f32 %v8495_v8, %v8551_v54  ;;  %v5361_v57 = vmax.f32 %v8500_v24, %v8554_v17  ;;  %v8561_v63 = vsel %vm5292_vm3, %v4731_v19, -inf  ;;  %v4680_v47 = vmax.f32 %v4678_v36, %v4679_v18 }
 0x24a   : > { %v5364_v50 = vmax.f32 %v8505_v62, %v8561_v63  ;;  %v4687_v16 = vmax.f32 %v4685_v1, %v4686_v40  ;;  %v4693_v20 = vrot.slane %v4692_v43, 2  ;;  %v4699_v35 = vmax.f32 %v4697_v31, %v4698_v10 }
 0x24b   : > { %v4681_v41 = vrot.slane %v4680_v47, 1  ;;  %v3944_v4 = vcombine.high %v3672_v23, %v3672_v23  ;;  %v3951_v26 = vrot.slane %v3672_v23, %v8209_v2  ;;  %v6954_v44 = vadd.f32 %v8264_v60, %v8197_v48 }
 0x24c   : > { %v4688_v55 = vrot.slane %v4687_v16, 1  ;;  %v4694_v59 = vmax.f32 %v4692_v43, %v4693_v20  ;;  %v4700_v30 = vrot.slane %v4699_v35, 2  ;;  %v6955_v21 = vadd.f32 %v8281_v25, %v8199_v52 }
 0x24d   : > { %v4682_v36 = vmax.f32 %v4680_v47, %v4681_v41  ;;  %v3958_v58 = vrot.slane %v3944_v4, %v8209_v2  ;;  %v3959_v31 = vcombine.high %v3951_v26, %v3951_v26  ;;  %v4760_v13 = vsel %vm4395_vm2, %v3951_v26, -inf }
 0x24e   : > { %v4689_v23 = vmax.f32 %v4687_v16, %v4688_v55  ;;  %v4695_v11 = vrot.slane %v4694_v59, 1  ;;  %v4701_v1 = vmax.f32 %v4699_v35, %v4700_v30  ;;  %v4761_v48 = vrot.slane %v4760_v13, 4  ;;  %v8587_v55 = vld [vmem:[%s9144_s2] ss:$0 sm:$0xff] }
 0x24f   : > { %v5342_v60 = vsel %vm5292_vm3, %v4682_v36, -inf  ;;  %v3960_v19 = vcombine.high %v3958_v58, %v3958_v58  ;;  %v4767_v18 = vsel %vm4395_vm2, %v3959_v31, -inf  ;;  %v4774_v52 = vsel %vm4395_vm2, %v3958_v58, -inf }
 0x250   : > { %v4696_v25 = vmax.f32 %v4694_v59, %v4695_v11  ;;  %v4702_v43 = vrot.slane %v4701_v1, 1  ;;  %v5343_v40 = vmax.f32 %v8523_v28, %v5342_v60  ;;  %v5345_v10 = vsel %vm5292_vm3, %v4689_v23, -inf }
 0x251   : > { %v5346_v47 = vmax.f32 %v8527_v14, %v5345_v10  ;;  %v4762_v20 = vmax.f32 %v4760_v13, %v4761_v48  ;;  %v4768_v16 = vrot.slane %v4767_v18, 4  ;;  %v4775_v41 = vrot.slane %v4774_v52, 4 }
 0x252   : > { %v4703_v35 = vmax.f32 %v4701_v1, %v4702_v43  ;;  %v5348_v4 = vsel %vm5292_vm3, %v4696_v25, -inf  ;;  %v4781_v26 = vsel %vm4395_vm2, %v3960_v19, -inf  ;;  %v3639_v59 = vadd.f32 %v8587_v55, %v6954_v44 }
 0x253   : > { %v5349_v28 = vmax.f32 %v8530_v45, %v5348_v4  ;;  %v5570_v30 = vsel %vm5549_vm4, %v5346_v47, %v5343_v40  ;;  %v4763_v14 = vrot.slane %v4762_v20, 2  ;;  %v4769_v36 = vmax.f32 %v4767_v18, %v4768_v16  ;;  %v8603_v16 = vpop.f32.mrb[26].mxu1 }
 0x254   : > { %v5351_v58 = vsel %vm5292_vm3, %v4703_v35, -inf  ;;  %v4776_v31 = vmax.f32 %v4774_v52, %v4775_v41  ;;  %v4782_v13 = vrot.slane %v4781_v26, 4  ;;  %v3671_v23 = vmax.f32 %v3639_v59, 0.0  ;;  %v8605_v41 = vpop.f32.mrb[26].mxu0 }
 0x255   : > { %v5352_v11 = vmax.f32 %v8533_v37, %v5351_v58  ;;  %v5571_v1 = vsel %vm5551_vm5, %v5349_v28, %v5570_v30  ;;  %v4764_v48 = vmax.f32 %v4762_v20, %v4763_v14  ;;  %v4770_v60 = vrot.slane %v4769_v36, 2 }
 0x256   : > { %v4777_v19 = vrot.slane %v4776_v31, 2  ;;  %v4783_v25 = vmax.f32 %v4781_v26, %v4782_v13  ;;  %v3927_v44 = vcombine.high %v3671_v23, %v3671_v23  ;;  %v3934_v45 = vrot.slane %v3671_v23, %v8209_v2 }
 0x257   : > { %v5572_v43 = vsel %vm5553_vm6, %v5352_v11, %v5571_v1  ;;  %v4765_v40 = vrot.slane %v4764_v48, 1  ;;  %v4771_v18 = vmax.f32 %v4769_v36, %v4770_v60  ;;  %v3642_v10 = vadd.f32 %v8587_v55, %v6955_v21 }
 0x258   : > { %v5573_v37 = vsel %vm5555_vm7, %v5355_v12, %v5572_v43  ;;  %v4778_v52 = vmax.f32 %v4776_v31, %v4777_v19  ;;  %v4784_v47 = vrot.slane %v4783_v25, 2  ;;  %v3941_v20 = vrot.slane %v3927_v44, %v8209_v2  ;;  %v9262_v43 = vld [vmem:[#allocation3_spill] sm:$0xff] }
 0x259   : > { %v5574_v35 = vsel %vm5557_vm8, %v5358_v22, %v5573_v37  ;;  %v4766_v21 = vmax.f32 %v4764_v48, %v4765_v40  ;;  %v4772_v4 = vrot.slane %v4771_v18, 1  ;;  %v3942_v26 = vcombine.high %v3934_v45, %v3934_v45  ;;  %v9260_v48 = vld [vmem:[#allocation2_spill] sm:$0xff]  ;;  %v8643_v37 = vpop.f32.mrb[27].mxu0 }
 0x25a   : > { %v5575_v7 = vsel %vm5559_vm9, %v5361_v57, %v5574_v35  ;;  %v4779_v39 = vrot.slane %v4778_v52, 1  ;;  %v4785_v12 = vmax.f32 %v4783_v25, %v4784_v47  ;;  %v3943_v59 = vcombine.high %v3941_v20, %v3941_v20 }
 0x25b   : > { %v5576_v28 = vsel %vm5561_vm10, %v5364_v50, %v5575_v7  ;;  %v4773_v30 = vmax.f32 %v4771_v18, %v4772_v4  ;;  %v8620_v8 = vsel %vm5292_vm3, %v4766_v21, -inf  ;;  %v4732_v54 = vsel %vm4395_vm2, %v3934_v45, -inf  ;;  %v9261_v45 = vld [vmem:[#allocation15_spill] sm:$0xff]  ;;  %v8641_v18 = vpop.f32.mrb[27].mxu1 }
 0x25c   : > { %5622 = vst.msk [vmem:[%s8351_s13 + $0x10] sm:$0xff] %vm5292_vm3, %v5576_v28  ;;  %v4780_v22 = vmax.f32 %v4778_v52, %v4779_v39  ;;  %v4786_v24 = vrot.slane %v4785_v12, 1  ;;  %v4733_v17 = vrot.slane %v4732_v54, 4  ;;  %v4739_v57 = vsel %vm4395_vm2, %v3942_v26, -inf }
 0x25d   : > { %v8627_v14 = vsel %vm5292_vm3, %v4773_v30, -inf  ;;  %v4740_v36 = vrot.slane %v4739_v57, 4  ;;  %v4746_v62 = vsel %vm4395_vm2, %v3941_v20, -inf  ;;  %v4753_v63 = vsel %vm4395_vm2, %v3943_v59, -inf }
 0x25e   : > { %v4787_v50 = vmax.f32 %v4785_v12, %v4786_v24  ;;  %v8632_v58 = vsel %vm5292_vm3, %v4780_v22, -inf  ;;  %v4734_v31 = vmax.f32 %v4732_v54, %v4733_v17  ;;  %v4747_v13 = vrot.slane %v4746_v62, 4 }
 0x25f   : > { %v4741_v23 = vmax.f32 %v4739_v57, %v4740_v36  ;;  %v4754_v11 = vrot.slane %v4753_v63, 4  ;;  %v3674_v1 = vmax.f32 %v3642_v10, 0.0  ;;  %v6956_v60 = vadd.f32 %v9260_v48, %v8201_v53 }
 0x260   : > { %v8637_v19 = vsel %vm5292_vm3, %v4787_v50, -inf  ;;  %v4735_v25 = vrot.slane %v4734_v31, 2  ;;  %v4748_v44 = vmax.f32 %v4746_v62, %v4747_v13  ;;  %v6957_v40 = vadd.f32 %v9262_v43, %v9261_v45 }
 0x261   : > { %v4742_v52 = vrot.slane %v4741_v23, 2  ;;  %v4755_v47 = vmax.f32 %v4753_v63, %v4754_v11  ;;  %v3978_v20 = vcombine.high %v3674_v1, %v3674_v1  ;;  %v3985_v10 = vrot.slane %v3674_v1, %v8209_v2 }
 0x262   : > { %v4736_v35 = vmax.f32 %v4734_v31, %v4735_v25  ;;  %v4749_v21 = vrot.slane %v4748_v44, 2  ;;  %v3641_v53 = vadd.f32 %v8587_v55, %v6956_v60  ;;  %v3644_v4 = vadd.f32 %v8587_v55, %v6957_v40 }
 0x263   : > { %v4743_v26 = vmax.f32 %v4741_v23, %v4742_v52  ;;  %v4756_v7 = vrot.slane %v4755_v47, 2  ;;  %v3992_v39 = vrot.slane %v3978_v20, %v8209_v2  ;;  %v3993_v12 = vcombine.high %v3985_v10, %v3985_v10 }
 0x264   : > { %v4737_v59 = vrot.slane %v4736_v35, 1  ;;  %v4750_v28 = vmax.f32 %v4748_v44, %v4749_v21  ;;  %v4816_v30 = vsel %vm4395_vm2, %v3985_v10, -inf  ;;  %v3673_v54 = vmax.f32 %v3641_v53, 0.0 }
 0x265   : > { %v4744_v22 = vrot.slane %v4743_v26, 1  ;;  %v4757_v24 = vmax.f32 %v4755_v47, %v4756_v7  ;;  %v3994_v17 = vcombine.high %v3992_v39, %v3992_v39  ;;  %v4817_v57 = vrot.slane %v4816_v30, 4  ;;  %v8666_v7 = vpop.f32.mrb[28].mxu1 }
 0x266   : > { %v4738_v36 = vmax.f32 %v4736_v35, %v4737_v59  ;;  %v4751_v62 = vrot.slane %v4750_v28, 1  ;;  %v4823_v63 = vsel %vm4395_vm2, %v3993_v12, -inf  ;;  %v4830_v50 = vsel %vm4395_vm2, %v3992_v39, -inf  ;;  %v8668_v39 = vpop.f32.mrb[28].mxu0 }
 0x267   : > { %v4745_v31 = vmax.f32 %v4743_v26, %v4744_v22  ;;  %v4758_v13 = vrot.slane %v4757_v24, 1  ;;  %v4818_v23 = vmax.f32 %v4816_v30, %v4817_v57  ;;  %v4824_v11 = vrot.slane %v4823_v63, 4 }
 0x268   : > { %v4752_v1 = vmax.f32 %v4750_v28, %v4751_v62  ;;  %v8653_v48 = vsel %vm5292_vm3, %v4738_v36, -inf  ;;  %v4831_v60 = vrot.slane %v4830_v50, 4  ;;  %v4837_v25 = vsel %vm4395_vm2, %v3994_v17, -inf }
 0x269   : > { %v4759_v44 = vmax.f32 %v4757_v24, %v4758_v13  ;;  %v8657_v45 = vsel %vm5292_vm3, %v4745_v31, -inf  ;;  %v4819_v43 = vrot.slane %v4818_v23, 2  ;;  %v4825_v40 = vmax.f32 %v4823_v63, %v4824_v11 }
 0x26a   : > { %v8660_v52 = vsel %vm5292_vm3, %v4752_v1, -inf  ;;  %v4832_v47 = vmax.f32 %v4830_v50, %v4831_v60  ;;  %v4838_v20 = vrot.slane %v4837_v25, 4  ;;  %v3961_v10 = vcombine.high %v3673_v54, %v3673_v54 }
 0x26b   : > { %v8663_v35 = vsel %vm5292_vm3, %v4759_v44, -inf  ;;  %v4820_v21 = vmax.f32 %v4818_v23, %v4819_v43  ;;  %v4826_v53 = vrot.slane %v4825_v40, 2  ;;  %v3968_v26 = vrot.slane %v3673_v54, %v8209_v2 }
 0x26c   : > { %v4833_v12 = vrot.slane %v4832_v47, 2  ;;  %v4839_v59 = vmax.f32 %v4837_v25, %v4838_v20  ;;  %v3975_v28 = vrot.slane %v3961_v10, %v8209_v2  ;;  %v3676_v30 = vmax.f32 %v3644_v4, 0.0 }
 0x26d   : > { %v4821_v22 = vrot.slane %v4820_v21, 1  ;;  %v4827_v24 = vmax.f32 %v4825_v40, %v4826_v53  ;;  %v3976_v17 = vcombine.high %v3968_v26, %v3968_v26  ;;  %v4788_v57 = vsel %vm4395_vm2, %v3968_v26, -inf }
 0x26e   : > { %v4834_v36 = vmax.f32 %v4832_v47, %v4833_v12  ;;  %v4840_v62 = vrot.slane %v4839_v59, 2  ;;  %v3977_v63 = vcombine.high %v3975_v28, %v3975_v28  ;;  %v4789_v50 = vrot.slane %v4788_v57, 4 }
 0x26f   : > { %v4822_v31 = vmax.f32 %v4820_v21, %v4821_v22  ;;  %v4828_v54 = vrot.slane %v4827_v24, 1  ;;  %v4795_v13 = vsel %vm4395_vm2, %v3976_v17, -inf  ;;  %v4802_v23 = vsel %vm4395_vm2, %v3975_v28, -inf }
 0x270   : > { %v4835_v11 = vrot.slane %v4834_v36, 1  ;;  %v4841_v1 = vmax.f32 %v4839_v59, %v4840_v62  ;;  %v4790_v60 = vmax.f32 %v4788_v57, %v4789_v50  ;;  %v4796_v25 = vrot.slane %v4795_v13, 4 }
 0x271   : > { %v4829_v4 = vmax.f32 %v4827_v24, %v4828_v54  ;;  %v8675_v44 = vsel %vm5292_vm3, %v4822_v31, -inf  ;;  %v4803_v43 = vrot.slane %v4802_v23, 4  ;;  %v4809_v40 = vsel %vm4395_vm2, %v3977_v63, -inf }
 0x272   : > { %v4836_v47 = vmax.f32 %v4834_v36, %v4835_v11  ;;  %v4842_v20 = vrot.slane %v4841_v1, 1  ;;  %v4791_v21 = vrot.slane %v4790_v60, 2  ;;  %v4797_v26 = vmax.f32 %v4795_v13, %v4796_v25 }
 0x273   : > { %v8681_v53 = vsel %vm5292_vm3, %v4829_v4, -inf  ;;  %v4804_v12 = vmax.f32 %v4802_v23, %v4803_v43  ;;  %v4810_v59 = vrot.slane %v4809_v40, 4  ;;  %v4012_v54 = vcombine.high %v3676_v30, %v3676_v30  ;;  %v8698_v4 = vpop.f32.mrb[29].mxu0 }
 0x274   : > { %v4843_v28 = vmax.f32 %v4841_v1, %v4842_v20  ;;  %v8686_v24 = vsel %vm5292_vm3, %v4836_v47, -inf  ;;  %v4792_v17 = vmax.f32 %v4790_v60, %v4791_v21  ;;  %v4798_v36 = vrot.slane %v4797_v26, 2  ;;  %v8696_v60 = vpop.f32.mrb[29].mxu1  ;;  %9263 = vst [vmem:[#allocation16_spill] sm:$0xff] %v8698_v4 }
 0x275   : > { %v4805_v62 = vrot.slane %v4804_v12, 2  ;;  %v4811_v63 = vmax.f32 %v4809_v40, %v4810_v59  ;;  %v4019_v13 = vrot.slane %v3676_v30, %v8209_v2  ;;  %v4026_v40 = vrot.slane %v4012_v54, %v8209_v2 }
 0x276   : > { %v8691_v50 = vsel %vm5292_vm3, %v4843_v28, -inf  ;;  %v4793_v31 = vrot.slane %v4792_v17, 1  ;;  %v4799_v11 = vmax.f32 %v4797_v26, %v4798_v36 }
 0x277   : > { %v4806_v1 = vmax.f32 %v4804_v12, %v4805_v62  ;;  %v4812_v25 = vrot.slane %v4811_v63, 2  ;;  %v4027_v47 = vcombine.high %v4019_v13, %v4019_v13  ;;  %v4872_v20 = vsel %vm4395_vm2, %v4019_v13, -inf }
 0x278   : > { %v4794_v43 = vmax.f32 %v4792_v17, %v4793_v31  ;;  %v4800_v21 = vrot.slane %v4799_v11, 1  ;;  %v4873_v30 = vrot.slane %v4872_v20, 4  ;;  %v4028_v23 = vcombine.high %v4026_v40, %v4026_v40 }
 0x279   : > { %v4807_v59 = vrot.slane %v4806_v1, 1  ;;  %v4813_v28 = vmax.f32 %v4811_v63, %v4812_v25  ;;  %v4879_v26 = vsel %vm4395_vm2, %v4027_v47, -inf  ;;  %v4886_v12 = vsel %vm4395_vm2, %v4026_v40, -inf }
 0x27a   : > { %v5366_v57 = vsel %vm5292_vm3, %v4794_v43, -inf  ;;  %v4801_v36 = vmax.f32 %v4799_v11, %v4800_v21  ;;  %v4874_v31 = vmax.f32 %v4872_v20, %v4873_v30  ;;  %v4880_v54 = vrot.slane %v4879_v26, 4 }
 0x27b   : > { %v4808_v62 = vmax.f32 %v4806_v1, %v4807_v59  ;;  %v4814_v22 = vrot.slane %v4813_v28, 1  ;;  %v5367_v17 = vmax.f32 %v8653_v48, %v5366_v57  ;;  %v4887_v10 = vrot.slane %v4886_v12, 4 }
 0x27c   : > { %v4893_v13 = vsel %vm4395_vm2, %v4028_v23, -inf  ;;  %v5369_v63 = vsel %vm5292_vm3, %v4801_v36, -inf  ;;  %v4875_v11 = vrot.slane %v4874_v31, 2  ;;  %v4881_v1 = vmax.f32 %v4879_v26, %v4880_v54  ;;  %v8727_v54 = vpop.f32.mrb[30].mxu0 }
 0x27d   : > { %v4815_v4 = vmax.f32 %v4813_v28, %v4814_v22  ;;  %v5372_v25 = vsel %vm5292_vm3, %v4808_v62, -inf  ;;  %v4894_v43 = vrot.slane %v4893_v13, 4  ;;  %v5370_v47 = vmax.f32 %v8657_v45, %v5369_v63 }
 0x27e   : > { %v5373_v40 = vmax.f32 %v8660_v52, %v5372_v25  ;;  %v4888_v48 = vmax.f32 %v4886_v12, %v4887_v10  ;;  %v6958_v20 = vadd.f32 %v8311_v6, %v8309_v5  ;;  %v4876_v59 = vmax.f32 %v4874_v31, %v4875_v11  ;;  %v8725_v31 = vpop.f32.mrb[30].mxu1 }
 0x27f   : > { %v5375_v21 = vsel %vm5292_vm3, %v4815_v4, -inf  ;;  %v4895_v57 = vmax.f32 %v4893_v13, %v4894_v43  ;;  %v5577_v23 = vsel %vm5549_vm4, %v5370_v47, %v5367_v17  ;;  %v4882_v28 = vrot.slane %v4881_v1, 2 }
 0x280   : > { %v5376_v22 = vmax.f32 %v8663_v35, %v5375_v21  ;;  %v5578_v30 = vsel %vm5551_vm5, %v5373_v40, %v5577_v23  ;;  %v4889_v45 = vrot.slane %v4888_v48, 2  ;;  %v3643_v52 = vadd.f32 %v8587_v55, %v6958_v20 }
 0x281   : > { %v4896_v36 = vrot.slane %v4895_v57, 2  ;;  %v4877_v4 = vrot.slane %v4876_v59, 1  ;;  %v4883_v10 = vmax.f32 %v4881_v1, %v4882_v28  ;;  %v6959_v12 = vadd.f32 %v8366_v38, %v8364_v27 }
 0x282   : > { %v5579_v26 = vsel %vm5553_vm6, %v5376_v22, %v5578_v30  ;;  %v9264_v5 = vmax.f32 %v8620_v8, %v8675_v44  ;;  %v4890_v35 = vmax.f32 %v4888_v48, %v4889_v45  ;;  %v3675_v17 = vmax.f32 %v3643_v52, 0.0 }
 0x283   : > { %v4897_v62 = vmax.f32 %v4895_v57, %v4896_v36  ;;  %v9265_v13 = vmax.f32 %v8627_v14, %v8681_v53  ;;  %v4878_v25 = vmax.f32 %v4876_v59, %v4877_v4  ;;  %v4884_v27 = vrot.slane %v4883_v10, 1 }
 0x284   : > { %v5580_v6 = vsel %vm5555_vm7, %v9264_v5, %v5579_v26  ;;  %v3646_v38 = vadd.f32 %v8587_v55, %v6959_v12  ;;  %v9266_v8 = vmax.f32 %v8632_v58, %v8686_v24  ;;  %v4891_v43 = vrot.slane %v4890_v35, 1 }
 0x285   : > { %v5581_v63 = vsel %vm5557_vm8, %v9265_v13, %v5580_v6  ;;  %v4898_v47 = vrot.slane %v4897_v62, 1  ;;  %v3995_v40 = vcombine.high %v3675_v17, %v3675_v17  ;;  %v9267_v11 = vmax.f32 %v8637_v19, %v8691_v50 }
 0x286   : > { %v5582_v44 = vsel %vm5559_vm9, %v9266_v8, %v5581_v63  ;;  %v4885_v14 = vmax.f32 %v4883_v10, %v4884_v27  ;;  %v8743_v53 = vsel %vm5292_vm3, %v4878_v25, -inf  ;;  %v4002_v21 = vrot.slane %v3675_v17, %v8209_v2  ;;  %v8769_v17 = vpop.f32.mrb[31].mxu0 }
 0x287   : > { %v5583_v1 = vsel %vm5561_vm10, %v9267_v11, %v5582_v44  ;;  %v4892_v48 = vmax.f32 %v4890_v35, %v4891_v43  ;;  %v4899_v58 = vmax.f32 %v4897_v62, %v4898_v47  ;;  %v4009_v24 = vrot.slane %v3995_v40, %v8209_v2  ;;  %v8767_v62 = vpop.f32.mrb[31].mxu1 }
 0x288   : > { %5623 = vst.msk [vmem:[%s8351_s13 + $0x18] sm:$0xff] %vm5292_vm3, %v5583_v1  ;;  %v3678_v57 = vmax.f32 %v3646_v38, 0.0  ;;  %v8750_v20 = vsel %vm5292_vm3, %v4885_v14, -inf  ;;  %v4010_v22 = vcombine.high %v4002_v21, %v4002_v21  ;;  %v4844_v19 = vsel %vm4395_vm2, %v4002_v21, -inf }
 0x289   : > { %v6960_v50 = vadd.f32 %v8373_v34, %v8371_v42  ;;  %v8756_v23 = vsel %vm5292_vm3, %v4892_v48, -inf  ;;  %v8759_v59 = vsel %vm5292_vm3, %v4899_v58, -inf  ;;  %v4011_v28 = vcombine.high %v4009_v24, %v4009_v24 }
 0x28a   : > { %v4845_v30 = vrot.slane %v4844_v19, 4  ;;  %v4851_v45 = vsel %vm4395_vm2, %v4010_v22, -inf  ;;  %v4858_v36 = vsel %vm4395_vm2, %v4009_v24, -inf  ;;  %v4046_v52 = vcombine.high %v3678_v57, %v3678_v57 }
 0x28b   : > { %v4053_v26 = vrot.slane %v3678_v57, %v8209_v2  ;;  %v4852_v10 = vrot.slane %v4851_v45, 4  ;;  %v4859_v12 = vrot.slane %v4858_v36, 4  ;;  %v4865_v42 = vsel %vm4395_vm2, %v4011_v28, -inf }
 0x28c   : > { %v4846_v4 = vmax.f32 %v4844_v19, %v4845_v30  ;;  %v4866_v34 = vrot.slane %v4865_v42, 4  ;;  %v4060_v5 = vrot.slane %v4046_v52, %v8209_v2 }
 0x28d   : > { %v4061_v6 = vcombine.high %v4053_v26, %v4053_v26  ;;  %v4928_v35 = vsel %vm4395_vm2, %v4053_v26, -inf  ;;  %v4853_v63 = vmax.f32 %v4851_v45, %v4852_v10  ;;  %v4860_v25 = vmax.f32 %v4858_v36, %v4859_v12 }
 0x28e   : > { %v4847_v13 = vrot.slane %v4846_v4, 2  ;;  %v4929_v27 = vrot.slane %v4928_v35, 4  ;;  %v4867_v38 = vmax.f32 %v4865_v42, %v4866_v34  ;;  %v4062_v8 = vcombine.high %v4060_v5, %v4060_v5 }
 0x28f   : > { %v4935_v44 = vsel %vm4395_vm2, %v4061_v6, -inf  ;;  %v4942_v43 = vsel %vm4395_vm2, %v4060_v5, -inf  ;;  %v4854_v40 = vrot.slane %v4853_v63, 2  ;;  %v4861_v11 = vrot.slane %v4860_v25, 2 }
 0x290   : > { %v4848_v47 = vmax.f32 %v4846_v4, %v4847_v13  ;;  %v4930_v1 = vmax.f32 %v4928_v35, %v4929_v27  ;;  %v4868_v14 = vrot.slane %v4867_v38, 2  ;;  %v4936_v21 = vrot.slane %v4935_v44, 4 }
 0x291   : > { %v4943_v48 = vrot.slane %v4942_v43, 4  ;;  %v4949_v58 = vsel %vm4395_vm2, %v4062_v8, -inf  ;;  %v4855_v57 = vmax.f32 %v4853_v63, %v4854_v40  ;;  %v4862_v22 = vmax.f32 %v4860_v25, %v4861_v11 }
 0x292   : > { %v4849_v24 = vrot.slane %v4848_v47, 1  ;;  %v4931_v19 = vrot.slane %v4930_v1, 2  ;;  %v4869_v28 = vmax.f32 %v4867_v38, %v4868_v14  ;;  %v4937_v30 = vmax.f32 %v4935_v44, %v4936_v21 }
 0x293   : > { %v4944_v45 = vmax.f32 %v4942_v43, %v4943_v48  ;;  %v4950_v36 = vrot.slane %v4949_v58, 4  ;;  %v4856_v26 = vrot.slane %v4855_v57, 1  ;;  %v4863_v10 = vrot.slane %v4862_v22, 1 }
 0x294   : > { %v4850_v52 = vmax.f32 %v4848_v47, %v4849_v24  ;;  %v4932_v4 = vmax.f32 %v4930_v1, %v4931_v19  ;;  %v4870_v12 = vrot.slane %v4869_v28, 1  ;;  %v4938_v42 = vrot.slane %v4937_v30, 2 }
 0x295   : > { %v4945_v34 = vrot.slane %v4944_v45, 2  ;;  %v4951_v5 = vmax.f32 %v4949_v58, %v4950_v36  ;;  %v4857_v6 = vmax.f32 %v4855_v57, %v4856_v26  ;;  %v4864_v35 = vmax.f32 %v4862_v22, %v4863_v10 }
 0x296   : > { %v8775_v13 = vsel %vm5292_vm3, %v4850_v52, -inf  ;;  %v4933_v63 = vrot.slane %v4932_v4, 1  ;;  %v4871_v25 = vmax.f32 %v4869_v28, %v4870_v12  ;;  %v4939_v27 = vmax.f32 %v4937_v30, %v4938_v42 }
 0x297   : > { %v4946_v38 = vmax.f32 %v4944_v45, %v4945_v34  ;;  %v4952_v8 = vrot.slane %v4951_v5, 2  ;;  %v8778_v44 = vsel %vm5292_vm3, %v4857_v6, -inf  ;;  %v8781_v43 = vsel %vm5292_vm3, %v4864_v35, -inf }
 0x298   : > { %v4934_v47 = vmax.f32 %v4932_v4, %v4933_v63  ;;  %v3645_v40 = vadd.f32 %v8587_v55, %v6960_v50  ;;  %v8785_v11 = vsel %vm5292_vm3, %v4871_v25, -inf  ;;  %v4940_v1 = vrot.slane %v4939_v27, 1 }
 0x299   : > { %v4947_v14 = vrot.slane %v4946_v38, 1  ;;  %v4953_v21 = vmax.f32 %v4951_v5, %v4952_v8  ;;  %v6961_v24 = vadd.f32 %v8418_v49, %v8416_v29  ;;  %v6962_v57 = vadd.f32 %v8444_v0, %v8442_v33 }
 0x29a   : > { %v8788_v48 = vsel %vm5292_vm3, %v4934_v47, -inf  ;;  %v3677_v58 = vmax.f32 %v3645_v40, 0.0  ;;  %v4941_v22 = vmax.f32 %v4939_v27, %v4940_v1  ;;  %v8807_v49 = vadd.f32 %v8470_v15, %v8468_v56 }
 0x29b   : > { %v4948_v19 = vmax.f32 %v4946_v38, %v4947_v14  ;;  %v4954_v28 = vrot.slane %v4953_v21, 1  ;;  %v3648_v36 = vadd.f32 %v8587_v55, %v6961_v24  ;;  %v3647_v52 = vadd.f32 %v8587_v55, %v6962_v57 }
 0x29c   : > { %v4029_v30 = vcombine.high %v3677_v58, %v3677_v58  ;;  %v4036_v45 = vrot.slane %v3677_v58, %v8209_v2  ;;  %v8800_v10 = vsel %vm5292_vm3, %v4941_v22, -inf }
 0x29d   : > { %v4955_v26 = vmax.f32 %v4953_v21, %v4954_v28  ;;  %v8803_v29 = vsel %vm5292_vm3, %v4948_v19, -inf  ;;  %v3680_v5 = vmax.f32 %v3648_v36, 0.0  ;;  %v8818_v6 = vmax.f32 %v3647_v52, 0.0 }
 0x29e   : > { %v4043_v4 = vrot.slane %v4029_v30, %v8209_v2  ;;  %v4044_v12 = vcombine.high %v4036_v45, %v4036_v45  ;;  %v4900_v34 = vsel %vm4395_vm2, %v4036_v45, -inf }
 0x29f   : > { %v8815_v42 = vsel %vm5292_vm3, %v4955_v26, -inf  ;;  %v4901_v35 = vrot.slane %v4900_v34, 4  ;;  %v4080_v38 = vcombine.high %v3680_v5, %v3680_v5  ;;  %v4087_v8 = vrot.slane %v3680_v5, %v8209_v2 }
 0x2a0   : > { %v4045_v15 = vcombine.high %v4043_v4, %v4043_v4  ;;  %v4907_v63 = vsel %vm4395_vm2, %v4044_v12, -inf  ;;  %v4914_v27 = vsel %vm4395_vm2, %v4043_v4, -inf  ;;  %v4063_v14 = vcombine.high %v8818_v6, %v8818_v6 }
 0x2a1   : > { %v4908_v25 = vrot.slane %v4907_v63, 4  ;;  %v4902_v47 = vmax.f32 %v4900_v34, %v4901_v35  ;;  %v4915_v40 = vrot.slane %v4914_v27, 4  ;;  %v4094_v24 = vrot.slane %v4080_v38, %v8209_v2 }
 0x2a2   : > { %v4921_v1 = vsel %vm4395_vm2, %v4045_v15, -inf  ;;  %v4095_v57 = vcombine.high %v4087_v8, %v4087_v8  ;;  %v4984_v28 = vsel %vm4395_vm2, %v4087_v8, -inf  ;;  %v8832_v30 = vrot.slane %v8818_v6, %v8209_v2 }
 0x2a3   : > { %v4909_v21 = vmax.f32 %v4907_v63, %v4908_v25  ;;  %v4922_v58 = vrot.slane %v4921_v1, 4  ;;  %v4903_v22 = vrot.slane %v4902_v47, 2  ;;  %v4916_v19 = vmax.f32 %v4914_v27, %v4915_v40 }
 0x2a4   : > { %v4096_v52 = vcombine.high %v4094_v24, %v4094_v24  ;;  %v4985_v26 = vrot.slane %v4984_v28, 4  ;;  %v4991_v34 = vsel %vm4395_vm2, %v4095_v57, -inf  ;;  %v4998_v5 = vsel %vm4395_vm2, %v4094_v24, -inf }
 0x2a5   : > { %v4910_v45 = vrot.slane %v4909_v21, 2  ;;  %v4923_v36 = vmax.f32 %v4921_v1, %v4922_v58  ;;  %v4904_v4 = vmax.f32 %v4902_v47, %v4903_v22  ;;  %v4917_v12 = vrot.slane %v4916_v19, 2 }
 0x2a6   : > { %v4986_v63 = vmax.f32 %v4984_v28, %v4985_v26  ;;  %v4992_v25 = vrot.slane %v4991_v34, 4  ;;  %v4999_v8 = vrot.slane %v4998_v5, 4  ;;  %v5005_v6 = vsel %vm4395_vm2, %v4096_v52, -inf }
 0x2a7   : > { %v4911_v15 = vmax.f32 %v4909_v21, %v4910_v45  ;;  %v4924_v35 = vrot.slane %v4923_v36, 2  ;;  %v4905_v27 = vrot.slane %v4904_v4, 1  ;;  %v4918_v38 = vmax.f32 %v4916_v19, %v4917_v12 }
 0x2a8   : > { %v4987_v1 = vrot.slane %v4986_v63, 2  ;;  %v4993_v58 = vmax.f32 %v4991_v34, %v4992_v25  ;;  %v5000_v22 = vmax.f32 %v4998_v5, %v4999_v8  ;;  %v5006_v33 = vrot.slane %v5005_v6, 4 }
 0x2a9   : > { %v4912_v40 = vrot.slane %v4911_v15, 1  ;;  %v4925_v56 = vmax.f32 %v4923_v36, %v4924_v35  ;;  %v4906_v0 = vmax.f32 %v4904_v4, %v4905_v27  ;;  %v4919_v47 = vrot.slane %v4918_v38, 1 }
 0x2aa   : > { %v4988_v24 = vmax.f32 %v4986_v63, %v4987_v1  ;;  %v4994_v21 = vrot.slane %v4993_v58, 2  ;;  %v5001_v26 = vrot.slane %v5000_v22, 2  ;;  %v5007_v19 = vmax.f32 %v5005_v6, %v5006_v33 }
 0x2ab   : > { %v4913_v57 = vmax.f32 %v4911_v15, %v4912_v40  ;;  %v4926_v50 = vrot.slane %v4925_v56, 1  ;;  %v4920_v45 = vmax.f32 %v4918_v38, %v4919_v47  ;;  %v5390_v28 = vsel %vm5292_vm3, %v4906_v0, -inf }
 0x2ac   : > { %v5391_v52 = vmax.f32 %v8775_v13, %v5390_v28  ;;  %v4989_v35 = vrot.slane %v4988_v24, 1  ;;  %v4995_v5 = vmax.f32 %v4993_v58, %v4994_v21  ;;  %v5002_v15 = vmax.f32 %v5000_v22, %v5001_v26 }
 0x2ad   : > { %v4927_v12 = vmax.f32 %v4925_v56, %v4926_v50  ;;  %v5393_v36 = vsel %vm5292_vm3, %v4913_v57, -inf  ;;  %v5396_v34 = vsel %vm5292_vm3, %v4920_v45, -inf  ;;  %v5008_v0 = vrot.slane %v5007_v19, 2 }
 0x2ae   : > { %v5394_v4 = vmax.f32 %v8778_v44, %v5393_v36  ;;  %v5397_v63 = vmax.f32 %v8781_v43, %v5396_v34  ;;  %v4990_v27 = vmax.f32 %v4988_v24, %v4989_v35  ;;  %v4996_v13 = vrot.slane %v4995_v5, 1 }
 0x2af   : > { %v5399_v25 = vsel %vm5292_vm3, %v4927_v12, -inf  ;;  %v5003_v56 = vrot.slane %v5002_v15, 1  ;;  %v5009_v8 = vmax.f32 %v5007_v19, %v5008_v0  ;;  %v4077_v6 = vrot.slane %v4063_v14, %v8209_v2 }
 0x2b0   : > { %v5400_v33 = vmax.f32 %v8785_v11, %v5399_v25  ;;  %v5584_v50 = vsel %vm5549_vm4, %v5394_v4, %v5391_v52  ;;  %v8848_v44 = vsel %vm5292_vm3, %v4990_v27, -inf  ;;  %v4997_v40 = vmax.f32 %v4995_v5, %v4996_v13 }
 0x2b1   : > { %v5585_v38 = vsel %vm5551_vm5, %v5397_v63, %v5584_v50  ;;  %v5004_v1 = vmax.f32 %v5002_v15, %v5003_v56  ;;  %v4078_v58 = vcombine.high %v8832_v30, %v8832_v30  ;;  %v9268_v11 = vmax.f32 %v8743_v53, %v8788_v48 }
 0x2b2   : > { %v5586_v43 = vsel %vm5553_vm6, %v5400_v33, %v5585_v38  ;;  %v5010_v22 = vrot.slane %v5009_v8, 1  ;;  %v4079_v57 = vcombine.high %v4077_v6, %v4077_v6  ;;  %v4956_v24 = vsel %vm4395_vm2, %v8832_v30, -inf }
 0x2b3   : > { %v5587_v47 = vsel %vm5555_vm7, %v9268_v11, %v5586_v43  ;;  %v9269_v14 = vmax.f32 %v8750_v20, %v8800_v10  ;;  %v8865_v45 = vsel %vm5292_vm3, %v4997_v40, -inf  ;;  %v8868_v28 = vsel %vm5292_vm3, %v5004_v1, -inf }
 0x2b4   : > { %v4957_v53 = vrot.slane %v4956_v24, 4  ;;  %v9270_v48 = vmax.f32 %v8756_v23, %v8803_v29  ;;  %v5011_v19 = vmax.f32 %v5009_v8, %v5010_v22  ;;  %v4963_v30 = vsel %vm4395_vm2, %v4078_v58, -inf }
 0x2b5   : > { %v5588_v21 = vsel %vm5557_vm8, %v9269_v14, %v5587_v47  ;;  %v4970_v12 = vsel %vm4395_vm2, %v4077_v6, -inf  ;;  %v9271_v20 = vmax.f32 %v8759_v59, %v8815_v42  ;;  %v4964_v36 = vrot.slane %v4963_v30, 4 }
 0x2b6   : > { %v5589_v26 = vsel %vm5559_vm9, %v9270_v48, %v5588_v21  ;;  %v4958_v52 = vmax.f32 %v4956_v24, %v4957_v53  ;;  %v4971_v35 = vrot.slane %v4970_v12, 4  ;;  %v8883_v4 = vsel %vm5292_vm3, %v5011_v19, -inf }
 0x2b7   : > { %v5590_v10 = vsel %vm5561_vm10, %v9271_v20, %v5589_v26  ;;  %v4977_v23 = vsel %vm4395_vm2, %v4079_v57, -inf  ;;  %v3650_v29 = vadd.f32 %v8587_v55, %v8807_v49  ;;  %v6964_v34 = vadd.f32 %v8513_v32, %v8511_v51 }
 0x2b8   : > { %5624 = vst.msk [vmem:[%s8351_s13 + $0x20] sm:$0xff] %vm5292_vm3, %v5590_v10  ;;  %v4959_v5 = vrot.slane %v4958_v52, 2  ;;  %v4965_v59 = vmax.f32 %v4963_v30, %v4964_v36  ;;  %v4972_v42 = vmax.f32 %v4970_v12, %v4971_v35  ;;  %v4978_v15 = vrot.slane %v4977_v23, 4 }
 0x2b9   : > { %v3682_v63 = vmax.f32 %v3650_v29, 0.0  ;;  %v3649_v25 = vadd.f32 %v8587_v55, %v6964_v34  ;;  %v6965_v27 = vadd.f32 %v8539_v61, %v8537_v46  ;;  %v8895_v0 = vadd.f32 %v8572_v3, %v8570_v9 }
 0x2ba   : > { %v4960_v33 = vmax.f32 %v4958_v52, %v4959_v5  ;;  %v4966_v50 = vrot.slane %v4965_v59, 2  ;;  %v4973_v49 = vrot.slane %v4972_v42, 2  ;;  %v4979_v13 = vmax.f32 %v4977_v23, %v4978_v15 }
 0x2bb   : > { %v4114_v56 = vcombine.high %v3682_v63, %v3682_v63  ;;  %v4121_v51 = vrot.slane %v3682_v63, %v8209_v2  ;;  %v3681_v32 = vmax.f32 %v3649_v25, 0.0  ;;  %v3652_v38 = vadd.f32 %v8587_v55, %v6965_v27 }
 0x2bc   : > { %v4961_v8 = vrot.slane %v4960_v33, 1  ;;  %v4967_v6 = vmax.f32 %v4965_v59, %v4966_v50  ;;  %v4974_v43 = vmax.f32 %v4972_v42, %v4973_v49  ;;  %v4980_v40 = vrot.slane %v4979_v13, 2 }
 0x2bd   : > { %v4128_v46 = vrot.slane %v4114_v56, %v8209_v2  ;;  %v4129_v61 = vcombine.high %v4121_v51, %v4121_v51  ;;  %v5040_v9 = vsel %vm4395_vm2, %v4121_v51, -inf  ;;  %v4097_v3 = vcombine.high %v3681_v32, %v3681_v32 }
 0x2be   : > { %v4962_v1 = vmax.f32 %v4960_v33, %v4961_v8  ;;  %v4968_v58 = vrot.slane %v4967_v6, 1  ;;  %v4975_v11 = vrot.slane %v4974_v43, 1  ;;  %v4981_v47 = vmax.f32 %v4979_v13, %v4980_v40 }
 0x2bf   : > { %v4130_v22 = vcombine.high %v4128_v46, %v4128_v46  ;;  %v5041_v57 = vrot.slane %v5040_v9, 4  ;;  %v5047_v24 = vsel %vm4395_vm2, %v4129_v61, -inf  ;;  %v5054_v55 = vsel %vm4395_vm2, %v4128_v46, -inf }
 0x2c0   : > { %v4969_v14 = vmax.f32 %v4967_v6, %v4968_v58  ;;  %v4976_v21 = vmax.f32 %v4974_v43, %v4975_v11  ;;  %v4982_v53 = vrot.slane %v4981_v47, 1  ;;  %v8904_v48 = vsel %vm5292_vm3, %v4962_v1, -inf }
 0x2c1   : > { %v5042_v26 = vmax.f32 %v5040_v9, %v5041_v57  ;;  %v5048_v19 = vrot.slane %v5047_v24, 4  ;;  %v5055_v30 = vrot.slane %v5054_v55, 4  ;;  %v5061_v12 = vsel %vm4395_vm2, %v4130_v22, -inf }
 0x2c2   : > { %v4983_v20 = vmax.f32 %v4981_v47, %v4982_v53  ;;  %v8908_v10 = vsel %vm5292_vm3, %v4969_v14, -inf  ;;  %v8911_v52 = vsel %vm5292_vm3, %v4976_v21, -inf  ;;  %v5062_v36 = vrot.slane %v5061_v12, 4 }
 0x2c3   : > { %v5043_v35 = vrot.slane %v5042_v26, 2  ;;  %v5049_v23 = vmax.f32 %v5047_v24, %v5048_v19  ;;  %v5056_v29 = vmax.f32 %v5054_v55, %v5055_v30  ;;  %v4104_v34 = vrot.slane %v3681_v32, %v8209_v2 }
 0x2c4   : > { %v8915_v5 = vsel %vm5292_vm3, %v4983_v20, -inf  ;;  %v5063_v59 = vmax.f32 %v5061_v12, %v5062_v36  ;;  %v4111_v42 = vrot.slane %v4097_v3, %v8209_v2  ;;  %v3684_v15 = vmax.f32 %v3652_v38, 0.0 }
 0x2c5   : > { %v5044_v63 = vmax.f32 %v5042_v26, %v5043_v35  ;;  %v5050_v25 = vrot.slane %v5049_v23, 2  ;;  %v5057_v27 = vrot.slane %v5056_v29, 2  ;;  %v4112_v33 = vcombine.high %v4104_v34, %v4104_v34 }
 0x2c6   : > { %v5064_v50 = vrot.slane %v5063_v59, 2  ;;  %v4113_v49 = vcombine.high %v4111_v42, %v4111_v42  ;;  %v5012_v13 = vsel %vm4395_vm2, %v4104_v34, -inf  ;;  %v5026_v56 = vsel %vm4395_vm2, %v4111_v42, -inf }
 0x2c7   : > { %v5045_v51 = vrot.slane %v5044_v63, 1  ;;  %v5051_v8 = vmax.f32 %v5049_v23, %v5050_v25  ;;  %v5058_v32 = vmax.f32 %v5056_v29, %v5057_v27  ;;  %v5013_v6 = vrot.slane %v5012_v13, 4 }
 0x2c8   : > { %v5065_v43 = vmax.f32 %v5063_v59, %v5064_v50  ;;  %v5019_v40 = vsel %vm4395_vm2, %v4112_v33, -inf  ;;  %v5027_v46 = vrot.slane %v5026_v56, 4  ;;  %v5033_v38 = vsel %vm4395_vm2, %v4113_v49, -inf }
 0x2c9   : > { %v5046_v61 = vmax.f32 %v5044_v63, %v5045_v51  ;;  %v5052_v9 = vrot.slane %v5051_v8, 1  ;;  %v5059_v3 = vrot.slane %v5058_v32, 1  ;;  %v5014_v1 = vmax.f32 %v5012_v13, %v5013_v6 }
 0x2ca   : > { %v5066_v58 = vrot.slane %v5065_v43, 1  ;;  %v5020_v11 = vrot.slane %v5019_v40, 4  ;;  %v5028_v47 = vmax.f32 %v5026_v56, %v5027_v46  ;;  %v5034_v22 = vrot.slane %v5033_v38, 4 }
 0x2cb   : > { %v5053_v57 = vmax.f32 %v5051_v8, %v5052_v9  ;;  %v5060_v24 = vmax.f32 %v5058_v32, %v5059_v3  ;;  %v8923_v55 = vsel %vm5292_vm3, %v5046_v61, -inf  ;;  %v5015_v14 = vrot.slane %v5014_v1, 2 }
 0x2cc   : > { %v5067_v21 = vmax.f32 %v5065_v43, %v5066_v58  ;;  %v5427_v53 = vmax.f32 %v8848_v44, %v8923_v55  ;;  %v5021_v26 = vmax.f32 %v5019_v40, %v5020_v11  ;;  %v5029_v19 = vrot.slane %v5028_v47, 2 }
 0x2cd   : > { %v8928_v30 = vsel %vm5292_vm3, %v5053_v57, -inf  ;;  %v8931_v12 = vsel %vm5292_vm3, %v5060_v24, -inf  ;;  %v5016_v20 = vmax.f32 %v5014_v1, %v5015_v14  ;;  %v5035_v36 = vmax.f32 %v5033_v38, %v5034_v22 }
 0x2ce   : > { %v5430_v35 = vmax.f32 %v8865_v45, %v8928_v30  ;;  %v5433_v23 = vmax.f32 %v8868_v28, %v8931_v12  ;;  %v8938_v29 = vsel %vm5292_vm3, %v5067_v21, -inf  ;;  %v5022_v34 = vrot.slane %v5021_v26, 2  ;;  %v8946_v45 = vld [vmem:[%s9144_s2] ss:$0 sm:$0xff] }
 0x2cf   : > { %v5436_v59 = vmax.f32 %v8883_v4, %v8938_v29  ;;  %v5017_v42 = vrot.slane %v5016_v20, 1  ;;  %v5030_v63 = vmax.f32 %v5028_v47, %v5029_v19  ;;  %v5036_v25 = vrot.slane %v5035_v36, 2 }
 0x2d0   : > { %v5023_v27 = vmax.f32 %v5021_v26, %v5022_v34  ;;  %v4148_v33 = vcombine.high %v3684_v15, %v3684_v15  ;;  %v4155_v50 = vrot.slane %v3684_v15, %v8209_v2  ;;  %v3651_v49 = vadd.f32 %v8946_v45, %v8895_v0 }
 0x2d1   : > { %v5018_v13 = vmax.f32 %v5016_v20, %v5017_v42  ;;  %v5031_v56 = vrot.slane %v5030_v63, 1  ;;  %v5037_v51 = vmax.f32 %v5035_v36, %v5036_v25  ;;  %v6967_v8 = vadd.f32 %v8605_v41, %v8603_v16 }
 0x2d2   : > { %v5024_v32 = vrot.slane %v5023_v27, 1  ;;  %v4162_v6 = vrot.slane %v4148_v33, %v8209_v2  ;;  %v4163_v43 = vcombine.high %v4155_v50, %v4155_v50  ;;  %v5096_v15 = vsel %vm4395_vm2, %v4155_v50, -inf }
 0x2d3   : > { %v5032_v40 = vmax.f32 %v5030_v63, %v5031_v56  ;;  %v5038_v46 = vrot.slane %v5037_v51, 1  ;;  %v5414_v38 = vsel %vm5292_vm3, %v5018_v13, -inf  ;;  %v5097_v61 = vrot.slane %v5096_v15, 4 }
 0x2d4   : > { %v5025_v9 = vmax.f32 %v5023_v27, %v5024_v32  ;;  %v5415_v0 = vmax.f32 %v8904_v48, %v5414_v38  ;;  %v4164_v3 = vcombine.high %v4162_v6, %v4162_v6  ;;  %v5103_v1 = vsel %vm4395_vm2, %v4163_v43, -inf }
 0x2d5   : > { %v5039_v58 = vmax.f32 %v5037_v51, %v5038_v46  ;;  %v5420_v16 = vsel %vm5292_vm3, %v5032_v40, -inf  ;;  %v5098_v41 = vmax.f32 %v5096_v15, %v5097_v61  ;;  %v5104_v11 = vrot.slane %v5103_v1, 4 }
 0x2d6   : > { %v5417_v47 = vsel %vm5292_vm3, %v5025_v9, -inf  ;;  %v5421_v22 = vmax.f32 %v8911_v52, %v5420_v16  ;;  %v5110_v57 = vsel %vm4395_vm2, %v4162_v6, -inf  ;;  %v5117_v24 = vsel %vm4395_vm2, %v4164_v3, -inf }
 0x2d7   : > { %v5418_v14 = vmax.f32 %v8908_v10, %v5417_v47  ;;  %v5423_v48 = vsel %vm5292_vm3, %v5039_v58, -inf  ;;  %v5099_v21 = vrot.slane %v5098_v41, 2  ;;  %v5105_v26 = vmax.f32 %v5103_v1, %v5104_v11 }
 0x2d8   : > { %v5424_v19 = vmax.f32 %v8915_v5, %v5423_v48  ;;  %v5111_v30 = vrot.slane %v5110_v57, 4  ;;  %v5118_v20 = vrot.slane %v5117_v24, 4  ;;  %v3683_v36 = vmax.f32 %v3651_v49, 0.0 }
 0x2d9   : > { %v5591_v34 = vsel %vm5549_vm4, %v5418_v14, %v5415_v0  ;;  %v5100_v42 = vmax.f32 %v5098_v41, %v5099_v21  ;;  %v5106_v63 = vrot.slane %v5105_v26, 2  ;;  %v3654_v52 = vadd.f32 %v8946_v45, %v6967_v8 }
 0x2da   : > { %v5592_v25 = vsel %vm5551_vm5, %v5421_v22, %v5591_v34  ;;  %v5112_v27 = vmax.f32 %v5110_v57, %v5111_v30  ;;  %v5119_v33 = vmax.f32 %v5117_v24, %v5118_v20  ;;  %v4131_v10 = vcombine.high %v3683_v36, %v3683_v36 }
 0x2db   : > { %v5593_v50 = vsel %vm5553_vm6, %v5424_v19, %v5592_v25  ;;  %v5101_v13 = vrot.slane %v5100_v42, 1  ;;  %v5107_v56 = vmax.f32 %v5105_v26, %v5106_v63  ;;  %v4138_v5 = vrot.slane %v3683_v36, %v8209_v2 }
 0x2dc   : > { %v5594_v49 = vsel %vm5555_vm7, %v5427_v53, %v5593_v50  ;;  %v5113_v51 = vrot.slane %v5112_v27, 2  ;;  %v5120_v32 = vrot.slane %v5119_v33, 2  ;;  %v4145_v8 = vrot.slane %v4131_v10, %v8209_v2 }
 0x2dd   : > { %v5595_v6 = vsel %vm5557_vm8, %v5430_v35, %v5594_v49  ;;  %v5102_v43 = vmax.f32 %v5100_v42, %v5101_v13  ;;  %v5108_v15 = vrot.slane %v5107_v56, 1  ;;  %v4146_v40 = vcombine.high %v4138_v5, %v4138_v5 }
 0x2de   : > { %v5596_v46 = vsel %vm5559_vm9, %v5433_v23, %v5595_v6  ;;  %v5114_v38 = vmax.f32 %v5112_v27, %v5113_v51  ;;  %v5121_v61 = vmax.f32 %v5119_v33, %v5120_v32  ;;  %v4147_v44 = vcombine.high %v4145_v8, %v4145_v8 }
 0x2df   : > { %v5597_v55 = vsel %vm5561_vm10, %v5436_v59, %v5596_v46  ;;  %v5109_v53 = vmax.f32 %v5107_v56, %v5108_v15  ;;  %v8985_v9 = vsel %vm5292_vm3, %v5102_v43, -inf  ;;  %v5068_v35 = vsel %vm4395_vm2, %v4138_v5, -inf }
 0x2e0   : > { %5625 = vst.msk [vmem:[%s8351_s13 + $0x28] sm:$0xff] %vm5292_vm3, %v5597_v55  ;;  %v5115_v0 = vrot.slane %v5114_v38, 1  ;;  %v5122_v28 = vrot.slane %v5121_v61, 1  ;;  %v5069_v12 = vrot.slane %v5068_v35, 4  ;;  %v5075_v23 = vsel %vm4395_vm2, %v4146_v40, -inf }
 0x2e1   : > { %v8992_v3 = vsel %vm5292_vm3, %v5109_v53, -inf  ;;  %v5076_v1 = vrot.slane %v5075_v23, 4  ;;  %v5082_v4 = vsel %vm4395_vm2, %v4145_v8, -inf  ;;  %v5089_v29 = vsel %vm4395_vm2, %v4147_v44, -inf }
 0x2e2   : > { %v5116_v59 = vmax.f32 %v5114_v38, %v5115_v0  ;;  %v5123_v58 = vmax.f32 %v5121_v61, %v5122_v28  ;;  %v5070_v16 = vmax.f32 %v5068_v35, %v5069_v12  ;;  %v5083_v41 = vrot.slane %v5082_v4, 4 }
 0x2e3   : > { %v5077_v11 = vmax.f32 %v5075_v23, %v5076_v1  ;;  %v5090_v47 = vrot.slane %v5089_v29, 4  ;;  %v3686_v22 = vmax.f32 %v3654_v52, 0.0  ;;  %v6968_v57 = vadd.f32 %v8643_v37, %v8641_v18 }
 0x2e4   : > { %v8999_v24 = vsel %vm5292_vm3, %v5116_v59, -inf  ;;  %v9002_v14 = vsel %vm5292_vm3, %v5123_v58, -inf  ;;  %v5071_v48 = vrot.slane %v5070_v16, 2  ;;  %v5084_v21 = vmax.f32 %v5082_v4, %v5083_v41 }
 0x2e5   : > { %v5078_v26 = vrot.slane %v5077_v11, 2  ;;  %v5091_v19 = vmax.f32 %v5089_v29, %v5090_v47  ;;  %v4182_v30 = vcombine.high %v3686_v22, %v3686_v22  ;;  %v4189_v20 = vrot.slane %v3686_v22, %v8209_v2 }
 0x2e6   : > { %v5072_v36 = vmax.f32 %v5070_v16, %v5071_v48  ;;  %v5085_v34 = vrot.slane %v5084_v21, 2  ;;  %v3653_v42 = vadd.f32 %v8946_v45, %v6968_v57  ;;  %v6969_v18 = vadd.f32 %v8668_v39, %v8666_v7 }
 0x2e7   : > { %v5079_v37 = vmax.f32 %v5077_v11, %v5078_v26  ;;  %v5092_v63 = vrot.slane %v5091_v19, 2  ;;  %v4196_v52 = vrot.slane %v4182_v30, %v8209_v2  ;;  %v4197_v25 = vcombine.high %v4189_v20, %v4189_v20 }
 0x2e8   : > { %v5073_v27 = vrot.slane %v5072_v36, 1  ;;  %v5086_v33 = vmax.f32 %v5084_v21, %v5085_v34  ;;  %v5152_v10 = vsel %vm4395_vm2, %v4189_v20, -inf  ;;  %v3685_v50 = vmax.f32 %v3653_v42, 0.0 }
 0x2e9   : > { %v5080_v13 = vrot.slane %v5079_v37, 1  ;;  %v5093_v56 = vmax.f32 %v5091_v19, %v5092_v63  ;;  %v4198_v5 = vcombine.high %v4196_v52, %v4196_v52  ;;  %v5153_v49 = vrot.slane %v5152_v10, 4 }
 0x2ea   : > { %v5074_v51 = vmax.f32 %v5072_v36, %v5073_v27  ;;  %v5087_v32 = vrot.slane %v5086_v33, 1  ;;  %v5159_v8 = vsel %vm4395_vm2, %v4197_v25, -inf  ;;  %v5166_v7 = vsel %vm4395_vm2, %v4196_v52, -inf }
 0x2eb   : > { %v5081_v39 = vmax.f32 %v5079_v37, %v5080_v13  ;;  %v5094_v6 = vrot.slane %v5093_v56, 1  ;;  %v5154_v43 = vmax.f32 %v5152_v10, %v5153_v49  ;;  %v5160_v15 = vrot.slane %v5159_v8, 4 }
 0x2ec   : > { %v5088_v40 = vmax.f32 %v5086_v33, %v5087_v32  ;;  %v9013_v46 = vsel %vm5292_vm3, %v5074_v51, -inf  ;;  %v5167_v38 = vrot.slane %v5166_v7, 4  ;;  %v5173_v61 = vsel %vm4395_vm2, %v4198_v5, -inf }
 0x2ed   : > { %v5095_v44 = vmax.f32 %v5093_v56, %v5094_v6  ;;  %v9017_v55 = vsel %vm5292_vm3, %v5081_v39, -inf  ;;  %v5155_v53 = vrot.slane %v5154_v43, 2  ;;  %v5161_v35 = vmax.f32 %v5159_v8, %v5160_v15 }
 0x2ee   : > { %v9020_v0 = vsel %vm5292_vm3, %v5088_v40, -inf  ;;  %v5168_v28 = vmax.f32 %v5166_v7, %v5167_v38  ;;  %v5174_v12 = vrot.slane %v5173_v61, 4  ;;  %v4165_v23 = vcombine.high %v3685_v50, %v3685_v50 }
 0x2ef   : > { %v9023_v1 = vsel %vm5292_vm3, %v5095_v44, -inf  ;;  %v5156_v4 = vmax.f32 %v5154_v43, %v5155_v53  ;;  %v5162_v29 = vrot.slane %v5161_v35, 2  ;;  %v4172_v59 = vrot.slane %v3685_v50, %v8209_v2 }
 0x2f0   : > { %v5169_v58 = vrot.slane %v5168_v28, 2  ;;  %v5175_v16 = vmax.f32 %v5173_v61, %v5174_v12  ;;  %v4179_v41 = vrot.slane %v4165_v23, %v8209_v2  ;;  %v3656_v11 = vadd.f32 %v8946_v45, %v6969_v18 }
 0x2f1   : > { %v5157_v47 = vrot.slane %v5156_v4, 1  ;;  %v5163_v22 = vmax.f32 %v5161_v35, %v5162_v29  ;;  %v4180_v57 = vcombine.high %v4172_v59, %v4172_v59  ;;  %v5124_v48 = vsel %vm4395_vm2, %v4172_v59, -inf }
 0x2f2   : > { %v5170_v21 = vmax.f32 %v5168_v28, %v5169_v58  ;;  %v5176_v26 = vrot.slane %v5175_v16, 2  ;;  %v4181_v19 = vcombine.high %v4179_v41, %v4179_v41  ;;  %v5125_v30 = vrot.slane %v5124_v48, 4  ;;  %v9272_v28 = vld [vmem:[#allocation16_spill] sm:$0xff] }
 0x2f3   : > { %v5158_v20 = vmax.f32 %v5156_v4, %v5157_v47  ;;  %v5164_v36 = vrot.slane %v5163_v22, 1  ;;  %v5131_v34 = vsel %vm4395_vm2, %v4180_v57, -inf  ;;  %v5138_v42 = vsel %vm4395_vm2, %v4179_v41, -inf }
 0x2f4   : > { %v5171_v37 = vrot.slane %v5170_v21, 1  ;;  %v5177_v63 = vmax.f32 %v5175_v16, %v5176_v26  ;;  %v5126_v52 = vmax.f32 %v5124_v48, %v5125_v30  ;;  %v5132_v25 = vrot.slane %v5131_v34, 4 }
 0x2f5   : > { %v5165_v18 = vmax.f32 %v5163_v22, %v5164_v36  ;;  %v9032_v27 = vsel %vm5292_vm3, %v5158_v20, -inf  ;;  %v5139_v33 = vrot.slane %v5138_v42, 4  ;;  %v5145_v10 = vsel %vm4395_vm2, %v4181_v19, -inf }
 0x2f6   : > { %v5172_v50 = vmax.f32 %v5170_v21, %v5171_v37  ;;  %v5178_v13 = vrot.slane %v5177_v63, 1  ;;  %v5451_v56 = vmax.f32 %v8985_v9, %v9032_v27  ;;  %v5127_v5 = vrot.slane %v5126_v52, 2 }
 0x2f7   : > { %v9038_v49 = vsel %vm5292_vm3, %v5165_v18, -inf  ;;  %v5133_v51 = vmax.f32 %v5131_v34, %v5132_v25  ;;  %v5140_v32 = vmax.f32 %v5138_v42, %v5139_v33  ;;  %v5146_v8 = vrot.slane %v5145_v10, 4 }
 0x2f8   : > { %v5179_v7 = vmax.f32 %v5177_v63, %v5178_v13  ;;  %v5454_v39 = vmax.f32 %v8992_v3, %v9038_v49  ;;  %v9043_v6 = vsel %vm5292_vm3, %v5172_v50, -inf  ;;  %v5128_v43 = vmax.f32 %v5126_v52, %v5127_v5 }
 0x2f9   : > { %v5457_v15 = vmax.f32 %v8999_v24, %v9043_v6  ;;  %v5134_v40 = vrot.slane %v5133_v51, 2  ;;  %v5141_v38 = vrot.slane %v5140_v32, 2  ;;  %v5147_v61 = vmax.f32 %v5145_v10, %v5146_v8 }
 0x2fa   : > { %v5459_v44 = vsel %vm5292_vm3, %v5179_v7, -inf  ;;  %v5129_v53 = vrot.slane %v5128_v43, 1  ;;  %v3688_v35 = vmax.f32 %v3656_v11, 0.0  ;;  %v6970_v12 = vadd.f32 %v9272_v28, %v8696_v60 }
 0x2fb   : > { %v5460_v23 = vmax.f32 %v9002_v14, %v5459_v44  ;;  %v5135_v3 = vmax.f32 %v5133_v51, %v5134_v40  ;;  %v5142_v4 = vmax.f32 %v5140_v32, %v5141_v38  ;;  %v5148_v29 = vrot.slane %v5147_v61, 2 }
 0x2fc   : > { %v5130_v59 = vmax.f32 %v5128_v43, %v5129_v53  ;;  %v4216_v58 = vcombine.high %v3688_v35, %v3688_v35  ;;  %v4223_v16 = vrot.slane %v3688_v35, %v8209_v2  ;;  %v3655_v24 = vadd.f32 %v8946_v45, %v6970_v12 }
 0x2fd   : > { %v5136_v41 = vrot.slane %v5135_v3, 1  ;;  %v5143_v47 = vrot.slane %v5142_v4, 1  ;;  %v5149_v22 = vmax.f32 %v5147_v61, %v5148_v29  ;;  %v6971_v11 = vadd.f32 %v8727_v54, %v8725_v31 }
 0x2fe   : > { %v5438_v57 = vsel %vm5292_vm3, %v5130_v59, -inf  ;;  %v4230_v60 = vrot.slane %v4216_v58, %v8209_v2  ;;  %v4231_v14 = vcombine.high %v4223_v16, %v4223_v16  ;;  %v5208_v48 = vsel %vm4395_vm2, %v4223_v16, -inf }
 0x2ff   : > { %v5137_v21 = vmax.f32 %v5135_v3, %v5136_v41  ;;  %v5144_v26 = vmax.f32 %v5142_v4, %v5143_v47  ;;  %v5150_v19 = vrot.slane %v5149_v22, 1  ;;  %v5439_v30 = vmax.f32 %v9013_v46, %v5438_v57 }
 0x300   : > { %v4232_v20 = vcombine.high %v4230_v60, %v4230_v60  ;;  %v5209_v36 = vrot.slane %v5208_v48, 4  ;;  %v5215_v34 = vsel %vm4395_vm2, %v4231_v14, -inf  ;;  %v5222_v42 = vsel %vm4395_vm2, %v4230_v60, -inf }
 0x301   : > { %v5151_v37 = vmax.f32 %v5149_v22, %v5150_v19  ;;  %v5441_v31 = vsel %vm5292_vm3, %v5137_v21, -inf  ;;  %v5444_v54 = vsel %vm5292_vm3, %v5144_v26, -inf  ;;  %v5216_v63 = vrot.slane %v5215_v34, 4 }
 0x302   : > { %v5442_v52 = vmax.f32 %v9017_v55, %v5441_v31  ;;  %v5445_v25 = vmax.f32 %v9020_v0, %v5444_v54  ;;  %v5210_v18 = vmax.f32 %v5208_v48, %v5209_v36  ;;  %v5223_v33 = vrot.slane %v5222_v42, 4 }
 0x303   : > { %v5447_v46 = vsel %vm5292_vm3, %v5151_v37, -inf  ;;  %v5217_v10 = vmax.f32 %v5215_v34, %v5216_v63  ;;  %v5229_v50 = vsel %vm4395_vm2, %v4232_v20, -inf  ;;  %v3687_v13 = vmax.f32 %v3655_v24, 0.0 }
 0x304   : > { %v5448_v5 = vmax.f32 %v9023_v1, %v5447_v46  ;;  %v5598_v49 = vsel %vm5549_vm4, %v5442_v52, %v5439_v30  ;;  %v5211_v51 = vrot.slane %v5210_v18, 2  ;;  %v5224_v32 = vmax.f32 %v5222_v42, %v5223_v33 }
 0x305   : > { %v5599_v8 = vsel %vm5551_vm5, %v5445_v25, %v5598_v49  ;;  %v5230_v7 = vrot.slane %v5229_v50, 4  ;;  %v4199_v55 = vcombine.high %v3687_v13, %v3687_v13  ;;  %v4206_v6 = vrot.slane %v3687_v13, %v8209_v2 }
 0x306   : > { %v5600_v0 = vsel %vm5553_vm6, %v5448_v5, %v5599_v8  ;;  %v5218_v40 = vrot.slane %v5217_v10, 2  ;;  %v5225_v1 = vrot.slane %v5224_v32, 2  ;;  %v5212_v44 = vmax.f32 %v5210_v18, %v5211_v51 }
 0x307   : > { %v5601_v43 = vsel %vm5555_vm7, %v5451_v56, %v5600_v0  ;;  %v5231_v38 = vmax.f32 %v5229_v50, %v5230_v7  ;;  %v4213_v53 = vrot.slane %v4199_v55, %v8209_v2  ;;  %v4214_v35 = vcombine.high %v4206_v6, %v4206_v6 }
 0x308   : > { %v5602_v61 = vsel %vm5557_vm8, %v5454_v39, %v5601_v43  ;;  %v5180_v4 = vsel %vm4395_vm2, %v4206_v6, -inf  ;;  %v5219_v9 = vmax.f32 %v5217_v10, %v5218_v40  ;;  %v5226_v27 = vmax.f32 %v5224_v32, %v5225_v1 }
 0x309   : > { %v5603_v28 = vsel %vm5559_vm9, %v5457_v15, %v5602_v61  ;;  %v5232_v12 = vrot.slane %v5231_v38, 2  ;;  %v5213_v56 = vrot.slane %v5212_v44, 1  ;;  %v4215_v29 = vcombine.high %v4213_v53, %v4213_v53 }
 0x30a   : > { %v5604_v3 = vsel %vm5561_vm10, %v5460_v23, %v5603_v28  ;;  %v5187_v59 = vsel %vm4395_vm2, %v4214_v35, -inf  ;;  %v5181_v58 = vrot.slane %v5180_v4, 4  ;;  %v5194_v16 = vsel %vm4395_vm2, %v4213_v53, -inf }
 0x30b   : > { %5626 = vst.msk [vmem:[%s8351_s13 + $0x30] sm:$0xff] %vm5292_vm3, %v5604_v3  ;;  %v5233_v39 = vmax.f32 %v5231_v38, %v5232_v12  ;;  %v3658_v24 = vadd.f32 %v8946_v45, %v6971_v11  ;;  %v5220_v15 = vrot.slane %v5219_v9, 1  ;;  %v5227_v41 = vrot.slane %v5226_v27, 1 }
 0x30c   : > { %v5188_v47 = vrot.slane %v5187_v59, 4  ;;  %v5214_v23 = vmax.f32 %v5212_v44, %v5213_v56  ;;  %v5201_v22 = vsel %vm4395_vm2, %v4215_v29, -inf  ;;  %v6972_v60 = vadd.f32 %v8769_v17, %v8767_v62 }
 0x30d   : > { %v3690_v57 = vmax.f32 %v3658_v24, 0.0  ;;  %v5234_v14 = vrot.slane %v5233_v39, 1  ;;  %v5182_v48 = vmax.f32 %v5180_v4, %v5181_v58  ;;  %v5195_v21 = vrot.slane %v5194_v16, 4 }
 0x30e   : > { %v5221_v30 = vmax.f32 %v5219_v9, %v5220_v15  ;;  %v5228_v20 = vmax.f32 %v5226_v27, %v5227_v41  ;;  %v5189_v36 = vmax.f32 %v5187_v59, %v5188_v47  ;;  %v5202_v11 = vrot.slane %v5201_v22, 4 }
 0x30f   : > { %v4250_v26 = vcombine.high %v3690_v57, %v3690_v57  ;;  %v4257_v19 = vrot.slane %v3690_v57, %v8209_v2  ;;  %v9091_v34 = vsel %vm5292_vm3, %v5214_v23, -inf  ;;  %v5235_v54 = vmax.f32 %v5233_v39, %v5234_v14 }
 0x310   : > { %v5183_v62 = vrot.slane %v5182_v48, 2  ;;  %v5196_v17 = vmax.f32 %v5194_v16, %v5195_v21  ;;  %v3657_v33 = vadd.f32 %v8946_v45, %v6972_v60  ;;  %v9099_v46 = vsel %vm5292_vm3, %v5221_v30, -inf }
 0x311   : > { %v4264_v42 = vrot.slane %v4250_v26, %v8209_v2  ;;  %v4265_v37 = vcombine.high %v4257_v19, %v4257_v19  ;;  %v5264_v31 = vsel %vm4395_vm2, %v4257_v19, -inf  ;;  %v5190_v10 = vrot.slane %v5189_v36, 2 }
 0x312   : > { %v5265_v63 = vrot.slane %v5264_v31, 4  ;;  %v5203_v50 = vmax.f32 %v5201_v22, %v5202_v11  ;;  %v9102_v5 = vsel %vm5292_vm3, %v5228_v20, -inf  ;;  %v5184_v8 = vmax.f32 %v5182_v48, %v5183_v62 }
 0x313   : > { %v4266_v52 = vcombine.high %v4264_v42, %v4264_v42  ;;  %v5271_v25 = vsel %vm4395_vm2, %v4265_v37, -inf  ;;  %v5278_v18 = vsel %vm4395_vm2, %v4264_v42, -inf  ;;  %v5197_v7 = vrot.slane %v5196_v17, 2 }
 0x314   : > { %v5266_v13 = vmax.f32 %v5264_v31, %v5265_v63  ;;  %v5272_v49 = vrot.slane %v5271_v25, 4  ;;  %v5279_v51 = vrot.slane %v5278_v18, 4  ;;  %v9106_v6 = vsel %vm5292_vm3, %v5235_v54, -inf }
 0x315   : > { %v5285_v32 = vsel %vm4395_vm2, %v4266_v52, -inf  ;;  %v3689_v40 = vmax.f32 %v3657_v33, 0.0  ;;  %v5191_v1 = vmax.f32 %v5189_v36, %v5190_v10  ;;  %v5204_v38 = vrot.slane %v5203_v50, 2 }
 0x316   : > { %v5267_v55 = vrot.slane %v5266_v13, 2  ;;  %v5286_v0 = vrot.slane %v5285_v32, 4  ;;  %v5273_v45 = vmax.f32 %v5271_v25, %v5272_v49  ;;  %v5280_v43 = vmax.f32 %v5278_v18, %v5279_v51 }
 0x317   : > { %v4233_v28 = vcombine.high %v3689_v40, %v3689_v40  ;;  %v4240_v12 = vrot.slane %v3689_v40, %v8209_v2  ;;  %v5185_v3 = vrot.slane %v5184_v8, 1  ;;  %v5198_v4 = vmax.f32 %v5196_v17, %v5197_v7 }
 0x318   : > { %v5268_v61 = vmax.f32 %v5266_v13, %v5267_v55  ;;  %v5287_v44 = vmax.f32 %v5285_v32, %v5286_v0  ;;  %v5274_v53 = vrot.slane %v5273_v45, 2  ;;  %v5281_v35 = vrot.slane %v5280_v43, 2 }
 0x319   : > { %v4247_v59 = vrot.slane %v4233_v28, %v8209_v2  ;;  %v4248_v39 = vcombine.high %v4240_v12, %v4240_v12  ;;  %v5205_v58 = vmax.f32 %v5203_v50, %v5204_v38  ;;  %v5236_v15 = vsel %vm4395_vm2, %v4240_v12, -inf }
 0x31a   : > { %v5269_v9 = vrot.slane %v5268_v61, 1  ;;  %v5288_v27 = vrot.slane %v5287_v44, 2  ;;  %v5275_v56 = vmax.f32 %v5273_v45, %v5274_v53  ;;  %v5282_v29 = vmax.f32 %v5280_v43, %v5281_v35 }
 0x31b   : > { %v4249_v23 = vcombine.high %v4247_v59, %v4247_v59  ;;  %v5237_v22 = vrot.slane %v5236_v15, 4  ;;  %v5243_v14 = vsel %vm4395_vm2, %v4248_v39, -inf  ;;  %v5250_v48 = vsel %vm4395_vm2, %v4247_v59, -inf }
 0x31c   : > { %v5270_v16 = vmax.f32 %v5268_v61, %v5269_v9  ;;  %v5289_v24 = vmax.f32 %v5287_v44, %v5288_v27  ;;  %v5276_v41 = vrot.slane %v5275_v56, 1  ;;  %v5283_v47 = vrot.slane %v5282_v29, 1 }
 0x31d   : > { %v5238_v19 = vmax.f32 %v5236_v15, %v5237_v22  ;;  %v5244_v20 = vrot.slane %v5243_v14, 4  ;;  %v5251_v36 = vrot.slane %v5250_v48, 4  ;;  %v5257_v11 = vsel %vm4395_vm2, %v4249_v23, -inf }
 0x31e   : > { %v5290_v57 = vrot.slane %v5289_v24, 1  ;;  %v5474_v60 = vsel %vm5292_vm3, %v5270_v16, -inf  ;;  %v5277_v21 = vmax.f32 %v5275_v56, %v5276_v41  ;;  %v5284_v26 = vmax.f32 %v5282_v29, %v5283_v47 }
 0x31f   : > { %v5475_v2 = vmax.f32 %v9091_v34, %v5474_v60  ;;  %v5239_v31 = vrot.slane %v5238_v19, 2  ;;  %v5258_v54 = vrot.slane %v5257_v11, 4  ;;  %v5245_v52 = vmax.f32 %v5243_v14, %v5244_v20 }
 0x320   : > { %v5291_v30 = vmax.f32 %v5289_v24, %v5290_v57  ;;  %v5477_v42 = vsel %vm5292_vm3, %v5277_v21, -inf  ;;  %v5480_v37 = vsel %vm5292_vm3, %v5284_v26, -inf  ;;  %v5252_v18 = vmax.f32 %v5250_v48, %v5251_v36 }
 0x321   : > { %v5478_v62 = vmax.f32 %v9099_v46, %v5477_v42  ;;  %v5481_v17 = vmax.f32 %v9102_v5, %v5480_v37  ;;  %v5240_v25 = vmax.f32 %v5238_v19, %v5239_v31  ;;  %v5259_v33 = vmax.f32 %v5257_v11, %v5258_v54 }
 0x322   : > { %v5483_v63 = vsel %vm5292_vm3, %v5291_v30, -inf  ;;  %v5186_v10 = vmax.f32 %v5184_v8, %v5185_v3  ;;  %v5192_v50 = vrot.slane %v5191_v1, 1  ;;  %v5199_v13 = vrot.slane %v5198_v4, 1 }
 0x323   : > { %v5484_v34 = vmax.f32 %v9106_v6, %v5483_v63  ;;  %v5246_v49 = vrot.slane %v5245_v52, 2  ;;  %v5206_v51 = vrot.slane %v5205_v58, 1  ;;  %v5241_v32 = vrot.slane %v5240_v25, 1 }
 0x324   : > { %v5253_v7 = vrot.slane %v5252_v18, 2  ;;  %v5260_v55 = vrot.slane %v5259_v33, 2  ;;  %v5193_v43 = vmax.f32 %v5191_v1, %v5192_v50  ;;  %v5200_v40 = vmax.f32 %v5198_v4, %v5199_v13 }
 0x325   : > { %v5247_v0 = vmax.f32 %v5245_v52, %v5246_v49  ;;  %v5242_v46 = vmax.f32 %v5240_v25, %v5241_v32  ;;  %v5461_v38 = vsel %vm5292_vm3, %v5186_v10, -inf  ;;  %v5207_v61 = vmax.f32 %v5205_v58, %v5206_v51 }
 0x326   : > { %v5254_v45 = vmax.f32 %v5252_v18, %v5253_v7  ;;  %v5261_v5 = vmax.f32 %v5259_v33, %v5260_v55  ;;  %v5464_v9 = vsel %vm5292_vm3, %v5193_v43, -inf  ;;  %v5467_v27 = vsel %vm5292_vm3, %v5200_v40, -inf }
 0x327   : > { %v5248_v6 = vrot.slane %v5247_v0, 1  ;;  %v5462_v8 = vsel %vm5292_vm3, %v5242_v46, -inf  ;;  %v5470_v4 = vsel %vm5292_vm3, %v5207_v61, -inf }
 0x328   : > { %v5255_v44 = vrot.slane %v5254_v45, 1  ;;  %v5262_v53 = vrot.slane %v5261_v5, 1  ;;  %v5463_v28 = vmax.f32 %v5461_v38, %v5462_v8 }
 0x329   : > { %v5249_v35 = vmax.f32 %v5247_v0, %v5248_v6 }
 0x32a   : > { %v5256_v12 = vmax.f32 %v5254_v45, %v5255_v44  ;;  %v5263_v3 = vmax.f32 %v5261_v5, %v5262_v53 }
 0x32b   : > { %v5465_v1 = vsel %vm5292_vm3, %v5249_v35, -inf }
 0x32c   : > { %v5466_v56 = vmax.f32 %v5464_v9, %v5465_v1  ;;  %v5468_v29 = vsel %vm5292_vm3, %v5256_v12, -inf  ;;  %v5471_v59 = vsel %vm5292_vm3, %v5263_v3, -inf }
 0x32d   : > { %v5469_v39 = vmax.f32 %v5467_v27, %v5468_v29  ;;  %v5472_v58 = vmax.f32 %v5470_v4, %v5471_v59 }
 0x32e   : > { %v5605_v16 = vsel %vm5549_vm4, %v5466_v56, %v5463_v28 }
 0x32f   : > { %v5606_v24 = vsel %vm5551_vm5, %v5469_v39, %v5605_v16 }
 0x330   : > { %v5607_v15 = vsel %vm5553_vm6, %v5472_v58, %v5606_v24 }
 0x331   : > { %v5608_v41 = vsel %vm5555_vm7, %v5475_v2, %v5607_v15 }
 0x332   : > { %v5609_v47 = vsel %vm5557_vm8, %v5478_v62, %v5608_v41 }
 0x333   : > { %v5610_v23 = vsel %vm5559_vm9, %v5481_v17, %v5609_v47 }
 0x334   : > { %v5611_v22 = vsel %vm5561_vm10, %v5484_v34, %v5610_v23 }
 0x335   : > { %5627 = vst.msk [vmem:[%s8351_s13 + $0x38] sm:$0xff] %vm5292_vm3, %v5611_v22 }
 0x336 PF: > { %s13_s12 = sadd.s32 1, %s7215_s12  }
 0x337   : > { %p10_p4 = scmp.ge.s32.totalorder %s13_s12, 6  }
 0x339   :  { %12 = sbr.rel (!%p10_p4) target bundleno = 1 (0x1), region = 72 }

// kernel: siamese_forward.5
= control target key start
LH: loop header
LB: loop body
LE: loop exit
PB: predicated region body
PF: predicated region fallthrough
CT: control target
= control target key end

     0   :  { %s3413_s0 = inlined_call_operand.vmem [shape: f32[4,2048], index: 0, kind: input, shape index: {}]   ;;  %s3414_s1 = inlined_call_operand.vmem [shape: f32[4,16,128], index: 1, kind: input, shape index: {}]   ;;  %s3415_s2 = inlined_call_operand.vmem [shape: f32[2048,128], index: 2, kind: input, shape index: {}]   ;;  %s3416_s3 = inlined_call_operand.vmem [shape: f32[1,128], index: 3, kind: input, shape index: {}]   ;;  %s3417_s4 = inlined_call_operand.vmem [shape: f32[128,1], index: 4, kind: input, shape index: {}]   ;;  %s3418_s5 = inlined_call_operand.<no memory space> [shape: f32[1,1], index: 5, kind: input, shape index: {}]   ;;  %s3419_s6 = inlined_call_operand.vmem [shape: f32[256,128], index: 6, kind: input, shape index: {}]   ;;  %s3420_s7 = inlined_call_operand.vmem [shape: f32[1,128], index: 7, kind: input, shape index: {}]   ;;  %s3421_s8 = inlined_call_operand.vmem [shape: f32[128,64], index: 8, kind: input, shape index: {}]   ;;  %s3422_s9 = inlined_call_operand.vmem [shape: f32[1,64], index: 9, kind: input, shape index: {}]   ;;  %s3423_s10 = inlined_call_operand.vmem [shape: f32[64,128], index: 10, kind: input, shape index: {}]   ;;  %s3424_s11 = inlined_call_operand.vmem [shape: f32[1,128], index: 11, kind: input, shape index: {}]   ;;  %s3425_s12 = inlined_call_operand.vmem [shape: f32[4,1], index: 12, kind: output, shape index: {0}]   ;;  %s3426_s13 = inlined_call_operand.hbm [shape: f32[2,128], index: 13, kind: output, shape index: {1}]  }
   0x1   :  { %v19_v0 = vstv %s3418_s5 }
   0x2   :  { %20 = vst [vmem:[#allocation2] sm:$0x1] %v19_v0 }
   0x3   :  { %v70_v1 = vld [vmem:[%s3415_s2 + $0x80] sm:$0xff]  ;;  %v71_v2 = vld [vmem:[%s3415_s2 + $0x88] sm:$0xff]  ;;  %v72_v12 = vld [vmem:[%s3415_s2 + $0x90] sm:$0xff] }
   0x4   :  { %v54_v3 = vld [vmem:[%s3415_s2] sm:$0xff]  ;;  %v1830_v4 = vpack.c.bf16 %v71_v2, %v70_v1  ;;  %v55_v5 = vld [vmem:[%s3415_s2 + $0x8] sm:$0xff]  ;;  %v73_v14 = vld [vmem:[%s3415_s2 + $0x98] sm:$0xff] }
   0x5   :  { %v102_v6 = vld [vmem:[%s3415_s2 + $0x180] sm:$0xff]  ;;  %v103_v7 = vld [vmem:[%s3415_s2 + $0x188] sm:$0xff]  ;;  %v1832_v8 = vpack.c.bf16 %v55_v5, %v54_v3  ;;  %v56_v15 = vld [vmem:[%s3415_s2 + $0x10] sm:$0xff]  ;;  %v1834_v17 = vpack.c.bf16 %v73_v14, %v72_v12 }
   0x6   :  { %v1862_v9 = vpack.c.bf16 %v103_v7, %v102_v6  ;;  %v86_v10 = vld [vmem:[%s3415_s2 + $0x100] sm:$0xff]  ;;  %v87_v11 = vld [vmem:[%s3415_s2 + $0x108] sm:$0xff]  ;;  %1831 = vmatprep.subr.bf16.mxu0 %v1830_v4  ;;  %v57_v16 = vld [vmem:[%s3415_s2 + $0x18] sm:$0xff] }
   0x7   :  { %v1864_v13 = vpack.c.bf16 %v87_v11, %v86_v10  ;;  %1833 = vmatpush3.bf16.msra.mxu0 %v1832_v8  ;;  %v1836_v18 = vpack.c.bf16 %v57_v16, %v56_v15  ;;  %v104_v19 = vld [vmem:[%s3415_s2 + $0x190] sm:$0xff]  ;;  %v105_v20 = vld [vmem:[%s3415_s2 + $0x198] sm:$0xff]  ;;  %v74_v24 = vld [vmem:[%s3415_s2 + $0xa0] sm:$0xff] }
   0x8   :  { %1863 = vmatprep.subr.bf16.mxu1 %v1862_v9  ;;  %v88_v21 = vld [vmem:[%s3415_s2 + $0x110] sm:$0xff]  ;;  %v1866_v22 = vpack.c.bf16 %v105_v20, %v104_v19  ;;  %v89_v23 = vld [vmem:[%s3415_s2 + $0x118] sm:$0xff]  ;;  %v75_v25 = vld [vmem:[%s3415_s2 + $0xa8] sm:$0xff]  ;;  %1835 = vmatprep.subr.bf16.mxu0 %v1834_v17 }
   0x9   :  { %1865 = vmatpush3.bf16.msra.mxu1 %v1864_v13  ;;  %v1868_v26 = vpack.c.bf16 %v89_v23, %v88_v21  ;;  %v1838_v27 = vpack.c.bf16 %v75_v25, %v74_v24  ;;  %v58_v28 = vld [vmem:[%s3415_s2 + $0x20] sm:$0xff]  ;;  %v59_v29 = vld [vmem:[%s3415_s2 + $0x28] sm:$0xff]  ;;  %v76_v36 = vld [vmem:[%s3415_s2 + $0xb0] sm:$0xff] }
   0xa   :  { %v106_v30 = vld [vmem:[%s3415_s2 + $0x1a0] sm:$0xff]  ;;  %1867 = vmatprep.subr.bf16.mxu1 %v1866_v22  ;;  %v107_v31 = vld [vmem:[%s3415_s2 + $0x1a8] sm:$0xff]  ;;  %v1840_v34 = vpack.c.bf16 %v59_v29, %v58_v28  ;;  %v77_v37 = vld [vmem:[%s3415_s2 + $0xb8] sm:$0xff] }
   0xb   :  { %v90_v32 = vld [vmem:[%s3415_s2 + $0x120] sm:$0xff]  ;;  %v91_v33 = vld [vmem:[%s3415_s2 + $0x128] sm:$0xff]  ;;  %1837 = vmatpush3.bf16.msra.mxu0 %v1836_v18  ;;  %v1870_v35 = vpack.c.bf16 %v107_v31, %v106_v30  ;;  %v60_v38 = vld [vmem:[%s3415_s2 + $0x30] sm:$0xff]  ;;  %v1842_v40 = vpack.c.bf16 %v77_v37, %v76_v36 }
   0xc   :  { %1839 = vmatprep.subr.bf16.mxu0 %v1838_v27  ;;  %v1872_v39 = vpack.c.bf16 %v91_v33, %v90_v32  ;;  %v61_v41 = vld [vmem:[%s3415_s2 + $0x38] sm:$0xff]  ;;  %v108_v42 = vld [vmem:[%s3415_s2 + $0x1b0] sm:$0xff]  ;;  %v78_v47 = vld [vmem:[%s3415_s2 + $0xc0] sm:$0xff] }
   0xd   :  { %1869 = vmatpush3.bf16.msra.mxu1 %v1868_v26  ;;  %v109_v43 = vld [vmem:[%s3415_s2 + $0x1b8] sm:$0xff]  ;;  %v92_v45 = vld [vmem:[%s3415_s2 + $0x130] sm:$0xff]  ;;  %v79_v48 = vld [vmem:[%s3415_s2 + $0xc8] sm:$0xff]  ;;  %v1844_v49 = vpack.c.bf16 %v61_v41, %v60_v38 }
   0xe   :  { %1871 = vmatprep.subr.bf16.mxu1 %v1870_v35  ;;  %v1874_v44 = vpack.c.bf16 %v109_v43, %v108_v42  ;;  %v93_v46 = vld [vmem:[%s3415_s2 + $0x138] sm:$0xff]  ;;  %v110_v50 = vld [vmem:[%s3415_s2 + $0x1c0] sm:$0xff]  ;;  %v111_v51 = vld [vmem:[%s3415_s2 + $0x1c8] sm:$0xff]  ;;  %v1846_v53 = vpack.c.bf16 %v79_v48, %v78_v47 }
   0xf   :  { %1841 = vmatpush3.bf16.msra.mxu0 %v1840_v34  ;;  %v1876_v52 = vpack.c.bf16 %v93_v46, %v92_v45  ;;  %v62_v54 = vld [vmem:[%s3415_s2 + $0x40] sm:$0xff]  ;;  %v63_v55 = vld [vmem:[%s3415_s2 + $0x48] sm:$0xff]  ;;  %v1878_v57 = vpack.c.bf16 %v111_v51, %v110_v50  ;;  %v80_v59 = vld [vmem:[%s3415_s2 + $0xd0] sm:$0xff] }
  0x10   :  { %1843 = vmatprep.subr.bf16.mxu0 %v1842_v40  ;;  %v94_v56 = vld [vmem:[%s3415_s2 + $0x140] sm:$0xff]  ;;  %v95_v58 = vld [vmem:[%s3415_s2 + $0x148] sm:$0xff]  ;;  %v81_v60 = vld [vmem:[%s3415_s2 + $0xd8] sm:$0xff]  ;;  %v1848_v63 = vpack.c.bf16 %v63_v55, %v62_v54 }
  0x11   :  { %1873 = vmatpush3.bf16.msra.mxu1 %v1872_v39  ;;  %v112_v61 = vld [vmem:[%s3415_s2 + $0x1d0] sm:$0xff]  ;;  %v113_v62 = vld [vmem:[%s3415_s2 + $0x1d8] sm:$0xff]  ;;  %v1880_v0 = vpack.c.bf16 %v95_v58, %v94_v56  ;;  %v1850_v1 = vpack.c.bf16 %v81_v60, %v80_v59  ;;  %v82_v7 = vld [vmem:[%s3415_s2 + $0xe0] sm:$0xff] }
  0x12   :  { %1875 = vmatprep.subr.bf16.mxu1 %v1874_v44  ;;  %v64_v2 = vld [vmem:[%s3415_s2 + $0x50] sm:$0xff]  ;;  %v65_v3 = vld [vmem:[%s3415_s2 + $0x58] sm:$0xff]  ;;  %v1882_v5 = vpack.c.bf16 %v113_v62, %v112_v61  ;;  %v83_v8 = vld [vmem:[%s3415_s2 + $0xe8] sm:$0xff] }
  0x13   :  { %1845 = vmatpush3.bf16.msra.mxu0 %v1844_v49  ;;  %v96_v4 = vld [vmem:[%s3415_s2 + $0x150] sm:$0xff]  ;;  %v97_v6 = vld [vmem:[%s3415_s2 + $0x158] sm:$0xff]  ;;  %v114_v9 = vld [vmem:[%s3415_s2 + $0x1e0] sm:$0xff]  ;;  %v1852_v11 = vpack.c.bf16 %v65_v3, %v64_v2  ;;  %v1854_v15 = vpack.c.bf16 %v83_v8, %v82_v7 }
  0x14   :  { %1847 = vmatprep.subr.bf16.mxu0 %v1846_v53  ;;  %v115_v10 = vld [vmem:[%s3415_s2 + $0x1e8] sm:$0xff]  ;;  %v66_v12 = vld [vmem:[%s3415_s2 + $0x60] sm:$0xff]  ;;  %v1884_v14 = vpack.c.bf16 %v97_v6, %v96_v4  ;;  %v84_v20 = vld [vmem:[%s3415_s2 + $0xf0] sm:$0xff] }
  0x15   :  { %1877 = vmatpush3.bf16.msra.mxu1 %v1876_v52  ;;  %v67_v13 = vld [vmem:[%s3415_s2 + $0x68] sm:$0xff]  ;;  %v98_v16 = vld [vmem:[%s3415_s2 + $0x160] sm:$0xff]  ;;  %v1886_v19 = vpack.c.bf16 %v115_v10, %v114_v9  ;;  %v85_v21 = vld [vmem:[%s3415_s2 + $0xf8] sm:$0xff] }
  0x16   :  { %1879 = vmatprep.subr.bf16.mxu1 %v1878_v57  ;;  %v99_v17 = vld [vmem:[%s3415_s2 + $0x168] sm:$0xff]  ;;  %v46_v18 = vld [vmem:[%s3413_s0] sm:$0xff]  ;;  %v116_v24 = vld [vmem:[%s3415_s2 + $0x1f0] sm:$0xff]  ;;  %v1856_v27 = vpack.c.bf16 %v67_v13, %v66_v12  ;;  %v1858_v29 = vpack.c.bf16 %v85_v21, %v84_v20 }
  0x17   :  { %1849 = vmatpush3.bf16.msra.mxu0 %v1848_v63  ;;  %v325_v22 = vcombine.high %v46_v18, %v46_v18  ;;  %v47_v23 = vld [vmem:[%s3413_s0 + $0x8] sm:$0xff]  ;;  %v117_v25 = vld [vmem:[%s3415_s2 + $0x1f8] sm:$0xff]  ;;  %v1888_v28 = vpack.c.bf16 %v99_v17, %v98_v16  ;;  %v68_v30 = vld [vmem:[%s3415_s2 + $0x70] sm:$0xff] }
  0x18   :  { %1851 = vmatprep.subr.bf16.mxu0 %v1850_v1  ;;  %v326_v26 = vcombine.high %v47_v23, %v47_v23  ;;  %v69_v31 = vld [vmem:[%s3415_s2 + $0x78] sm:$0xff]  ;;  %v100_v32 = vld [vmem:[%s3415_s2 + $0x170] sm:$0xff]  ;;  %v1890_v33 = vpack.c.bf16 %v117_v25, %v116_v24  ;;  %v134_v35 = vld [vmem:[%s3415_s2 + $0x280] sm:$0xff] }
  0x19   :  { %1881 = vmatpush3.bf16.msra.mxu1 %v1880_v0  ;;  %405 = vmatprep.mubr.f32.mxu0 %v325_v22  ;;  %v101_v34 = vld [vmem:[%s3415_s2 + $0x178] sm:$0xff]  ;;  %v135_v36 = vld [vmem:[%s3415_s2 + $0x288] sm:$0xff]  ;;  %v166_v37 = vld [vmem:[%s3415_s2 + $0x380] sm:$0xff]  ;;  %v1860_v39 = vpack.c.bf16 %v69_v31, %v68_v30 }
  0x1a   :  { %1883 = vmatprep.subr.bf16.mxu1 %v1882_v5  ;;  %475 = vmatprep.mubr.f32.mxu1 %v326_v26  ;;  %v167_v38 = vld [vmem:[%s3415_s2 + $0x388] sm:$0xff]  ;;  %v1892_v40 = vpack.c.bf16 %v101_v34, %v100_v32  ;;  %v1894_v41 = vpack.c.bf16 %v135_v36, %v134_v35  ;;  %v118_v42 = vld [vmem:[%s3415_s2 + $0x200] sm:$0xff]  ;;  %v136_v47 = vld [vmem:[%s3415_s2 + $0x290] sm:$0xff] }
  0x1b   :  { %1853 = vmatpush3.bf16.msra.mxu0 %v1852_v11  ;;  %v119_v43 = vld [vmem:[%s3415_s2 + $0x208] sm:$0xff]  ;;  %v150_v44 = vld [vmem:[%s3415_s2 + $0x300] sm:$0xff]  ;;  %v1926_v45 = vpack.c.bf16 %v167_v38, %v166_v37  ;;  %v137_v48 = vld [vmem:[%s3415_s2 + $0x298] sm:$0xff] }
  0x1c   :  { %1855 = vmatprep.subr.bf16.mxu0 %v1854_v15  ;;  %v151_v46 = vld [vmem:[%s3415_s2 + $0x308] sm:$0xff]  ;;  %v168_v49 = vld [vmem:[%s3415_s2 + $0x390] sm:$0xff]  ;;  %v169_v50 = vld [vmem:[%s3415_s2 + $0x398] sm:$0xff]  ;;  %v1896_v51 = vpack.c.bf16 %v119_v43, %v118_v42  ;;  %v1898_v53 = vpack.c.bf16 %v137_v48, %v136_v47 }
  0x1d   :  { %1885 = vmatpush3.bf16.msra.mxu1 %v1884_v14  ;;  %v1928_v52 = vpack.c.bf16 %v151_v46, %v150_v44  ;;  %v120_v54 = vld [vmem:[%s3415_s2 + $0x210] sm:$0xff]  ;;  %v121_v55 = vld [vmem:[%s3415_s2 + $0x218] sm:$0xff]  ;;  %v1930_v57 = vpack.c.bf16 %v169_v50, %v168_v49  ;;  %v138_v59 = vld [vmem:[%s3415_s2 + $0x2a0] sm:$0xff] }
  0x1e   :  { %1887 = vmatprep.subr.bf16.mxu1 %v1886_v19  ;;  %v152_v56 = vld [vmem:[%s3415_s2 + $0x310] sm:$0xff]  ;;  %v153_v58 = vld [vmem:[%s3415_s2 + $0x318] sm:$0xff]  ;;  %v139_v60 = vld [vmem:[%s3415_s2 + $0x2a8] sm:$0xff]  ;;  %v1900_v63 = vpack.c.bf16 %v121_v55, %v120_v54 }
  0x1f   :  { %1857 = vmatpush3.bf16.msra.mxu0 %v1856_v27  ;;  %v170_v61 = vld [vmem:[%s3415_s2 + $0x3a0] sm:$0xff]  ;;  %v171_v62 = vld [vmem:[%s3415_s2 + $0x3a8] sm:$0xff]  ;;  %v1932_v0 = vpack.c.bf16 %v153_v58, %v152_v56  ;;  %v1902_v1 = vpack.c.bf16 %v139_v60, %v138_v59  ;;  %v140_v7 = vld [vmem:[%s3415_s2 + $0x2b0] sm:$0xff] }
  0x20   :  { %1859 = vmatprep.subr.bf16.mxu0 %v1858_v29  ;;  %v122_v2 = vld [vmem:[%s3415_s2 + $0x220] sm:$0xff]  ;;  %v123_v3 = vld [vmem:[%s3415_s2 + $0x228] sm:$0xff]  ;;  %v1934_v5 = vpack.c.bf16 %v171_v62, %v170_v61  ;;  %v141_v8 = vld [vmem:[%s3415_s2 + $0x2b8] sm:$0xff] }
  0x21   :  { %1889 = vmatpush3.bf16.msra.mxu1 %v1888_v28  ;;  %v154_v4 = vld [vmem:[%s3415_s2 + $0x320] sm:$0xff]  ;;  %v155_v6 = vld [vmem:[%s3415_s2 + $0x328] sm:$0xff]  ;;  %v172_v9 = vld [vmem:[%s3415_s2 + $0x3b0] sm:$0xff]  ;;  %v1904_v11 = vpack.c.bf16 %v123_v3, %v122_v2  ;;  %v1906_v13 = vpack.c.bf16 %v141_v8, %v140_v7 }
  0x22   :  { %1891 = vmatprep.subr.bf16.mxu1 %v1890_v33  ;;  %v173_v10 = vld [vmem:[%s3415_s2 + $0x3b8] sm:$0xff]  ;;  %v1936_v12 = vpack.c.bf16 %v155_v6, %v154_v4  ;;  %v124_v14 = vld [vmem:[%s3415_s2 + $0x230] sm:$0xff]  ;;  %v142_v19 = vld [vmem:[%s3415_s2 + $0x2c0] sm:$0xff] }
  0x23   :  { %1861 = vmatpush3.bf16.msra.mxu0 %v1860_v39  ;;  %v125_v15 = vld [vmem:[%s3415_s2 + $0x238] sm:$0xff]  ;;  %v156_v16 = vld [vmem:[%s3415_s2 + $0x330] sm:$0xff]  ;;  %v1938_v17 = vpack.c.bf16 %v173_v10, %v172_v9  ;;  %v143_v20 = vld [vmem:[%s3415_s2 + $0x2c8] sm:$0xff] }
  0x24   :  { %1895 = vmatprep.subr.bf16.mxu0 %v1894_v41  ;;  %v174_v21 = vld [vmem:[%s3415_s2 + $0x3c0] sm:$0xff]  ;;  %v175_v22 = vld [vmem:[%s3415_s2 + $0x3c8] sm:$0xff]  ;;  %v1908_v24 = vpack.c.bf16 %v125_v15, %v124_v14  ;;  %v2614_v26 = vld [vmem:[%s3413_s0 + $0x18] sm:$0xff]  ;;  %v1910_v28 = vpack.c.bf16 %v143_v20, %v142_v19 }
  0x25   :  { %1893 = vmatpush3.bf16.msra.mxu1 %v1892_v40  ;;  %v126_v29 = vld [vmem:[%s3415_s2 + $0x240] sm:$0xff]  ;;  %v127_v30 = vld [vmem:[%s3415_s2 + $0x248] sm:$0xff]  ;;  %v328_v32 = vcombine.high %v2614_v26, %v2614_v26  ;;  %v1942_v33 = vpack.c.bf16 %v175_v22, %v174_v21  ;;  %v144_v35 = vld [vmem:[%s3415_s2 + $0x2d0] sm:$0xff] }
  0x26   :  { %1927 = vmatprep.subr.bf16.mxu1 %v1926_v45  ;;  %406 = vmatmul.mubr.f32.vlgmr.msra.gmra.mrb[0].mxu0 %v46_v18  ;;  %v157_v18 = vld [vmem:[%s3415_s2 + $0x338] sm:$0xff]  ;;  %v158_v31 = vld [vmem:[%s3415_s2 + $0x340] sm:$0xff]  ;;  %v159_v34 = vld [vmem:[%s3415_s2 + $0x348] sm:$0xff]  ;;  %v1912_v39 = vpack.c.bf16 %v127_v30, %v126_v29 }
  0x27   :  { %1897 = vmatpush3.bf16.msra.mxu0 %v1896_v51  ;;  %v1940_v27 = vpack.c.bf16 %v157_v18, %v156_v16  ;;  %v145_v36 = vld [vmem:[%s3415_s2 + $0x2d8] sm:$0xff]  ;;  %v176_v37 = vld [vmem:[%s3415_s2 + $0x3d0] sm:$0xff]  ;;  %v1944_v40 = vpack.c.bf16 %v159_v34, %v158_v31  ;;  %v146_v47 = vld [vmem:[%s3415_s2 + $0x2e0] sm:$0xff] }
  0x28   :  { %476 = vmatmul.mubr.f32.vlgmr.msra.gmra.mrb[0].mxu1 %v47_v23  ;;  %1899 = vmatprep.subr.bf16.mxu0 %v1898_v53  ;;  %v2607_v23 = vld [vmem:[%s3413_s0 + $0x10] sm:$0xff]  ;;  %v177_v38 = vld [vmem:[%s3415_s2 + $0x3d8] sm:$0xff]  ;;  %v1914_v41 = vpack.c.bf16 %v145_v36, %v144_v35  ;;  %v147_v48 = vld [vmem:[%s3415_s2 + $0x2e8] sm:$0xff] }
  0x29   :  { %1929 = vmatpush3.bf16.msra.mxu1 %v1928_v52  ;;  %v327_v25 = vcombine.high %v2607_v23, %v2607_v23  ;;  %615 = vmatprep.mubr.f32.mxu1 %v328_v32  ;;  %v128_v42 = vld [vmem:[%s3415_s2 + $0x250] sm:$0xff]  ;;  %v129_v43 = vld [vmem:[%s3415_s2 + $0x258] sm:$0xff]  ;;  %v1946_v45 = vpack.c.bf16 %v177_v38, %v176_v37  ;;  %v178_v49 = vld [vmem:[%s3415_s2 + $0x3e0] sm:$0xff]  ;;  %v1918_v53 = vpack.c.bf16 %v147_v48, %v146_v47 }
  0x2a   :  { %1931 = vmatprep.subr.bf16.mxu1 %v1930_v57  ;;  %v160_v44 = vld [vmem:[%s3415_s2 + $0x350] sm:$0xff]  ;;  %v161_v46 = vld [vmem:[%s3415_s2 + $0x358] sm:$0xff]  ;;  %v179_v50 = vld [vmem:[%s3415_s2 + $0x3e8] sm:$0xff]  ;;  %v1916_v51 = vpack.c.bf16 %v129_v43, %v128_v42 }
  0x2b   :  { %1901 = vmatpush3.bf16.msra.mxu0 %v1900_v63  ;;  %545 = vmatprep.mubr.f32.mxu0 %v327_v25  ;;  %v1948_v52 = vpack.c.bf16 %v161_v46, %v160_v44  ;;  %v130_v54 = vld [vmem:[%s3415_s2 + $0x260] sm:$0xff]  ;;  %v131_v55 = vld [vmem:[%s3415_s2 + $0x268] sm:$0xff]  ;;  %v1950_v57 = vpack.c.bf16 %v179_v50, %v178_v49  ;;  %v148_v59 = vld [vmem:[%s3415_s2 + $0x2f0] sm:$0xff] }
  0x2c   :  { %1903 = vmatprep.subr.bf16.mxu0 %v1902_v1  ;;  %v162_v56 = vld [vmem:[%s3415_s2 + $0x360] sm:$0xff]  ;;  %v163_v58 = vld [vmem:[%s3415_s2 + $0x368] sm:$0xff]  ;;  %v149_v60 = vld [vmem:[%s3415_s2 + $0x2f8] sm:$0xff]  ;;  %v1920_v63 = vpack.c.bf16 %v131_v55, %v130_v54 }
  0x2d   :  { %1933 = vmatpush3.bf16.msra.mxu1 %v1932_v0  ;;  %v180_v61 = vld [vmem:[%s3415_s2 + $0x3f0] sm:$0xff]  ;;  %v181_v62 = vld [vmem:[%s3415_s2 + $0x3f8] sm:$0xff]  ;;  %v1952_v0 = vpack.c.bf16 %v163_v58, %v162_v56  ;;  %v1922_v1 = vpack.c.bf16 %v149_v60, %v148_v59  ;;  %v198_v7 = vld [vmem:[%s3415_s2 + $0x480] sm:$0xff] }
  0x2e   :  { %1935 = vmatprep.subr.bf16.mxu1 %v1934_v5  ;;  %v132_v2 = vld [vmem:[%s3415_s2 + $0x270] sm:$0xff]  ;;  %v133_v3 = vld [vmem:[%s3415_s2 + $0x278] sm:$0xff]  ;;  %v1954_v5 = vpack.c.bf16 %v181_v62, %v180_v61  ;;  %v199_v8 = vld [vmem:[%s3415_s2 + $0x488] sm:$0xff] }
  0x2f   :  { %1905 = vmatpush3.bf16.msra.mxu0 %v1904_v11  ;;  %v164_v4 = vld [vmem:[%s3415_s2 + $0x370] sm:$0xff]  ;;  %v165_v6 = vld [vmem:[%s3415_s2 + $0x378] sm:$0xff]  ;;  %v230_v9 = vld [vmem:[%s3415_s2 + $0x580] sm:$0xff]  ;;  %v1924_v11 = vpack.c.bf16 %v133_v3, %v132_v2 }
  0x30   :  { %1907 = vmatprep.subr.bf16.mxu0 %v1906_v13  ;;  %v231_v10 = vld [vmem:[%s3415_s2 + $0x588] sm:$0xff]  ;;  %v1958_v13 = vpack.c.bf16 %v199_v8, %v198_v7  ;;  %v182_v14 = vld [vmem:[%s3415_s2 + $0x400] sm:$0xff]  ;;  %v200_v19 = vld [vmem:[%s3415_s2 + $0x490] sm:$0xff] }
  0x31   :  { %1937 = vmatpush3.bf16.msra.mxu1 %v1936_v12  ;;  %v1956_v12 = vpack.c.bf16 %v165_v6, %v164_v4  ;;  %v183_v15 = vld [vmem:[%s3415_s2 + $0x408] sm:$0xff]  ;;  %v214_v16 = vld [vmem:[%s3415_s2 + $0x500] sm:$0xff]  ;;  %v201_v20 = vld [vmem:[%s3415_s2 + $0x498] sm:$0xff] }
  0x32   :  { %1939 = vmatprep.subr.bf16.mxu1 %v1938_v17  ;;  %v1990_v17 = vpack.c.bf16 %v231_v10, %v230_v9  ;;  %v215_v18 = vld [vmem:[%s3415_s2 + $0x508] sm:$0xff]  ;;  %v232_v21 = vld [vmem:[%s3415_s2 + $0x590] sm:$0xff]  ;;  %v233_v22 = vld [vmem:[%s3415_s2 + $0x598] sm:$0xff]  ;;  %v1962_v29 = vpack.c.bf16 %v201_v20, %v200_v19 }
  0x33   :  { %1909 = vmatpush3.bf16.msra.mxu0 %v1908_v24  ;;  %v1960_v24 = vpack.c.bf16 %v183_v15, %v182_v14  ;;  %v184_v25 = vld [vmem:[%s3415_s2 + $0x410] sm:$0xff]  ;;  %v217_v31 = vld [vmem:[%s3415_s2 + $0x518] sm:$0xff]  ;;  %v2753_v32 = vld [vmem:[%s3413_s0 + $0x20] sm:$0xff] }
  0x34   :  { %1911 = vmatprep.subr.bf16.mxu0 %v1910_v28  ;;  %v1992_v28 = vpack.c.bf16 %v215_v18, %v214_v16  ;;  %v216_v30 = vld [vmem:[%s3415_s2 + $0x510] sm:$0xff]  ;;  %v202_v34 = vld [vmem:[%s3415_s2 + $0x4a0] sm:$0xff]  ;;  %v203_v35 = vld [vmem:[%s3415_s2 + $0x4a8] sm:$0xff]  ;;  %v329_v36 = vcombine.high %v2753_v32, %v2753_v32 }
  0x35   :  { %1941 = vmatpush3.bf16.msra.mxu1 %v1940_v27  ;;  %v185_v27 = vld [vmem:[%s3415_s2 + $0x418] sm:$0xff]  ;;  %v2766_v37 = vld [vmem:[%s3413_s0 + $0x28] sm:$0xff]  ;;  %v234_v38 = vld [vmem:[%s3415_s2 + $0x5a0] sm:$0xff]  ;;  %v1996_v42 = vpack.c.bf16 %v217_v31, %v216_v30  ;;  %v1966_v43 = vpack.c.bf16 %v203_v35, %v202_v34 }
  0x36   :  { %1943 = vmatprep.subr.bf16.mxu1 %v1942_v33  ;;  %v1994_v33 = vpack.c.bf16 %v233_v22, %v232_v21  ;;  %v187_v44 = vld [vmem:[%s3415_s2 + $0x428] sm:$0xff]  ;;  %v204_v47 = vld [vmem:[%s3415_s2 + $0x4b0] sm:$0xff]  ;;  %v205_v48 = vld [vmem:[%s3415_s2 + $0x4b8] sm:$0xff] }
  0x37   :  { %1913 = vmatpush3.bf16.msra.mxu0 %v1912_v39  ;;  %v235_v39 = vld [vmem:[%s3415_s2 + $0x5a8] sm:$0xff]  ;;  %v236_v49 = vld [vmem:[%s3415_s2 + $0x5b0] sm:$0xff]  ;;  %v237_v50 = vld [vmem:[%s3415_s2 + $0x5b8] sm:$0xff] }
  0x38   :  { %1915 = vmatprep.subr.bf16.mxu0 %v1914_v41  ;;  %v1964_v41 = vpack.c.bf16 %v185_v27, %v184_v25  ;;  %v1998_v46 = vpack.c.bf16 %v235_v39, %v234_v38  ;;  %v188_v54 = vld [vmem:[%s3415_s2 + $0x430] sm:$0xff]  ;;  %v189_v55 = vld [vmem:[%s3415_s2 + $0x438] sm:$0xff]  ;;  %v206_v59 = vld [vmem:[%s3415_s2 + $0x4c0] sm:$0xff] }
  0x39   :  { %1945 = vmatpush3.bf16.msra.mxu1 %v1944_v40  ;;  %v330_v40 = vcombine.high %v2766_v37, %v2766_v37  ;;  %v220_v56 = vld [vmem:[%s3415_s2 + $0x530] sm:$0xff]  ;;  %v221_v58 = vld [vmem:[%s3415_s2 + $0x538] sm:$0xff]  ;;  %v207_v60 = vld [vmem:[%s3415_s2 + $0x4c8] sm:$0xff] }
  0x3a   :  { %1947 = vmatprep.subr.bf16.mxu1 %v1946_v45  ;;  %v218_v45 = vld [vmem:[%s3415_s2 + $0x520] sm:$0xff]  ;;  %v239_v62 = vld [vmem:[%s3415_s2 + $0x5c8] sm:$0xff]  ;;  %v208_v7 = vld [vmem:[%s3415_s2 + $0x4d0] sm:$0xff] }
  0x3b   :  { %1917 = vmatpush3.bf16.msra.mxu0 %v1916_v51  ;;  %v238_v61 = vld [vmem:[%s3415_s2 + $0x5c0] sm:$0xff]  ;;  %v191_v3 = vld [vmem:[%s3415_s2 + $0x448] sm:$0xff]  ;;  %v209_v8 = vld [vmem:[%s3415_s2 + $0x4d8] sm:$0xff] }
  0x3c   :  { %1919 = vmatprep.subr.bf16.mxu0 %v1918_v53  ;;  %v1970_v53 = vpack.c.bf16 %v205_v48, %v204_v47  ;;  %v190_v2 = vld [vmem:[%s3415_s2 + $0x440] sm:$0xff]  ;;  %v223_v6 = vld [vmem:[%s3415_s2 + $0x548] sm:$0xff]  ;;  %v240_v9 = vld [vmem:[%s3415_s2 + $0x5d0] sm:$0xff] }
  0x3d   :  { %1949 = vmatpush3.bf16.msra.mxu1 %v1948_v52  ;;  %v222_v4 = vld [vmem:[%s3415_s2 + $0x540] sm:$0xff]  ;;  %v241_v10 = vld [vmem:[%s3415_s2 + $0x5d8] sm:$0xff]  ;;  %v192_v14 = vld [vmem:[%s3415_s2 + $0x450] sm:$0xff] }
  0x3e   :  { %1951 = vmatprep.subr.bf16.mxu1 %v1950_v57  ;;  %v2002_v57 = vpack.c.bf16 %v237_v50, %v236_v49  ;;  %v193_v15 = vld [vmem:[%s3415_s2 + $0x458] sm:$0xff]  ;;  %v224_v16 = vld [vmem:[%s3415_s2 + $0x550] sm:$0xff]  ;;  %v210_v19 = vld [vmem:[%s3415_s2 + $0x4e0] sm:$0xff] }
  0x3f   :  { %1921 = vmatpush3.bf16.msra.mxu0 %v1920_v63  ;;  %v1972_v63 = vpack.c.bf16 %v189_v55, %v188_v54  ;;  %v225_v18 = vld [vmem:[%s3415_s2 + $0x558] sm:$0xff]  ;;  %v211_v20 = vld [vmem:[%s3415_s2 + $0x4e8] sm:$0xff]  ;;  %v242_v21 = vld [vmem:[%s3415_s2 + $0x5e0] sm:$0xff] }
  0x40   :  { %1923 = vmatprep.subr.bf16.mxu0 %v1922_v1  ;;  %v1974_v1 = vpack.c.bf16 %v207_v60, %v206_v59  ;;  %v243_v22 = vld [vmem:[%s3415_s2 + $0x5e8] sm:$0xff]  ;;  %v2012_v25 = vpack.c.bf16 %v225_v18, %v224_v16  ;;  %v1982_v27 = vpack.c.bf16 %v211_v20, %v210_v19  ;;  %v226_v30 = vld [vmem:[%s3415_s2 + $0x560] sm:$0xff]  ;;  %v212_v34 = vld [vmem:[%s3415_s2 + $0x4f0] sm:$0xff] }
  0x41   :  { %1953 = vmatpush3.bf16.msra.mxu1 %v1952_v0  ;;  %v2004_v0 = vpack.c.bf16 %v221_v58, %v220_v56  ;;  %v2014_v31 = vpack.c.bf16 %v243_v22, %v242_v21  ;;  %v213_v35 = vld [vmem:[%s3415_s2 + $0x4f8] sm:$0xff] }
  0x42   :  { %1955 = vmatprep.subr.bf16.mxu1 %v1954_v5  ;;  %v2006_v5 = vpack.c.bf16 %v239_v62, %v238_v61  ;;  %v245_v38 = vld [vmem:[%s3415_s2 + $0x5f8] sm:$0xff] }
  0x43   :  { %1925 = vmatpush3.bf16.msra.mxu0 %v1924_v11  ;;  %v1976_v11 = vpack.c.bf16 %v191_v3, %v190_v2 }
  0x44   :  { %1959 = vmatprep.subr.bf16.mxu0 %v1958_v13  ;;  %v1978_v13 = vpack.c.bf16 %v209_v8, %v208_v7 }
  0x45   :  { %1957 = vmatpush3.bf16.msra.mxu1 %v1956_v12  ;;  %v2008_v12 = vpack.c.bf16 %v223_v6, %v222_v4 }
  0x46   :  { %1991 = vmatprep.subr.bf16.mxu1 %v1990_v17  ;;  %546 = vmatmul.mubr.f32.vlgmr.msra.gmra.mrb[2].mxu0 %v2607_v23  ;;  %v186_v23 = vld [vmem:[%s3415_s2 + $0x420] sm:$0xff]  ;;  %v2010_v17 = vpack.c.bf16 %v241_v10, %v240_v9 }
  0x47   :  { %1961 = vmatpush3.bf16.msra.mxu0 %v1960_v24  ;;  %685 = vmatprep.mubr.f32.mxu0 %v329_v36  ;;  %v1968_v51 = vpack.c.bf16 %v187_v44, %v186_v23  ;;  %v1980_v24 = vpack.c.bf16 %v193_v15, %v192_v14  ;;  %v244_v36 = vld [vmem:[%s3415_s2 + $0x5f0] sm:$0xff] }
  0x48   :  { %616 = vmatmul.mubr.f32.vlgmr.msra.gmra.mrb[2].mxu1 %v2614_v26  ;;  %1963 = vmatprep.subr.bf16.mxu0 %v1962_v29  ;;  %v219_v26 = vld [vmem:[%s3415_s2 + $0x528] sm:$0xff] }
  0x49   :  { %1993 = vmatpush3.bf16.msra.mxu1 %v1992_v28  ;;  %755 = vmatprep.mubr.f32.mxu1 %v330_v40  ;;  %v2000_v52 = vpack.c.bf16 %v219_v26, %v218_v45  ;;  %v194_v28 = vld [vmem:[%s3415_s2 + $0x460] sm:$0xff]  ;;  %v195_v29 = vld [vmem:[%s3415_s2 + $0x468] sm:$0xff] }
  0x4a   :  { %1995 = vmatprep.subr.bf16.mxu1 %v1994_v33  ;;  %v227_v33 = vld [vmem:[%s3415_s2 + $0x568] sm:$0xff]  ;;  %v1984_v39 = vpack.c.bf16 %v195_v29, %v194_v28 }
  0x4b   :  { %1965 = vmatpush3.bf16.msra.mxu0 %v1964_v41 }
  0x4c   :  { %1967 = vmatprep.subr.bf16.mxu0 %v1966_v43 }
  0x4d   :  { %1997 = vmatpush3.bf16.msra.mxu1 %v1996_v42 }
  0x4e   :  { %1999 = vmatprep.subr.bf16.mxu1 %v1998_v46 }
  0x4f   :  { %1969 = vmatpush3.bf16.msra.mxu0 %v1968_v51 }
  0x50   :  { %1971 = vmatprep.subr.bf16.mxu0 %v1970_v53 }
  0x51   :  { %2001 = vmatpush3.bf16.msra.mxu1 %v2000_v52 }
  0x52   :  { %2003 = vmatprep.subr.bf16.mxu1 %v2002_v57 }
  0x53   :  { %1973 = vmatpush3.bf16.msra.mxu0 %v1972_v63 }
  0x54   :  { %1975 = vmatprep.subr.bf16.mxu0 %v1974_v1 }
  0x55   :  { %2005 = vmatpush3.bf16.msra.mxu1 %v2004_v0 }
  0x56   :  { %2007 = vmatprep.subr.bf16.mxu1 %v2006_v5 }
  0x57   :  { %1977 = vmatpush3.bf16.msra.mxu0 %v1976_v11 }
  0x58   :  { %1979 = vmatprep.subr.bf16.mxu0 %v1978_v13 }
  0x59   :  { %2009 = vmatpush3.bf16.msra.mxu1 %v2008_v12 }
  0x5a   :  { %2011 = vmatprep.subr.bf16.mxu1 %v2010_v17 }
  0x5b   :  { %1981 = vmatpush3.bf16.msra.mxu0 %v1980_v24 }
  0x5c   :  { %21 = vsyncpa [#allocation4], 0  ;;  %1983 = vmatprep.subr.bf16.mxu0 %v1982_v27  ;;  %v2016_v40 = vpack.c.bf16 %v227_v33, %v226_v30  ;;  %v1986_v41 = vpack.c.bf16 %v213_v35, %v212_v34  ;;  %v196_v42 = vld [vmem:[%s3415_s2 + $0x470] sm:$0xff]  ;;  %v197_v43 = vld [vmem:[%s3415_s2 + $0x478] sm:$0xff]  ;;  %v2018_v44 = vpack.c.bf16 %v245_v38, %v244_v36  ;;  %vm2221_vm0 = vmmov 0   ;;  %s2224_s17 = smov [#allocation3]  }
  0x5d   :  { %2013 = vmatpush3.bf16.msra.mxu1 %v2012_v25  ;;  %v228_v23 = vld [vmem:[%s3415_s2 + $0x570] sm:$0xff]  ;;  %v229_v45 = vld [vmem:[%s3415_s2 + $0x578] sm:$0xff]  ;;  %v262_v46 = vld [vmem:[%s3415_s2 + $0x680] sm:$0xff]  ;;  %v1988_v49 = vpack.c.bf16 %v197_v43, %v196_v42  ;;  %vm1001_vm1 = vcmask 3072   ;;  %vm1057_vm2 = vcmask 1041409   ;;  %vm1284_vm3 = vcmask 523264  }
  0x5e   :  { %2015 = vmatprep.subr.bf16.mxu1 %v2014_v31  ;;  %v263_v26 = vld [vmem:[%s3415_s2 + $0x688] sm:$0xff]  ;;  %v294_v47 = vld [vmem:[%s3415_s2 + $0x780] sm:$0xff]  ;;  %v2020_v50 = vpack.c.bf16 %v229_v45, %v228_v23  ;;  %v264_v57 = vld [vmem:[%s3415_s2 + $0x690] sm:$0xff]  ;;  %s1367_s18 = sshll.u32 %s2224_s17, 4  ;;  %s1368_s18 = int_to_ptr.vmem [resolvable:$true] %s1367_s18 }
  0x5f   :  { %v295_v48 = vld [vmem:[%s3415_s2 + $0x788] sm:$0xff]  ;;  %1985 = vmatpush3.bf16.msra.mxu0 %v1984_v39  ;;  %v2022_v51 = vpack.c.bf16 %v263_v26, %v262_v46  ;;  %v246_v52 = vld [vmem:[%s3415_s2 + $0x600] sm:$0xff]  ;;  %v265_v58 = vld [vmem:[%s3415_s2 + $0x698] sm:$0xff]  ;;  %p2201_p1 = scmp.lt.s32.totalorder %s1368_s18, %s1368_s18 }
  0x60   :  { %1987 = vmatprep.subr.bf16.mxu0 %v1986_v41  ;;  %v247_v53 = vld [vmem:[%s3415_s2 + $0x608] sm:$0xff]  ;;  %v278_v54 = vld [vmem:[%s3415_s2 + $0x700] sm:$0xff]  ;;  %v2054_v55 = vpack.c.bf16 %v295_v48, %v294_v47  ;;  %v296_v59 = vld [vmem:[%s3415_s2 + $0x790] sm:$0xff]  ;;  %v2026_v1 = vpack.c.bf16 %v265_v58, %v264_v57 }
  0x61   :  { %2017 = vmatpush3.bf16.msra.mxu1 %v2016_v40  ;;  %v279_v56 = vld [vmem:[%s3415_s2 + $0x708] sm:$0xff]  ;;  %v297_v60 = vld [vmem:[%s3415_s2 + $0x798] sm:$0xff]  ;;  %v2949_v61 = vld [vmem:[%s3413_s0 + $0x30] sm:$0xff]  ;;  %v2024_v62 = vpack.c.bf16 %v247_v53, %v246_v52 }
  0x62   :  { %2019 = vmatprep.subr.bf16.mxu1 %v2018_v44  ;;  %v2954_v63 = vld [vmem:[%s3413_s0 + $0x38] sm:$0xff]  ;;  %v2056_v0 = vpack.c.bf16 %v279_v56, %v278_v54  ;;  %v248_v2 = vld [vmem:[%s3415_s2 + $0x610] sm:$0xff]  ;;  %v2058_v5 = vpack.c.bf16 %v297_v60, %v296_v59  ;;  %v266_v7 = vld [vmem:[%s3415_s2 + $0x6a0] sm:$0xff]  ;;  %v331_v9 = vcombine.high %v2949_v61, %v2949_v61 }
  0x63   :  { %1989 = vmatpush3.bf16.msra.mxu0 %v1988_v49  ;;  %v249_v3 = vld [vmem:[%s3415_s2 + $0x618] sm:$0xff]  ;;  %v280_v4 = vld [vmem:[%s3415_s2 + $0x710] sm:$0xff]  ;;  %v267_v8 = vld [vmem:[%s3415_s2 + $0x6a8] sm:$0xff]  ;;  %v332_v12 = vcombine.high %v2954_v63, %v2954_v63 }
  0x64   :  { %2023 = vmatprep.subr.bf16.mxu0 %v2022_v51  ;;  %v281_v6 = vld [vmem:[%s3415_s2 + $0x718] sm:$0xff]  ;;  %v298_v10 = vld [vmem:[%s3415_s2 + $0x7a0] sm:$0xff]  ;;  %v299_v11 = vld [vmem:[%s3415_s2 + $0x7a8] sm:$0xff]  ;;  %v2028_v13 = vpack.c.bf16 %v249_v3, %v248_v2  ;;  %v2030_v15 = vpack.c.bf16 %v267_v8, %v266_v7 }
  0x65   :  { %2021 = vmatpush3.bf16.msra.mxu1 %v2020_v50  ;;  %v2060_v14 = vpack.c.bf16 %v281_v6, %v280_v4  ;;  %v251_v16 = vld [vmem:[%s3415_s2 + $0x628] sm:$0xff]  ;;  %v282_v17 = vld [vmem:[%s3415_s2 + $0x720] sm:$0xff]  ;;  %v2062_v18 = vpack.c.bf16 %v299_v11, %v298_v10  ;;  %v268_v19 = vld [vmem:[%s3415_s2 + $0x6b0] sm:$0xff] }
  0x66   :  { %2055 = vmatprep.subr.bf16.mxu1 %v2054_v55  ;;  %686 = vmatmul.mubr.f32.vlgmr.msra.gmra.mrb[4].mxu0 %v2753_v32  ;;  %v250_v32 = vld [vmem:[%s3415_s2 + $0x620] sm:$0xff]  ;;  %v269_v20 = vld [vmem:[%s3415_s2 + $0x6b8] sm:$0xff]  ;;  %v300_v21 = vld [vmem:[%s3415_s2 + $0x7b0] sm:$0xff] }
  0x67   :  { %2025 = vmatpush3.bf16.msra.mxu0 %v2024_v62  ;;  %825 = vmatprep.mubr.f32.mxu0 %v331_v9  ;;  %v301_v22 = vld [vmem:[%s3415_s2 + $0x7b8] sm:$0xff]  ;;  %v2032_v24 = vpack.c.bf16 %v251_v16, %v250_v32  ;;  %v2034_v27 = vpack.c.bf16 %v269_v20, %v268_v19  ;;  %v252_v28 = vld [vmem:[%s3415_s2 + $0x630] sm:$0xff]  ;;  %v270_v34 = vld [vmem:[%s3415_s2 + $0x6c0] sm:$0xff] }
  0x68   :  { %756 = vmatmul.mubr.f32.vlgmr.msra.gmra.mrb[4].mxu1 %v2766_v37  ;;  %2027 = vmatprep.subr.bf16.mxu0 %v2026_v1  ;;  %v283_v37 = vld [vmem:[%s3415_s2 + $0x728] sm:$0xff]  ;;  %v253_v29 = vld [vmem:[%s3415_s2 + $0x638] sm:$0xff]  ;;  %v284_v30 = vld [vmem:[%s3415_s2 + $0x730] sm:$0xff]  ;;  %v2066_v31 = vpack.c.bf16 %v301_v22, %v300_v21  ;;  %v2220_v22 = vmov 0.0|0.0  }
  0x69   :  { %2057 = vmatpush3.bf16.msra.mxu1 %v2056_v0  ;;  %895 = vmatprep.mubr.f32.mxu1 %v332_v12  ;;  %v2064_v25 = vpack.c.bf16 %v283_v37, %v282_v17  ;;  %v285_v33 = vld [vmem:[%s3415_s2 + $0x738] sm:$0xff]  ;;  %v271_v35 = vld [vmem:[%s3415_s2 + $0x6c8] sm:$0xff]  ;;  %v302_v36 = vld [vmem:[%s3415_s2 + $0x7c0] sm:$0xff]  ;;  %v2036_v39 = vpack.c.bf16 %v253_v29, %v252_v28 }
  0x6a   :  { %2059 = vmatprep.subr.bf16.mxu1 %v2058_v5  ;;  %v303_v38 = vld [vmem:[%s3415_s2 + $0x7c8] sm:$0xff]  ;;  %v2068_v40 = vpack.c.bf16 %v285_v33, %v284_v30  ;;  %v2038_v41 = vpack.c.bf16 %v271_v35, %v270_v34  ;;  %v254_v42 = vld [vmem:[%s3415_s2 + $0x640] sm:$0xff]  ;;  %v272_v46 = vld [vmem:[%s3415_s2 + $0x6d0] sm:$0xff] }
  0x6b   :  { %2029 = vmatpush3.bf16.msra.mxu0 %v2028_v13  ;;  %v255_v43 = vld [vmem:[%s3415_s2 + $0x648] sm:$0xff]  ;;  %v286_v23 = vld [vmem:[%s3415_s2 + $0x740] sm:$0xff]  ;;  %v2070_v44 = vpack.c.bf16 %v303_v38, %v302_v36  ;;  %v273_v26 = vld [vmem:[%s3415_s2 + $0x6d8] sm:$0xff] }
  0x6c   :  { %2031 = vmatprep.subr.bf16.mxu0 %v2030_v15  ;;  %v287_v45 = vld [vmem:[%s3415_s2 + $0x748] sm:$0xff]  ;;  %v304_v47 = vld [vmem:[%s3415_s2 + $0x7d0] sm:$0xff]  ;;  %v305_v48 = vld [vmem:[%s3415_s2 + $0x7d8] sm:$0xff]  ;;  %v2040_v49 = vpack.c.bf16 %v255_v43, %v254_v42  ;;  %v2042_v51 = vpack.c.bf16 %v273_v26, %v272_v46 }
  0x6d   :  { %2061 = vmatpush3.bf16.msra.mxu1 %v2060_v14  ;;  %v2072_v50 = vpack.c.bf16 %v287_v45, %v286_v23  ;;  %v256_v52 = vld [vmem:[%s3415_s2 + $0x650] sm:$0xff]  ;;  %v257_v53 = vld [vmem:[%s3415_s2 + $0x658] sm:$0xff]  ;;  %v2074_v55 = vpack.c.bf16 %v305_v48, %v304_v47  ;;  %v274_v57 = vld [vmem:[%s3415_s2 + $0x6e0] sm:$0xff]  ;;  %v2222_v45 = vmov 0.0  }
  0x6e   :  { %2063 = vmatprep.subr.bf16.mxu1 %v2062_v18  ;;  %v288_v54 = vld [vmem:[%s3415_s2 + $0x750] sm:$0xff]  ;;  %v289_v56 = vld [vmem:[%s3415_s2 + $0x758] sm:$0xff]  ;;  %v275_v58 = vld [vmem:[%s3415_s2 + $0x6e8] sm:$0xff]  ;;  %v2044_v62 = vpack.c.bf16 %v257_v53, %v256_v52 }
  0x6f   :  { %2033 = vmatpush3.bf16.msra.mxu0 %v2032_v24  ;;  %v306_v59 = vld [vmem:[%s3415_s2 + $0x7e0] sm:$0xff]  ;;  %v307_v60 = vld [vmem:[%s3415_s2 + $0x7e8] sm:$0xff]  ;;  %v2076_v0 = vpack.c.bf16 %v289_v56, %v288_v54  ;;  %v2046_v1 = vpack.c.bf16 %v275_v58, %v274_v57  ;;  %v276_v7 = vld [vmem:[%s3415_s2 + $0x6f0] sm:$0xff] }
  0x70   :  { %2035 = vmatprep.subr.bf16.mxu0 %v2034_v27  ;;  %v258_v2 = vld [vmem:[%s3415_s2 + $0x660] sm:$0xff]  ;;  %v259_v3 = vld [vmem:[%s3415_s2 + $0x668] sm:$0xff]  ;;  %v2078_v5 = vpack.c.bf16 %v307_v60, %v306_v59  ;;  %v277_v8 = vld [vmem:[%s3415_s2 + $0x6f8] sm:$0xff] }
  0x71   :  { %2065 = vmatpush3.bf16.msra.mxu1 %v2064_v25  ;;  %v290_v4 = vld [vmem:[%s3415_s2 + $0x760] sm:$0xff]  ;;  %v291_v6 = vld [vmem:[%s3415_s2 + $0x768] sm:$0xff]  ;;  %v308_v9 = vld [vmem:[%s3415_s2 + $0x7f0] sm:$0xff]  ;;  %v2048_v11 = vpack.c.bf16 %v259_v3, %v258_v2  ;;  %v2050_v13 = vpack.c.bf16 %v277_v8, %v276_v7 }
  0x72   :  { %2067 = vmatprep.subr.bf16.mxu1 %v2066_v31  ;;  %v309_v10 = vld [vmem:[%s3415_s2 + $0x7f8] sm:$0xff]  ;;  %v2080_v12 = vpack.c.bf16 %v291_v6, %v290_v4  ;;  %v260_v14 = vld [vmem:[%s3415_s2 + $0x670] sm:$0xff]  ;;  %v902_v19 = vld [vmem:[%s3417_s4] sm:$0xff] }
  0x73   :  { %2037 = vmatpush3.bf16.msra.mxu0 %v2036_v39  ;;  %v261_v15 = vld [vmem:[%s3415_s2 + $0x678] sm:$0xff]  ;;  %v2082_v32 = vpack.c.bf16 %v309_v10, %v308_v9  ;;  %v292_v16 = vld [vmem:[%s3415_s2 + $0x770] sm:$0xff]  ;;  %v903_v20 = vld [vmem:[%s3417_s4 + $0x8] sm:$0xff] }
  0x74   :  { %2039 = vmatprep.subr.bf16.mxu0 %v2038_v41  ;;  %v293_v17 = vld [vmem:[%s3415_s2 + $0x778] sm:$0xff]  ;;  %v2052_v18 = vpack.c.bf16 %v261_v15, %v260_v14  ;;  %v904_v21 = vld [vmem:[%s3417_s4 + $0x10] sm:$0xff]  ;;  %v2087_v24 = vpack.c.bf16 %v903_v20, %v902_v19  ;;  %v906_v25 = vld [vmem:[%s3417_s4 + $0x20] sm:$0xff] }
  0x75   :  { %2069 = vmatpush3.bf16.msra.mxu1 %v2068_v40  ;;  %v2084_v37 = vpack.c.bf16 %v293_v17, %v292_v16  ;;  %v907_v27 = vld [vmem:[%s3417_s4 + $0x28] sm:$0xff]  ;;  %v908_v29 = vld [vmem:[%s3417_s4 + $0x30] sm:$0xff]  ;;  %v909_v30 = vld [vmem:[%s3417_s4 + $0x38] sm:$0xff]  ;;  %v2223_v16 = vmov 0  }
  0x76   :  { %2071 = vmatprep.subr.bf16.mxu1 %v2070_v44  ;;  %v2093_v28 = vpack.c.bf16 %v907_v27, %v906_v25  ;;  %v2096_v31 = vpack.c.bf16 %v909_v30, %v908_v29  ;;  %v910_v33 = vld [vmem:[%s3417_s4 + $0x40] sm:$0xff]  ;;  %v911_v34 = vld [vmem:[%s3417_s4 + $0x48] sm:$0xff]  ;;  %v912_v36 = vld [vmem:[%s3417_s4 + $0x50] sm:$0xff]  ;;  %2183 = vset.pattern.permute.xlu0 %v2223_v16 }
  0x77   :  { %2041 = vmatpush3.bf16.msra.mxu0 %v2040_v49  ;;  %v2099_v35 = vpack.c.bf16 %v911_v34, %v910_v33  ;;  %v913_v38 = vld [vmem:[%s3417_s4 + $0x58] sm:$0xff]  ;;  %v914_v40 = vld [vmem:[%s3417_s4 + $0x60] sm:$0xff]  ;;  %v915_v41 = vld [vmem:[%s3417_s4 + $0x68] sm:$0xff] }
  0x78   :  { %2043 = vmatprep.subr.bf16.mxu0 %v2042_v51  ;;  %v2102_v39 = vpack.c.bf16 %v913_v38, %v912_v36  ;;  %v2105_v42 = vpack.c.bf16 %v915_v41, %v914_v40  ;;  %v916_v43 = vld [vmem:[%s3417_s4 + $0x70] sm:$0xff]  ;;  %v917_v23 = vld [vmem:[%s3417_s4 + $0x78] sm:$0xff]  ;;  %v1377_v26 = vld [vmem:[%s3416_s3] ss:$0 sm:$0xff] }
  0x79   :  { %2073 = vmatpush3.bf16.msra.mxu1 %v2072_v50  ;;  %v2108_v44 = vpack.c.bf16 %v917_v23, %v916_v43  ;;  %v1081_v17 = vld [vmem:[%s3419_s6 + $0x80] sm:$0xff]  ;;  %v1066_v20 = vld [vmem:[%s3419_s6 + $0x8] sm:$0xff]  ;;  %v1067_v25 = vld [vmem:[%s3419_s6 + $0x10] sm:$0xff] }
  0x7a   :  { %2075 = vmatprep.subr.bf16.mxu1 %v2074_v55  ;;  %v1068_v27 = vld [vmem:[%s3419_s6 + $0x18] sm:$0xff]  ;;  %v1086_v29 = vld [vmem:[%s3419_s6 + $0xa8] sm:$0xff]  ;;  %v1069_v33 = vld [vmem:[%s3419_s6 + $0x20] sm:$0xff] }
  0x7b   :  { %2045 = vmatpush3.bf16.msra.mxu0 %v2044_v62  ;;  %v2116_v30 = vpack.c.bf16 %v1068_v27, %v1067_v25  ;;  %v1070_v34 = vld [vmem:[%s3419_s6 + $0x28] sm:$0xff]  ;;  %v1088_v36 = vld [vmem:[%s3419_s6 + $0xb8] sm:$0xff]  ;;  %v1071_v40 = vld [vmem:[%s3419_s6 + $0x30] sm:$0xff] }
  0x7c   :  { %2047 = vmatprep.subr.bf16.mxu0 %v2046_v1  ;;  %v2120_v38 = vpack.c.bf16 %v1070_v34, %v1069_v33  ;;  %v1072_v41 = vld [vmem:[%s3419_s6 + $0x38] sm:$0xff]  ;;  %v1090_v43 = vld [vmem:[%s3419_s6 + $0xc8] sm:$0xff]  ;;  %v1185_v27 = vld [vmem:[%s3421_s8 + $0x50] sm:$0xff] }
  0x7d   :  { %2077 = vmatpush3.bf16.msra.mxu1 %v2076_v0  ;;  %v2124_v23 = vpack.c.bf16 %v1072_v41, %v1071_v40  ;;  %v1178_v16 = vld [vmem:[%s3421_s8 + $0x18] sm:$0xff]  ;;  %v1009_v33 = vld [vmem:[%s3414_s1 + $0x30] sm:$0xff] }
  0x7e   :  { %2079 = vmatprep.subr.bf16.mxu1 %v2078_v5  ;;  %v1010_v34 = vld [vmem:[%s3414_s1 + $0x38] sm:$0xff] }
  0x7f   :  { %2049 = vmatpush3.bf16.msra.mxu0 %v2048_v11  ;;  %v1032_v41 = vmax.f32 %v1009_v33, %v1010_v34 }
  0x80   :  { %2051 = vmatprep.subr.bf16.mxu0 %v2050_v13 }
  0x81   :  { %2081 = vmatpush3.bf16.msra.mxu1 %v2080_v12 }
  0x82   :  { %2083 = vmatprep.subr.bf16.mxu1 %v2082_v32 }
  0x83   :  { %2053 = vmatpush3.bf16.msra.mxu0 %v2052_v18  ;;  %v1082_v18 = vld [vmem:[%s3419_s6 + $0x88] sm:$0xff] }
  0x84   :  { %2086 = vmatprep.subr.bf16.mxu0 %v2220_v22  ;;  %v2110_v19 = vpack.c.bf16 %v1082_v18, %v1081_v17  ;;  %v1179_v18 = vld [vmem:[%s3421_s8 + $0x20] sm:$0xff] }
  0x85   :  { %2085 = vmatpush3.bf16.msra.mxu1 %v2084_v37  ;;  %v1065_v37 = vld [vmem:[%s3419_s6] sm:$0xff] }
  0x86   :  { %826 = vmatmul.mubr.f32.vlgmr.msra.gmra.mrb[6].mxu0 %v2949_v61  ;;  %v905_v61 = vld [vmem:[%s3417_s4 + $0x18] sm:$0xff]  ;;  %2111 = vmatprep.subr.bf16.mxu1 %v2110_v19 }
  0x87   :  { %2088 = vmatpush3.bf16.msra.mxu0 %v2087_v24  ;;  %1773 = vmatprep.mubr.msk.f32.mxu0 %vm2221_vm0, %v2222_v45  ;;  %v1084_v24 = vld [vmem:[%s3419_s6 + $0x98] sm:$0xff] }
  0x88   :  { %896 = vmatmul.mubr.f32.vlgmr.msra.gmra.mrb[6].mxu1 %v2954_v63  ;;  %v2090_v63 = vpack.c.bf16 %v905_v61, %v904_v21  ;;  %2089 = vmatprep.subr.bf16.mxu0 %v2220_v22  ;;  %v1083_v21 = vld [vmem:[%s3419_s6 + $0x90] sm:$0xff]  ;;  %v2112_v61 = vpack.c.bf16 %v1066_v20, %v1065_v37  ;;  %v1180_v37 = vld [vmem:[%s3421_s8 + $0x28] sm:$0xff] }
  0x89   :  { %v2149_v19 = vpack.c.bf16 %v1180_v37, %v1179_v18  ;;  %v1181_v20 = vld [vmem:[%s3421_s8 + $0x30] sm:$0xff] }
  0x8a   :  { %2113 = vmatpush3.bf16.msra.mxu1 %v2112_v61  ;;  %v1183_v61 = vld [vmem:[%s3421_s8 + $0x40] sm:$0xff]  ;;  %v1189_v37 = vld [vmem:[%s3421_s8 + $0x70] sm:$0xff] }
  0x8b   :  { %2091 = vmatpush3.bf16.msra.mxu0 %v2090_v63  ;;  %v2114_v63 = vpack.c.bf16 %v1084_v24, %v1083_v21  ;;  %v1182_v21 = vld [vmem:[%s3421_s8 + $0x38] sm:$0xff] }
  0x8c   :  { %2092 = vmatprep.subr.bf16.mxu0 %v2220_v22  ;;  %v2152_v24 = vpack.c.bf16 %v1182_v21, %v1181_v20  ;;  %v1269_v20 = vld [vmem:[%s3423_s10] sm:$0xff]  ;;  %v1270_v21 = vld [vmem:[%s3423_s10 + $0x8] sm:$0xff] }
  0x8d   :  { %2115 = vmatprep.subr.bf16.mxu1 %v2114_v63  ;;  %v1184_v63 = vld [vmem:[%s3421_s8 + $0x48] sm:$0xff] }
  0x8e   :  { %2117 = vmatpush3.bf16.msra.mxu1 %v2116_v30  ;;  %v2155_v25 = vpack.c.bf16 %v1184_v63, %v1183_v61  ;;  %v1005_v30 = vld [vmem:[%s3414_s1 + $0x10] sm:$0xff]  ;;  %v2167_v61 = vpack.c.bf16 %v1270_v21, %v1269_v20  ;;  %v1272_v63 = vld [vmem:[%s3423_s10 + $0x18] sm:$0xff] }
  0x8f   :  { %2094 = vmatpush3.bf16.msra.mxu0 %v2093_v28  ;;  %v1085_v28 = vld [vmem:[%s3419_s6 + $0xa0] sm:$0xff] }
  0x90   :  { %2095 = vmatprep.subr.bf16.mxu0 %v2220_v22 }
  0x93   :  { %2097 = vmatpush3.bf16.msra.mxu0 %v2096_v31  ;;  %v2118_v31 = vpack.c.bf16 %v1086_v29, %v1085_v28  ;;  %v1186_v28 = vld [vmem:[%s3421_s8 + $0x58] sm:$0xff] }
  0x94   :  { %2098 = vmatprep.subr.bf16.mxu0 %v2220_v22  ;;  %v2158_v29 = vpack.c.bf16 %v1186_v28, %v1185_v27  ;;  %v1273_v27 = vld [vmem:[%s3423_s10 + $0x20] sm:$0xff]  ;;  %v1274_v28 = vld [vmem:[%s3423_s10 + $0x28] sm:$0xff] }
  0x95   :  { %2119 = vmatprep.subr.bf16.mxu1 %v2118_v31  ;;  %v1006_v31 = vld [vmem:[%s3414_s1 + $0x18] sm:$0xff] }
  0x96   :  { %2121 = vmatpush3.bf16.msra.mxu1 %v2120_v38  ;;  %v1007_v38 = vld [vmem:[%s3414_s1 + $0x20] sm:$0xff]  ;;  %v1018_v40 = vmax.f32 %v1005_v30, %v1006_v31 }
  0x97   :  { %2100 = vmatpush3.bf16.msra.mxu0 %v2099_v35  ;;  %v1087_v35 = vld [vmem:[%s3419_s6 + $0xb0] sm:$0xff]  ;;  %v1379_v31 = vld [vmem:[%s3420_s7] ss:$0 sm:$0xff] }
  0x98   :  { %2101 = vmatprep.subr.bf16.mxu0 %v2220_v22 }
  0x9b   :  { %2103 = vmatpush3.bf16.msra.mxu0 %v2102_v39  ;;  %v2122_v39 = vpack.c.bf16 %v1088_v36, %v1087_v35  ;;  %v1003_v35 = vld [vmem:[%s3414_s1] sm:$0xff]  ;;  %v1004_v36 = vld [vmem:[%s3414_s1 + $0x8] sm:$0xff] }
  0x9c   :  { %2104 = vmatprep.subr.bf16.mxu0 %v2220_v22 }
  0x9d   :  { %2123 = vmatprep.subr.bf16.mxu1 %v2122_v39  ;;  %v1008_v39 = vld [vmem:[%s3414_s1 + $0x28] sm:$0xff] }
  0x9e   :  { %2125 = vmatpush3.bf16.msra.mxu1 %v2124_v23  ;;  %v1019_v23 = vrot.slane %v1018_v40, 4 }
  0x9f   :  { %2106 = vmatpush3.bf16.msra.mxu0 %v2105_v42  ;;  %v1089_v42 = vld [vmem:[%s3419_s6 + $0xc0] sm:$0xff] }
  0xa0   :  { %2107 = vmatprep.subr.bf16.mxu0 %v2220_v22 }
  0xa3   :  { %2109 = vmatpush3.bf16.msra.mxu0 %v2108_v44  ;;  %v2126_v44 = vpack.c.bf16 %v1090_v43, %v1089_v42  ;;  %v1011_v42 = vmax.f32 %v1003_v35, %v1004_v36  ;;  %v1025_v43 = vmax.f32 %v1007_v38, %v1008_v39  ;;  %v1275_v38 = vld [vmem:[%s3423_s10 + $0x30] sm:$0xff]  ;;  %v1276_v39 = vld [vmem:[%s3423_s10 + $0x38] sm:$0xff] }
  0xa4   :  { %2142 = vmatprep.subr.bf16.mxu0 %v2220_v22 }
  0xa5   :  { %2127 = vmatprep.subr.bf16.mxu1 %v2126_v44  ;;  %v1033_v44 = vrot.slane %v1032_v41, 4 }
  0xf9   :  { %v1415_v46 = vpop.f32.mrb[0].mxu0 }
  0xfa   :  { %v1416_v47 = vpop.f32.mrb[1].mxu0 }
  0xfb   :  { %v1450_v48 = vpop.f32.mrb[0].mxu1  ;;  %v1417_v49 = vadd.f32 %v1416_v47, %v1415_v46  ;;  %v1073_v46 = vld [vmem:[%s3419_s6 + $0x40] sm:$0xff]  ;;  %v1091_v47 = vld [vmem:[%s3419_s6 + $0xd0] sm:$0xff] }
  0xfc   :  { %v1451_v50 = vpop.f32.mrb[1].mxu1 }
  0xfd   :  { %v1452_v51 = vadd.f32 %v1451_v50, %v1450_v48  ;;  %v408_v52 = vadd.f32 %v1417_v49, %v1377_v26  ;;  %v1074_v26 = vld [vmem:[%s3419_s6 + $0x48] sm:$0xff]  ;;  %v1092_v48 = vld [vmem:[%s3419_s6 + $0xd8] sm:$0xff] }
  0xfe   :  { %v2128_v49 = vpack.c.bf16 %v1074_v26, %v1073_v46  ;;  %v2130_v50 = vpack.c.bf16 %v1092_v48, %v1091_v47  ;;  %v1012_v46 = vrot.slane %v1011_v42, 4  ;;  %v1026_v26 = vrot.slane %v1025_v43, 4 }
  0xff   :  { %v478_v53 = vadd.f32 %v1452_v51, %v408_v52  ;;  %v1075_v51 = vld [vmem:[%s3419_s6 + $0x50] sm:$0xff]  ;;  %v1076_v52 = vld [vmem:[%s3419_s6 + $0x58] sm:$0xff]  ;;  %v1020_v47 = vmax.f32 %v1018_v40, %v1019_v23  ;;  %v1034_v48 = vmax.f32 %v1032_v41, %v1033_v44  ;;  %v2176_v40 = vpack.c.bf16 %v1276_v39, %v1275_v38  ;;  %v1381_v44 = vld [vmem:[%s3424_s11] ss:$0 sm:$0xff] }
 0x100   :  { %2129 = vmatpush3.bf16.msra.mxu1 %v2128_v49  ;;  %v1013_v49 = vmax.f32 %v1011_v42, %v1012_v46 }
 0x101   :  { %2131 = vmatprep.subr.bf16.mxu1 %v2130_v50  ;;  %v1027_v50 = vmax.f32 %v1025_v43, %v1026_v26 }
 0x119   :  { %v1485_v54 = vpop.f32.mrb[2].mxu0 }
 0x11a   :  { %v1486_v55 = vpop.f32.mrb[3].mxu0 }
 0x11b   :  { %v1520_v56 = vpop.f32.mrb[2].mxu1  ;;  %v1487_v57 = vadd.f32 %v1486_v55, %v1485_v54  ;;  %v1378_v54 = vld [vmem:[#allocation2] ss:$0 sm:$0xff] }
 0x11c   :  { %v1521_v58 = vpop.f32.mrb[3].mxu1 }
 0x11d   :  { %v1522_v59 = vadd.f32 %v1521_v58, %v1520_v56  ;;  %v548_v60 = vadd.f32 %v1487_v57, %v478_v53  ;;  %v2132_v53 = vpack.c.bf16 %v1076_v52, %v1075_v51  ;;  %v1021_v51 = vrot.slane %v1020_v47, 2 }
 0x11e   :  { %v1035_v52 = vrot.slane %v1034_v48, 2 }
 0x11f   :  { %v618_v62 = vadd.f32 %v1522_v59, %v548_v60  ;;  %2133 = vmatpush3.bf16.msra.mxu1 %v2132_v53  ;;  %v1014_v53 = vrot.slane %v1013_v49, 2 }
 0x139   :  { %v1555_v0 = vpop.f32.mrb[4].mxu0 }
 0x13a   :  { %v1556_v1 = vpop.f32.mrb[5].mxu0 }
 0x13b   :  { %v1590_v2 = vpop.f32.mrb[4].mxu1  ;;  %v1557_v3 = vadd.f32 %v1556_v1, %v1555_v0  ;;  %v1093_v0 = vld [vmem:[%s3419_s6 + $0xe0] sm:$0xff]  ;;  %v1094_v1 = vld [vmem:[%s3419_s6 + $0xe8] sm:$0xff] }
 0x13c   :  { %v1591_v4 = vpop.f32.mrb[5].mxu1 }
 0x13d   :  { %v1592_v5 = vadd.f32 %v1591_v4, %v1590_v2  ;;  %v688_v6 = vadd.f32 %v1557_v3, %v618_v62  ;;  %v2134_v3 = vpack.c.bf16 %v1094_v1, %v1093_v0  ;;  %v1077_v4 = vld [vmem:[%s3419_s6 + $0x60] sm:$0xff] }
 0x13f   :  { %v758_v7 = vadd.f32 %v1592_v5, %v688_v6  ;;  %v1078_v5 = vld [vmem:[%s3419_s6 + $0x68] sm:$0xff]  ;;  %2135 = vmatprep.subr.bf16.mxu1 %v2134_v3 }
 0x140   :  { %v2136_v6 = vpack.c.bf16 %v1078_v5, %v1077_v4 }
 0x142   :  { %2137 = vmatpush3.bf16.msra.mxu1 %v2136_v6 }
 0x159   :  { %v1625_v8 = vpop.f32.mrb[6].mxu0 }
 0x15a   :  { %v1626_v9 = vpop.f32.mrb[7].mxu0 }
 0x15b   :  { %v1660_v10 = vpop.f32.mrb[6].mxu1  ;;  %v1627_v11 = vadd.f32 %v1626_v9, %v1625_v8  ;;  %v1096_v8 = vld [vmem:[%s3419_s6 + $0xf8] sm:$0xff] }
 0x15c   :  { %v1661_v12 = vpop.f32.mrb[7].mxu1 }
 0x15d   :  { %v1662_v13 = vadd.f32 %v1661_v12, %v1660_v10  ;;  %v828_v14 = vadd.f32 %v1627_v11, %v758_v7  ;;  %v1095_v7 = vld [vmem:[%s3419_s6 + $0xf0] sm:$0xff]  ;;  %v1080_v11 = vld [vmem:[%s3419_s6 + $0x78] sm:$0xff] }
 0x15e   :  { %v2138_v9 = vpack.c.bf16 %v1096_v8, %v1095_v7  ;;  %v1079_v10 = vld [vmem:[%s3419_s6 + $0x70] sm:$0xff] }
 0x15f   :  { %v898_v15 = vadd.f32 %v1662_v13, %v828_v14  ;;  %v2140_v12 = vpack.c.bf16 %v1080_v11, %v1079_v10  ;;  %v1175_v13 = vld [vmem:[%s3421_s8] sm:$0xff]  ;;  %v1176_v14 = vld [vmem:[%s3421_s8 + $0x8] sm:$0xff] }
 0x160   :  { %2139 = vmatprep.subr.bf16.mxu1 %v2138_v9 }
 0x161   :  { %v901_v32 = vmax.f32 %v898_v15, 0.0  ;;  %2141 = vmatpush3.bf16.msra.mxu1 %v2140_v12  ;;  %v1177_v15 = vld [vmem:[%s3421_s8 + $0x10] sm:$0xff] }
 0x162   :  { %2166 = vmatprep.subr.bf16.mxu1 %v2220_v22  ;;  %v2146_v17 = vpack.c.bf16 %v1178_v16, %v1177_v15  ;;  %v1187_v16 = vld [vmem:[%s3421_s8 + $0x60] sm:$0xff] }
 0x163   :  { %1774 = vmatmul.mubr.f32.vlgmr.msra.gmra.mrb[8].mxu0 %v901_v32  ;;  %v2143_v32 = vpack.c.bf16 %v1176_v14, %v1175_v13 }
 0x164   :  { %1808 = vmatprep.mubr.msk.f32.mxu0 %vm2221_vm0, %v2222_v45 }
 0x165   :  { %2144 = vmatpush3.bf16.msra.mxu0 %v2143_v32 }
 0x166   :  { %2145 = vmatprep.subr.bf16.mxu0 %v2220_v22 }
 0x169   :  { %2147 = vmatpush3.bf16.msra.mxu0 %v2146_v17  ;;  %v1188_v17 = vld [vmem:[%s3421_s8 + $0x68] sm:$0xff] }
 0x16a   :  { %2148 = vmatprep.subr.bf16.mxu0 %v2220_v22  ;;  %v2161_v18 = vpack.c.bf16 %v1188_v17, %v1187_v16 }
 0x16d   :  { %2150 = vmatpush3.bf16.msra.mxu0 %v2149_v19 }
 0x16e   :  { %2151 = vmatprep.subr.bf16.mxu0 %v2220_v22 }
 0x171   :  { %2153 = vmatpush3.bf16.msra.mxu0 %v2152_v24  ;;  %v1271_v24 = vld [vmem:[%s3423_s10 + $0x10] sm:$0xff]  ;;  %s2196_s10 = scalar_lea.vmem %s1368_s18, 32 }
 0x172   :  { %2154 = vmatprep.subr.bf16.mxu0 %v2220_v22  ;;  %p2197_p0 = scmp.ne.s32.totalorder %s1368_s18, %s2196_s10  ;;  %p2202_p2 = scmp.lt.s32.totalorder %s2196_s10, %s2196_s10 }
 0x174   :  { %p2203_p3 = por %p2202_p2, %p2201_p1 }
 0x175   :  { %2156 = vmatpush3.bf16.msra.mxu0 %v2155_v25  ;;  %v2170_v25 = vpack.c.bf16 %v1272_v63, %v1271_v24 }
 0x176   :  { %2157 = vmatprep.subr.bf16.mxu0 %v2220_v22  ;;  %p2204_p4 = pnand %p2203_p3, %p2197_p0 }
 0x179   :  { %2159 = vmatpush3.bf16.msra.mxu0 %v2158_v29  ;;  %v2173_v29 = vpack.c.bf16 %v1274_v28, %v1273_v27 }
 0x17a   :  { %2160 = vmatprep.subr.bf16.mxu0 %v2220_v22 }
 0x17d   :  { %2162 = vmatpush3.bf16.msra.mxu0 %v2161_v18 }
 0x17e   :  { %2163 = vmatprep.subr.bf16.mxu0 %v2220_v22 }
 0x236   :  { %v991_v55 = vpop.f32.mrb[8].mxu0 }
 0x237   :  { %v992_v56 = vadd.f32 %v1378_v54, %v991_v55  ;;  %v1775_v57 = vpop.f32.mrb[9].mxu0  ;;  %v1028_v54 = vrot.slane %v1027_v50, 2  ;;  %v1022_v55 = vmax.f32 %v1020_v47, %v1021_v51 }
 0x238   :  { %v1015_v57 = vmax.f32 %v1013_v49, %v1014_v53 }
 0x239   :  { %v995_v58 = vsub.f32 %v992_v56, %v992_v56  ;;  %v1036_v56 = vmax.f32 %v1034_v48, %v1035_v52 }
 0x23b   :  { %v996_v59 = vmul.f32 1.442695, %v995_v58  ;;  %v1029_v58 = vmax.f32 %v1027_v50, %v1028_v54 }
 0x23d   :  { %2192 = vpow2.f32 %v996_v59  ;;  %v1023_v59 = vrot.slane %v1022_v55, 1  ;;  %v1030_v0 = vrot.slane %v1029_v58, 1 }
 0x23f   :  { %v1024_v1 = vmax.f32 %v1022_v55, %v1023_v59  ;;  %v1031_v5 = vmax.f32 %v1029_v58, %v1030_v0 }
 0x247   :  { %v2193_v60 = vpop.eup %2192 }
 0x248   :  { %2194 = vrcp.f32 %v2193_v60 }
 0x252   :  { %v2195_v62 = vpop.eup %2194 }
 0x253   :  { %v1000_v2 = vmul.f32 %v2195_v62, %v2193_v60  ;;  %v1037_v60 = vrot.slane %v1036_v56, 1  ;;  %v1016_v62 = vrot.slane %v1015_v57, 1 }
 0x255   :  { %1041 = vperm.xlu0 %2183, %v1000_v2   ;;  %1002 = vst.msk [vmem:[%s3425_s12] sm:$0xf] %vm1001_vm1, %v1000_v2  ;;  %v1038_v2 = vmax.f32 %v1036_v56, %v1037_v60  ;;  %v1017_v3 = vmax.f32 %v1015_v57, %v1016_v62 }
 0x2d4   :  { %v1042_v4 = vpop.permute.xlu0 %1041 }
 0x2d5   :  { %v1043_v6 = vrot.slane %v1042_v4, 1  ;;  %v1044_v7 = vrot.slane %v1042_v4, 2  ;;  %v1045_v8 = vrot.slane %v1042_v4, 3  ;;  %v1050_v11 = vmul.f32 %v1042_v4, %v1017_v3 }
 0x2d7   :  { %v1051_v9 = vmul.f32 %v1043_v6, %v1024_v1  ;;  %v1053_v10 = vmul.f32 %v1045_v8, %v1038_v2  ;;  %v1052_v12 = vmul.f32 %v1044_v7, %v1031_v5 }
 0x2d9   :  { %v1056_v13 = vrot.slane %v1051_v9, 7  ;;  %v1062_v14 = vrot.slane %v1053_v10, 7 }
 0x2db   :  { %v1063_v15 = vsel %vm1057_vm2, %v1062_v14, %v1052_v12  ;;  %v1058_v32 = vsel %vm1057_vm2, %v1056_v13, %v1050_v11 }
 0x2dc   :  { %1168 = vmatprep.mubr.f32.mxu1 %v1063_v15 }
 0x2dd   :  { %1169 = vmatmul.mubr.f32.vlgmr.msra.gmra.mrb[8].mxu1 %v1058_v32 }
 0x2de   :  { %1827 = vmatprep.mubr.msk.f32.mxu1 %vm2221_vm0, %v2222_v45  ;;  %v1190_v45 = vld [vmem:[%s3421_s8 + $0x78] sm:$0xff]  ;;  %2168 = vmatpush3.bf16.msra.mxu1 %v2167_v61 }
 0x2df   :  { %v2164_v19 = vpack.c.bf16 %v1190_v45, %v1189_v37  ;;  %2169 = vmatprep.subr.bf16.mxu1 %v2220_v22 }
 0x2e1   :  { %2165 = vmatpush3.bf16.msra.mxu0 %v2164_v19 }
 0x2e2   :  { %2171 = vmatpush3.bf16.msra.mxu1 %v2170_v25 }
 0x2e3   :  { %2172 = vmatprep.subr.bf16.mxu1 %v2220_v22 }
 0x2e6   :  { %2174 = vmatpush3.bf16.msra.mxu1 %v2173_v29 }
 0x2e7   :  { %2175 = vmatprep.subr.bf16.mxu1 %v2220_v22  ;;  %v1380_v22 = vld [vmem:[%s3422_s9] ss:$0 sm:$0xff] }
 0x2ea   :  { %2177 = vmatpush3.bf16.msra.mxu1 %v2176_v40 }
 0x3b0   :  { %v1712_v30 = vpop.f32.mrb[8].mxu1 }
 0x3b1   :  { %v1713_v33 = vpop.f32.mrb[9].mxu1 }
 0x3b2   :  { %v1714_v34 = vadd.f32 %v1713_v33, %v1712_v30 }
 0x3b4   :  { %v1171_v35 = vadd.f32 %v1714_v34, %v1379_v31 }
 0x3b6   :  { %v1174_v36 = vmax.f32 %v1171_v35, 0.0 }
 0x3b8   :  { %1809 = vmatmul.mubr.f32.vlgmr.msra.gmra.mrb[10].mxu0 %v1174_v36 }
 0x48b   :  { %v1264_v41 = vpop.f32.mrb[10].mxu0 }
 0x48c   :  { %v1265_v42 = vadd.f32 %v1380_v22, %v1264_v41  ;;  %v1810_v43 = vpop.f32.mrb[11].mxu0 }
 0x48e   :  { %v1268_v23 = vmax.f32 %v1265_v42, 0.0 }
 0x490   :  { %1828 = vmatmul.mubr.msk.f32.vlgmr.msra.gmra.mrb[10].mxu1 %vm1284_vm3, %v1268_v23 }
 0x563   :  { %v1354_v46 = vpop.f32.mrb[10].mxu1 }
 0x564   :  { %v1355_v26 = vadd.f32 %v1381_v44, %v1354_v46  ;;  %v1829_v47 = vpop.f32.mrb[11].mxu1 }
 0x566   :  { %1358 = vst [vmem:[#allocation3] sm:$0x3] %v1355_v26 }
 0x567   :  { %2207 = shalt.err (!%p2204_p4)
}
 0x568   :  { %s2208_s19 = scalar_lea.hbm %s3426_s13, 32 }
 0x569   :  { %p2209_p5 = scmp.ne.s32.totalorder %s3426_s13, %s2208_s19  ;;  %p2212_p6 = scmp.lt.u32.totalorder %s2208_s19, %s3426_s13 }
 0x56b   :  { %p2214_p7 = pnand %p2212_p6, %p2209_p5 }
 0x56d   :  { %2217 = shalt.err (!%p2214_p7)
}
 0x56e   :  { %1370 = dma.vmem_to_hbm [thread:$0]  %s1368_s18, 32, %s3426_s13, [#allocation4]  }
 0x56f   :  { %2218 = dma.done.wait [#allocation4], 32  }
 0x570   :  { %2219 = vsyncadd [#allocation4], 4294967264 }
 0x571   :  { %1376 = vsyncpa [#allocation4], 1 }

</bundles_post_ra>
